<compile_context>
chip_gen: v7x
topology: tpu7x:2x2x1
jax: 0.10.0
libtpu: 0.0.40
codegen_flags: <defaults>
</compile_context>

<pallas_src>
import functools
import math

import jax
import jax.numpy as jnp
from jax import lax
from jax.experimental import pallas as pl
from jax.experimental.pallas import tpu as pltpu


# ---------------------------------------------------------------------------
# helpers
# ---------------------------------------------------------------------------

_MIB = 1024 * 1024


def _vmem_budget_bytes():
    """Generation-aware VMEM budget (v5e/v6e: 128 MiB physical, v7x: 64 MiB)."""
    try:
        cap = int(pltpu.get_tpu_info().vmem_capacity_bytes)
    except Exception:
        cap = 64 * _MIB          # conservative fallback == v7x physical VMEM
    # leave ~30% headroom for compiler-internal scratch / double-buffering
    return min(int(cap * 0.70), 112 * _MIB)


def _pick_tile(n, preferred):
    for t in preferred:
        if n % t == 0:
            return t
    if n <= 1024:
        return n                 # small ragged dim: single full-extent block
    # TODO(synk): pad-and-mask path for large dims with no aligned divisor.
    raise ValueError(f"no aligned tile divides dim {n}; pad to a multiple of 128")


def _erf_f32(x):
    """erf in f32 using only VPU/EUP ops (exp, approx reciprocal), |err|~1.5e-7.

    Abramowitz & Stegun 7.1.26; matches nn.GELU's exact-erf formulation to the
    tolerance used here.
    """
    # TODO(synk): switch to lax.erf if/when a Mosaic TPU lowering exists.
    a1, a2, a3, a4, a5 = (0.254829592, -0.284496736, 1.421413741,
                          -1.453152027, 1.061405429)
    p = 0.3275911
    ax = jnp.maximum(x, -x)                              # |x|, pure VPU
    t = pl.reciprocal(1.0 + p * ax, approx=True)         # divide -> EUP slot
    poly = ((((a5 * t + a4) * t + a3) * t + a2) * t + a1) * t
    y = 1.0 - poly * jnp.exp(-ax * ax)                   # exp -> EUP slot
    return jnp.where(x < 0.0, -y, y)


def _gelu_erf(x):
    # exact (erf-form) GELU, computed in f32.
    return 0.5 * x * (1.0 + _erf_f32(x * 0.7071067811865476))


def _gelu_ln_epilogue(y, b, g, beta, eps):
    """bias -> GELU(erf) -> LayerNorm over the last (lane) dim, all f32."""
    y = y + b
    y = _gelu_erf(y)
    mean = jnp.mean(y, axis=-1, keepdims=True)            # XLU lane reduce
    yc = y - mean
    var = jnp.mean(yc * yc, axis=-1, keepdims=True)
    inv = lax.rsqrt(var + eps)
    return (yc * inv) * g + beta


# ---------------------------------------------------------------------------
# kernel 1: fused Linear -> GELU(erf) -> LayerNorm
# ---------------------------------------------------------------------------

def _linear_gelu_ln_single_kernel(x_ref, w_ref, b_ref, g_ref, beta_ref, o_ref,
                                  *, eps):
    # Weight fits in VMEM: whole reduction in one MXU pass, no K grid axis,
    # no accumulator init/finalize branching.
    x = x_ref[...].astype(jnp.bfloat16)                   # bf16 MXU operands
    w = w_ref[...].astype(jnp.bfloat16)
    y = jnp.dot(x, w, preferred_element_type=jnp.float32)  # f32 accumulate
    out = _gelu_ln_epilogue(y,
                            b_ref[...].astype(jnp.float32),
                            g_ref[...].astype(jnp.float32),
                            beta_ref[...].astype(jnp.float32), eps)
    o_ref[...] = out.astype(o_ref.dtype)


def _linear_gelu_ln_kernel(x_ref, w_ref, b_ref, g_ref, beta_ref, o_ref,
                           acc_ref, *, eps):
    k = pl.program_id(1)

    @pl.when(k == 0)
    def _():
        acc_ref[...] = jnp.zeros_like(acc_ref)

    # bf16 MXU matmul, f32 accumulation in resident VMEM scratch.
    x = x_ref[...].astype(jnp.bfloat16)
    w = w_ref[...].astype(jnp.bfloat16)
    acc_ref[...] += jnp.dot(x, w, preferred_element_type=jnp.float32)

    @pl.when(k == pl.num_programs(1) - 1)
    def _():
        # Epilogue on the resident f32 accumulator: bias -> GELU -> LayerNorm.
        out = _gelu_ln_epilogue(acc_ref[...],
                                b_ref[...].astype(jnp.float32),
                                g_ref[...].astype(jnp.float32),
                                beta_ref[...].astype(jnp.float32), eps)
        o_ref[...] = out.astype(o_ref.dtype)


def fused_linear_gelu_layernorm(x, w, b, gamma, beta, *, tm=None, tk=None,
                                eps=1e-5, vmem_limit_bytes=None):
    """y = LayerNorm(GELU_erf(x @ w + b)) with LN over the last (hidden) dim.

    x: [B, S, Hin], w: [Hin, Hout], b/gamma/beta: [Hout].  Hout is NOT tiled
    (LayerNorm reduces over the full hidden dim in one grid step); only the
    M = B*S rows and (when needed) the K = Hin reduction are tiled.
    """
    B, S, Hin = x.shape
    Hout = w.shape[1]
    M = B * S

    budget = _vmem_budget_bytes() if vmem_limit_bytes is None else vmem_limit_bytes

    # Maximize tm first: the K-tiled path re-streams the full weight once per
    # row tile, so larger tm directly cuts weight HBM traffic.
    if tm is None:
        tm = _pick_tile(M, (256, 128, 64, 32, 16, 8))

    x2 = x.reshape(M, Hin)
    b2 = b.reshape(1, Hout)
    g2 = gamma.reshape(1, Hout)
    beta2 = beta.reshape(1, Hout)

    w_bytes = Hin * Hout * w.dtype.itemsize
    x_bytes = M * Hin * x.dtype.itemsize
    out_bytes = M * Hout * x.dtype.itemsize
    flops = 2 * M * Hin * Hout
    transcendentals = 2 * M * Hout           # exp in erf + rsqrt in LN

    single_k = (tk is None) and (w_bytes <= 8 * _MIB)

    if single_k:
        assert M % tm == 0
        cost = pl.CostEstimate(
            flops=flops, transcendentals=transcendentals,
            bytes_accessed=x_bytes + w_bytes + out_bytes + 3 * Hout * 4)
        out = pl.pallas_call(
            functools.partial(_linear_gelu_ln_single_kernel, eps=eps),
            out_shape=jax.ShapeDtypeStruct((M, Hout), x.dtype),
            grid_spec=pltpu.PrefetchScalarGridSpec(
                num_scalar_prefetch=0,
                grid=(M // tm,),
                in_specs=[
                    pl.BlockSpec((tm, Hin), lambda i: (i, 0)),     # x tile
                    pl.BlockSpec((Hin, Hout), lambda i: (0, 0)),   # full weight
                    pl.BlockSpec((1, Hout), lambda i: (0, 0)),     # bias
                    pl.BlockSpec((1, Hout), lambda i: (0, 0)),     # gamma
                    pl.BlockSpec((1, Hout), lambda i: (0, 0)),     # beta
                ],
                out_specs=pl.BlockSpec((tm, Hout), lambda i: (i, 0)),
            ),
            compiler_params=pltpu.CompilerParams(
                dimension_semantics=("parallel",),
                vmem_limit_bytes=budget,
            ),
            cost_estimate=cost,
        )(x2, w, b2, g2, beta2)
    else:
        if tk is None:
            # v7x (smaller VMEM): shrink tk first, never tm or the Hout block.
            tk_pref = (512, 256, 128) if budget >= 64 * _MIB else (256, 128)
            tk = _pick_tile(Hin, tk_pref)
        assert M % tm == 0 and Hin % tk == 0
        cost = pl.CostEstimate(
            flops=flops, transcendentals=transcendentals,
            bytes_accessed=x_bytes + (M // tm) * w_bytes + out_bytes
                           + 3 * Hout * 4)
        out = pl.pallas_call(
            functools.partial(_linear_gelu_ln_kernel, eps=eps),
            out_shape=jax.ShapeDtypeStruct((M, Hout), x.dtype),
            grid_spec=pltpu.PrefetchScalarGridSpec(
                num_scalar_prefetch=0,
                grid=(M // tm, Hin // tk),                 # reduction axis last
                in_specs=[
                    pl.BlockSpec((tm, tk), lambda i, k: (i, k)),      # x tile
                    pl.BlockSpec((tk, Hout), lambda i, k: (k, 0)),    # w tile
                    pl.BlockSpec((1, Hout), lambda i, k: (0, 0)),     # bias
                    pl.BlockSpec((1, Hout), lambda i, k: (0, 0)),     # gamma
                    pl.BlockSpec((1, Hout), lambda i, k: (0, 0)),     # beta
                ],
                out_specs=pl.BlockSpec((tm, Hout), lambda i, k: (i, 0)),
                scratch_shapes=[pltpu.VMEM((tm, Hout), jnp.float32)],
            ),
            compiler_params=pltpu.CompilerParams(
                dimension_semantics=("parallel", "arbitrary"),
                vmem_limit_bytes=budget,
            ),
            cost_estimate=cost,
        )(x2, w, b2, g2, beta2)
    return out.reshape(B, S, Hout)


# ---------------------------------------------------------------------------
# kernel 2: Combined = softmax(Q K^T / sqrt(D)) @ V  (online softmax)
# ---------------------------------------------------------------------------

def _combined_kernel(q_ref, k_ref, v_ref, o_ref, m_sc, l_sc, acc_sc, *, scale):
    kv = pl.program_id(2)

    @pl.when(kv == 0)
    def _():
        m_sc[...] = jnp.full_like(m_sc, -jnp.inf)
        l_sc[...] = jnp.zeros_like(l_sc)
        acc_sc[...] = jnp.zeros_like(acc_sc)

    # Fold 1/sqrt(D) into q (O(tq*D)) instead of scaling the (tq, tkv) scores,
    # then run both matmuls with bf16 operands / f32 accumulation on the MXU.
    q = (q_ref[...].astype(jnp.float32) * scale).astype(jnp.bfloat16)
    k = k_ref[...].astype(jnp.bfloat16)
    s = jnp.dot(q, k.T, preferred_element_type=jnp.float32)     # (tq, tkv)

    m_prev = m_sc[...]
    m_new = jnp.maximum(m_prev, s.max(axis=-1, keepdims=True))
    alpha = jnp.exp(m_prev - m_new)                       # EUP
    p = jnp.exp(s - m_new)                                # EUP
    l_sc[...] = alpha * l_sc[...] + p.sum(axis=-1, keepdims=True)
    acc_sc[...] = alpha * acc_sc[...] + jnp.dot(
        p.astype(jnp.bfloat16), v_ref[...].astype(jnp.bfloat16),
        preferred_element_type=jnp.float32)
    m_sc[...] = m_new

    # TODO(synk): Combined's dropout is identity in eval() mode; add stateful
    # PRNG masking here if training-mode parity is ever needed.
    @pl.when(kv == pl.num_programs(2) - 1)
    def _():
        o_ref[...] = (acc_sc[...] *
                      pl.reciprocal(l_sc[...], approx=True)).astype(o_ref.dtype)


def combined_softmax_matmul(q, k, v, *, tq=None, tkv=None,
                            vmem_limit_bytes=None):
    """softmax(q @ k^T / sqrt(D), dim=-1) @ v, q/k/v: [B, S, D]."""
    B, S, D = q.shape
    budget = _vmem_budget_bytes() if vmem_limit_bytes is None else vmem_limit_bytes

    # Larger tiles amortize per-grid-step overhead and cut the number of
    # online-softmax rescale passes; shrink on VMEM-constrained generations.
    tile_pref = ((512, 256, 128, 64, 32, 16, 8) if budget >= 64 * _MIB
                 else (256, 128, 64, 32, 16, 8))
    if tq is None:
        tq = _pick_tile(S, tile_pref)
    if tkv is None:
        tkv = _pick_tile(S, tile_pref)
    assert S % tq == 0 and S % tkv == 0
    scale = 1.0 / math.sqrt(D)

    itemsize = q.dtype.itemsize
    cost = pl.CostEstimate(
        flops=4 * B * S * S * D,
        transcendentals=B * S * S,
        bytes_accessed=(B * S * D * itemsize) * (2 + 2 * (S // tq)),
    )

    kernel = functools.partial(_combined_kernel, scale=scale)

    return pl.pallas_call(
        kernel,
        out_shape=jax.ShapeDtypeStruct((B, S, D), q.dtype),
        grid_spec=pltpu.PrefetchScalarGridSpec(
            num_scalar_prefetch=0,
            # batch as a squeezed leading parallel axis, kv (reduction) last
            grid=(B, S // tq, S // tkv),
            in_specs=[
                pl.BlockSpec((None, tq, D), lambda b, qi, ki: (b, qi, 0)),
                pl.BlockSpec((None, tkv, D), lambda b, qi, ki: (b, ki, 0)),
                pl.BlockSpec((None, tkv, D), lambda b, qi, ki: (b, ki, 0)),
            ],
            out_specs=pl.BlockSpec((None, tq, D), lambda b, qi, ki: (b, qi, 0)),
            scratch_shapes=[
                pltpu.VMEM((tq, 1), jnp.float32),   # running max m
                pltpu.VMEM((tq, 1), jnp.float32),   # running sum l
                pltpu.VMEM((tq, D), jnp.float32),   # output accumulator
            ],
        ),
        compiler_params=pltpu.CompilerParams(
            dimension_semantics=("parallel", "parallel", "arbitrary"),
            vmem_limit_bytes=budget,
        ),
        cost_estimate=cost,
    )(q, k, v)


# ---------------------------------------------------------------------------
# main
# ---------------------------------------------------------------------------

if __name__ == "__main__":
    key = jax.random.PRNGKey(0)
    k1, k2, k3, k4, k5, k6, k7, k8 = jax.random.split(key, 8)
    dtype = jnp.float32   # kernels also accept bf16 inputs (MXU runs bf16)

    # --- kernel 1: Linear -> InplaceGelu -> InplaceLayerNorm ---------------
    B, S, Hin, Hout = 2, 128, 256, 256
    x = jax.random.normal(k1, (B, S, Hin), dtype)
    w = (jax.random.normal(k2, (Hin, Hout), dtype) / math.sqrt(Hin)).astype(dtype)
    b = 0.1 * jax.random.normal(k3, (Hout,), dtype)
    gamma = 1.0 + 0.1 * jax.random.normal(k4, (Hout,), dtype)
    beta = 0.1 * jax.random.normal(k5, (Hout,), dtype)

    # f32 exact-erf reference
    y = x.reshape(-1, Hin) @ w + b
    y = 0.5 * y * (1.0 + jax.scipy.special.erf(y * (1.0 / math.sqrt(2.0))))
    mean = y.mean(-1, keepdims=True)
    var = ((y - mean) ** 2).mean(-1, keepdims=True)
    ref1 = ((y - mean) * lax.rsqrt(var + 1e-5) * gamma + beta
            ).reshape(B, S, Hout).astype(dtype)

    # single-block (weight-resident, no K grid axis) path
    out1a = jax.block_until_ready(
        fused_linear_gelu_layernorm(x, w, b, gamma, beta))
    assert jnp.allclose(out1a, ref1, rtol=2e-2, atol=2.5e-2), \
        "Linear->GELU->LayerNorm (single-K) kernel mismatch"

    # K-tiled accumulator path (exercised explicitly with tm=tk=128)
    out1b = jax.block_until_ready(
        fused_linear_gelu_layernorm(x, w, b, gamma, beta, tm=128, tk=128))
    assert jnp.allclose(out1b, ref1, rtol=2e-2, atol=2.5e-2), \
        "Linear->GELU->LayerNorm (K-tiled) kernel mismatch"

    # --- kernel 2: Combined (softmax -> dropout[eval: identity] -> matmul) -
    Sa, D = 256, 128
    q = jax.random.normal(k6, (B, Sa, D), dtype)
    kk = jax.random.normal(k7, (B, Sa, D), dtype)
    v = jax.random.normal(k8, (B, Sa, D), dtype)

    s = jnp.einsum("bqd,bkd->bqk", q, kk) / math.sqrt(D)
    ref2 = jnp.einsum("bqk,bkd->bqd", jax.nn.softmax(s, axis=-1), v)

    # default (large-tile) path: single kv step per (b, q-tile)
    out2a = jax.block_until_ready(combined_softmax_matmul(q, kk, v))
    assert jnp.allclose(out2a, ref2, rtol=2e-2, atol=2e-2), \
        "Combined softmax@V kernel mismatch (single kv step)"

    # multi kv-step path exercises the online-softmax rescale
    out2b = jax.block_until_ready(
        combined_softmax_matmul(q, kk, v, tq=128, tkv=128))
    assert jnp.allclose(out2b, ref2, rtol=2e-2, atol=2e-2), \
        "Combined softmax@V kernel mismatch (multi kv step)"

    print("KERNEL_OK")
</pallas_src>

<mosaic_0001>
module attributes {stable_mosaic.version = 11 : i64} {
  func.func @_linear_gelu_ln_single_kernel(%arg0: i32, %arg1: memref<256x256xf32, #tpu.memory_space<vmem>>, %arg2: memref<256x256xf32, #tpu.memory_space<vmem>>, %arg3: memref<1x256xf32, #tpu.memory_space<vmem>>, %arg4: memref<1x256xf32, #tpu.memory_space<vmem>>, %arg5: memref<1x256xf32, #tpu.memory_space<vmem>>, %arg6: memref<256x256xf32, #tpu.memory_space<vmem>>) attributes {dimension_semantics = [#tpu.dimension_semantics<parallel>], iteration_bounds = array<i64: 1>, scalar_prefetch = 0 : i64, scratch_operands = 0 : i64, tpu.core_type = #tpu.core_type<tc>, window_params = [{transform_indices = @transform_0, window_bounds = array<i64: 256, 256>}, {pipeline_mode = #tpu.pipeline_mode<synchronous>, transform_indices = @transform_1, window_bounds = array<i64: 256, 256>}, {pipeline_mode = #tpu.pipeline_mode<synchronous>, transform_indices = @transform_2, window_bounds = array<i64: 1, 256>}, {pipeline_mode = #tpu.pipeline_mode<synchronous>, transform_indices = @transform_3, window_bounds = array<i64: 1, 256>}, {pipeline_mode = #tpu.pipeline_mode<synchronous>, transform_indices = @transform_4, window_bounds = array<i64: 1, 256>}, {transform_indices = @transform_5, window_bounds = array<i64: 256, 256>}]} {
    %c0 = arith.constant 0 : index
    %c0_0 = arith.constant 0 : index
    %0 = vector.load %arg1[%c0, %c0_0] : memref<256x256xf32, #tpu.memory_space<vmem>>, vector<256x256xf32>
    %1 = arith.truncf %0 : vector<256x256xf32> to vector<256x256xbf16>
    %c0_1 = arith.constant 0 : index
    %c0_2 = arith.constant 0 : index
    %2 = vector.load %arg2[%c0_1, %c0_2] : memref<256x256xf32, #tpu.memory_space<vmem>>, vector<256x256xf32>
    %3 = arith.truncf %2 : vector<256x256xf32> to vector<256x256xbf16>
    %cst = arith.constant dense<0.000000e+00> : vector<256x256xf32>
    %4 = tpu.matmul %1, %3, %cst {dimension_numbers = #tpu.dot_dimension_numbers<[1], [0], [0], [1], [0, 0, 1, 1], [], []>} : vector<256x256xbf16>, vector<256x256xbf16>, vector<256x256xf32> -> vector<256x256xf32>
    %c0_3 = arith.constant 0 : index
    %c0_4 = arith.constant 0 : index
    %5 = vector.load %arg3[%c0_3, %c0_4] : memref<1x256xf32, #tpu.memory_space<vmem>>, vector<1x256xf32>
    %c0_5 = arith.constant 0 : index
    %c0_6 = arith.constant 0 : index
    %6 = vector.load %arg4[%c0_5, %c0_6] : memref<1x256xf32, #tpu.memory_space<vmem>>, vector<1x256xf32>
    %c0_7 = arith.constant 0 : index
    %c0_8 = arith.constant 0 : index
    %7 = vector.load %arg5[%c0_7, %c0_8] : memref<1x256xf32, #tpu.memory_space<vmem>>, vector<1x256xf32>
    %8 = vector.broadcast %5 : vector<1x256xf32> to vector<256x256xf32>
    %9 = arith.addf %4, %8 : vector<256x256xf32>
    %cst_9 = arith.constant 5.000000e-01 : f32
    %10 = vector.broadcast %cst_9 : f32 to vector<256x256xf32>
    %11 = arith.mulf %10, %9 : vector<256x256xf32>
    %cst_10 = arith.constant 0.707106769 : f32
    %12 = vector.broadcast %cst_10 : f32 to vector<256x256xf32>
    %13 = arith.mulf %9, %12 : vector<256x256xf32>
    %cst_11 = arith.constant 0.000000e+00 : f32
    %14 = vector.broadcast %cst_11 : f32 to vector<256x256xf32>
    %15 = arith.subf %14, %13 : vector<256x256xf32>
    %16 = arith.maximumf %13, %15 : vector<256x256xf32>
    %cst_12 = arith.constant 0.327591091 : f32
    %17 = vector.broadcast %cst_12 : f32 to vector<256x256xf32>
    %18 = arith.mulf %17, %16 : vector<256x256xf32>
    %cst_13 = arith.constant 1.000000e+00 : f32
    %19 = vector.broadcast %cst_13 : f32 to vector<256x256xf32>
    %20 = arith.addf %19, %18 : vector<256x256xf32>
    %21 = tpu.reciprocal %20 {approx = true} : vector<256x256xf32> -> vector<256x256xf32>
    %cst_14 = arith.constant 1.06140542 : f32
    %22 = vector.broadcast %cst_14 : f32 to vector<256x256xf32>
    %23 = arith.mulf %22, %21 : vector<256x256xf32>
    %cst_15 = arith.constant -1.45315206 : f32
    %24 = vector.broadcast %cst_15 : f32 to vector<256x256xf32>
    %25 = arith.addf %23, %24 : vector<256x256xf32>
    %26 = arith.mulf %25, %21 : vector<256x256xf32>
    %cst_16 = arith.constant 1.42141378 : f32
    %27 = vector.broadcast %cst_16 : f32 to vector<256x256xf32>
    %28 = arith.addf %26, %27 : vector<256x256xf32>
    %29 = arith.mulf %28, %21 : vector<256x256xf32>
    %cst_17 = arith.constant -0.284496725 : f32
    %30 = vector.broadcast %cst_17 : f32 to vector<256x256xf32>
    %31 = arith.addf %29, %30 : vector<256x256xf32>
    %32 = arith.mulf %31, %21 : vector<256x256xf32>
    %cst_18 = arith.constant 0.254829586 : f32
    %33 = vector.broadcast %cst_18 : f32 to vector<256x256xf32>
    %34 = arith.addf %32, %33 : vector<256x256xf32>
    %35 = arith.mulf %34, %21 : vector<256x256xf32>
    %cst_19 = arith.constant 0.000000e+00 : f32
    %36 = vector.broadcast %cst_19 : f32 to vector<256x256xf32>
    %37 = arith.subf %36, %16 : vector<256x256xf32>
    %38 = arith.mulf %37, %16 : vector<256x256xf32>
    %39 = math.exp %38 : vector<256x256xf32>
    %40 = arith.mulf %35, %39 : vector<256x256xf32>
    %cst_20 = arith.constant 1.000000e+00 : f32
    %41 = vector.broadcast %cst_20 : f32 to vector<256x256xf32>
    %42 = arith.subf %41, %40 : vector<256x256xf32>
    %cst_21 = arith.constant 0.000000e+00 : f32
    %43 = vector.broadcast %cst_21 : f32 to vector<256x256xf32>
    %44 = arith.cmpf olt, %13, %43 : vector<256x256xf32>
    %cst_22 = arith.constant 0.000000e+00 : f32
    %45 = vector.broadcast %cst_22 : f32 to vector<256x256xf32>
    %46 = arith.subf %45, %42 : vector<256x256xf32>
    %47 = arith.select %44, %46, %42 : vector<256x256xi1>, vector<256x256xf32>
    %cst_23 = arith.constant 1.000000e+00 : f32
    %48 = vector.broadcast %cst_23 : f32 to vector<256x256xf32>
    %49 = arith.addf %48, %47 : vector<256x256xf32>
    %50 = arith.mulf %11, %49 : vector<256x256xf32>
    %cst_24 = arith.constant dense<0.000000e+00> : vector<256xf32>
    %51 = vector.multi_reduction <add>, %50, %cst_24 [1] : vector<256x256xf32> to vector<256xf32>
    %52 = vector.shape_cast %51 : vector<256xf32> to vector<256x1xf32>
    %cst_25 = arith.constant 2.560000e+02 : f32
    %53 = vector.broadcast %cst_25 : f32 to vector<256x1xf32>
    %54 = arith.divf %52, %53 : vector<256x1xf32>
    %55 = vector.broadcast %54 : vector<256x1xf32> to vector<256x256xf32>
    %56 = arith.subf %50, %55 : vector<256x256xf32>
    %57 = arith.mulf %56, %56 : vector<256x256xf32>
    %cst_26 = arith.constant dense<0.000000e+00> : vector<256xf32>
    %58 = vector.multi_reduction <add>, %57, %cst_26 [1] : vector<256x256xf32> to vector<256xf32>
    %59 = vector.shape_cast %58 : vector<256xf32> to vector<256x1xf32>
    %cst_27 = arith.constant 2.560000e+02 : f32
    %60 = vector.broadcast %cst_27 : f32 to vector<256x1xf32>
    %61 = arith.divf %59, %60 : vector<256x1xf32>
    %cst_28 = arith.constant 9.99999974E-6 : f32
    %62 = vector.broadcast %cst_28 : f32 to vector<256x1xf32>
    %63 = arith.addf %61, %62 : vector<256x1xf32>
    %64 = math.rsqrt %63 : vector<256x1xf32>
    %65 = vector.broadcast %64 : vector<256x1xf32> to vector<256x256xf32>
    %66 = arith.mulf %56, %65 : vector<256x256xf32>
    %67 = vector.broadcast %6 : vector<1x256xf32> to vector<256x256xf32>
    %68 = arith.mulf %66, %67 : vector<256x256xf32>
    %69 = vector.broadcast %7 : vector<1x256xf32> to vector<256x256xf32>
    %70 = arith.addf %68, %69 : vector<256x256xf32>
    %c0_29 = arith.constant 0 : index
    %c0_30 = arith.constant 0 : index
    %71 = vector.load %arg6[%c0_29, %c0_30] : memref<256x256xf32, #tpu.memory_space<vmem>>, vector<256x256xf32>
    tpu.vector_store %arg6[%c0_29, %c0_30], %70 {strides = array<i32>} : memref<256x256xf32, #tpu.memory_space<vmem>>, vector<256x256xf32>,
    return
  }
  func.func @transform_0(%arg0: i32) -> (i32, i32) {
    %c0_i32 = arith.constant 0 : i32
    %c0_i32_0 = arith.constant 0 : i32
    return %arg0, %c0_i32 : i32, i32
  }
  func.func @transform_1(%arg0: i32) -> (i32, i32) {
    %c0_i32 = arith.constant 0 : i32
    %c0_i32_0 = arith.constant 0 : i32
    %c0_i32_1 = arith.constant 0 : i32
    return %c0_i32, %c0_i32_0 : i32, i32
  }
  func.func @transform_2(%arg0: i32) -> (i32, i32) {
    %c0_i32 = arith.constant 0 : i32
    %c0_i32_0 = arith.constant 0 : i32
    %c0_i32_1 = arith.constant 0 : i32
    return %c0_i32, %c0_i32_0 : i32, i32
  }
  func.func @transform_3(%arg0: i32) -> (i32, i32) {
    %c0_i32 = arith.constant 0 : i32
    %c0_i32_0 = arith.constant 0 : i32
    %c0_i32_1 = arith.constant 0 : i32
    return %c0_i32, %c0_i32_0 : i32, i32
  }
  func.func @transform_4(%arg0: i32) -> (i32, i32) {
    %c0_i32 = arith.constant 0 : i32
    %c0_i32_0 = arith.constant 0 : i32
    %c0_i32_1 = arith.constant 0 : i32
    return %c0_i32, %c0_i32_0 : i32, i32
  }
  func.func @transform_5(%arg0: i32) -> (i32, i32) {
    %c0_i32 = arith.constant 0 : i32
    %c0_i32_0 = arith.constant 0 : i32
    return %arg0, %c0_i32 : i32, i32
  }
}

</mosaic_0001>

<bundles_post_ra>
// kernel: tpu_custom_call.1
= control target key start
LH: loop header
LB: loop body
LE: loop exit
PB: predicated region body
PF: predicated region fallthrough
CT: control target
= control target key end

     0   :  { %10 = vsyncpa [#allocation3], 0  ;;  %s5891_s0 = inlined_call_operand.hbm [shape: f32[256,256], index: 0, kind: input, shape index: {}]   ;;  %s5892_s1 = inlined_call_operand.hbm [shape: f32[256,256], index: 1, kind: input, shape index: {}]   ;;  %s5893_s2 = inlined_call_operand.vmem [shape: f32[1,256], index: 2, kind: input, shape index: {}]   ;;  %s5894_s3 = inlined_call_operand.vmem [shape: f32[1,256], index: 3, kind: input, shape index: {}]   ;;  %s5895_s4 = inlined_call_operand.vmem [shape: f32[1,256], index: 4, kind: input, shape index: {}]   ;;  %s5896_s5 = inlined_call_operand.hbm [shape: f32[256,256], index: 5, kind: output, shape index: {}]  }
   0x1   :  { %11 = vsyncpa [#allocation6], 0 }
   0x2   :  { %12 = vsyncpa [#allocation4], 0  ;;  %s3350_s18 = smov [#allocation2]   ;;  %s3278_s22 = scalar_lea.hbm %s5891_s0, 8192 }
   0x3   :  { %s18_s19 = sshll.u32 %s3350_s18, 4  ;;  %p3279_p0 = scmp.ne.s32.totalorder %s5891_s0, %s3278_s22  ;;  %s19_s19 = int_to_ptr.vmem [resolvable:$true] %s18_s19 }
   0x4   :  { %p3282_p1 = scmp.lt.u32.totalorder %s3278_s22, %s5891_s0 }
   0x6   :  { %p3284_p2 = pnand %p3282_p1, %p3279_p0 }
   0x8   :  { %3287 = shalt.err (!%p3284_p2)
}
   0x9   :  { %s3288_s27 = scalar_lea.vmem %s19_s19, 8192  ;;  %p3293_p4 = scmp.lt.s32.totalorder %s19_s19, %s19_s19 }
   0xa   :  { %p3289_p3 = scmp.ne.s32.totalorder %s19_s19, %s3288_s27  ;;  %p3294_p5 = scmp.lt.s32.totalorder %s3288_s27, %s3288_s27 }
   0xc   :  { %p3295_p6 = por %p3294_p5, %p3293_p4 }
   0xe   :  { %p3296_p7 = pnand %p3295_p6, %p3289_p3 }
  0x10   :  { %3299 = shalt.err (!%p3296_p7)
}
  0x11   :  { %s3351_s28 = smov 256   ;;  %s3352_s29 = smov 16  }
  0x12   :  { %24 = dma.hbm_to_vmem [thread:$0]  %s5891_s0, 8192, %s19_s19, [#allocation3], %s3351_s28, %s3351_s28, %s3352_s29  }
  0x13   :  { %s3353_s7 = smov [#allocation5]   ;;  %s3300_s11 = scalar_lea.hbm %s5892_s1, 8192 }
  0x14   :  { %s30_s8 = sshll.u32 %s3353_s7, 4  ;;  %p3301_p8 = scmp.ne.s32.totalorder %s5892_s1, %s3300_s11  ;;  %s31_s8 = int_to_ptr.vmem [resolvable:$true] %s30_s8 }
  0x15   :  { %p3304_p9 = scmp.lt.u32.totalorder %s3300_s11, %s5892_s1 }
  0x17   :  { %p3306_p10 = pnand %p3304_p9, %p3301_p8 }
  0x19   :  { %3309 = shalt.err (!%p3306_p10)
}
  0x1a   :  { %s3310_s16 = scalar_lea.vmem %s31_s8, 8192  ;;  %p3315_p12 = scmp.lt.s32.totalorder %s31_s8, %s31_s8 }
  0x1b   :  { %p3311_p11 = scmp.ne.s32.totalorder %s31_s8, %s3310_s16  ;;  %p3316_p13 = scmp.lt.s32.totalorder %s3310_s16, %s3310_s16 }
  0x1d   :  { %p3317_p0 = por %p3316_p13, %p3315_p12 }
  0x1f   :  { %p3318_p1 = pnand %p3317_p0, %p3311_p11 }
  0x21   :  { %3321 = shalt.err (!%p3318_p1)
}
  0x22   :  { %36 = dma.hbm_to_vmem [thread:$0]  %s5892_s1, 8192, %s31_s8, [#allocation6], %s3351_s28, %s3351_s28, %s3352_s29  }
  0x23   :  { %3344 = dma.done.wait [#allocation3], 8192  }
  0x24   :  { %3345 = vsyncadd [#allocation3], 4294959104 }
  0x25   :  { %3346 = dma.done.wait [#allocation6], 8192  }
  0x26   :  { %3347 = vsyncadd [#allocation6], 4294959104  ;;  %v146_v0 = vld [vmem:[#allocation5 + $0x8] sm:$0xff]  ;;  %v148_v1 = vld [vmem:[#allocation5 + $0x18] sm:$0xff] }
  0x27   :  { %v145_v2 = vld [vmem:[#allocation5] sm:$0xff]  ;;  %v210_v3 = vpack.c.bf16 %v148_v1, %v146_v0  ;;  %v147_v4 = vld [vmem:[#allocation5 + $0x10] sm:$0xff]  ;;  %v150_v5 = vld [vmem:[#allocation5 + $0x28] sm:$0xff] }
  0x28   :  { %v152_v6 = vld [vmem:[#allocation5 + $0x38] sm:$0xff]  ;;  %v209_v7 = vpack.c.bf16 %v147_v4, %v145_v2  ;;  %v149_v9 = vld [vmem:[#allocation5 + $0x20] sm:$0xff]  ;;  %v151_v10 = vld [vmem:[#allocation5 + $0x30] sm:$0xff] }
  0x29   :  { %v212_v8 = vpack.c.bf16 %v152_v6, %v150_v5  ;;  %v154_v11 = vld [vmem:[#allocation5 + $0x48] sm:$0xff]  ;;  %255 = vmatprep.subr.bf16.mxu0 %v210_v3  ;;  %2921 = vmatprep.subr.bf16.mxu1 %v210_v3  ;;  %v156_v12 = vld [vmem:[#allocation5 + $0x58] sm:$0xff]  ;;  %v211_v13 = vpack.c.bf16 %v151_v10, %v149_v9  ;;  %v153_v15 = vld [vmem:[#allocation5 + $0x40] sm:$0xff] }
  0x2a   :  { %256 = vmatpush1.bf16.msra.mxu0 %v209_v7  ;;  %2937 = vmatpush1.bf16.msra.mxu1 %v209_v7  ;;  %v214_v14 = vpack.c.bf16 %v156_v12, %v154_v11  ;;  %v155_v16 = vld [vmem:[#allocation5 + $0x50] sm:$0xff]  ;;  %v158_v17 = vld [vmem:[#allocation5 + $0x68] sm:$0xff]  ;;  %v160_v18 = vld [vmem:[#allocation5 + $0x78] sm:$0xff] }
  0x2b   :  { %257 = vmatprep.subr.bf16.mxu0 %v212_v8  ;;  %2922 = vmatprep.subr.bf16.mxu1 %v212_v8  ;;  %v213_v19 = vpack.c.bf16 %v155_v16, %v153_v15  ;;  %v216_v20 = vpack.c.bf16 %v160_v18, %v158_v17  ;;  %v157_v21 = vld [vmem:[#allocation5 + $0x60] sm:$0xff]  ;;  %v159_v22 = vld [vmem:[#allocation5 + $0x70] sm:$0xff]  ;;  %v162_v23 = vld [vmem:[#allocation5 + $0x88] sm:$0xff] }
  0x2c   :  { %v164_v24 = vld [vmem:[#allocation5 + $0x98] sm:$0xff]  ;;  %v215_v25 = vpack.c.bf16 %v159_v22, %v157_v21  ;;  %v161_v27 = vld [vmem:[#allocation5 + $0x80] sm:$0xff]  ;;  %v163_v28 = vld [vmem:[#allocation5 + $0x90] sm:$0xff] }
  0x2d   :  { %v218_v26 = vpack.c.bf16 %v164_v24, %v162_v23  ;;  %v166_v29 = vld [vmem:[#allocation5 + $0xa8] sm:$0xff]  ;;  %v168_v30 = vld [vmem:[#allocation5 + $0xb8] sm:$0xff]  ;;  %v217_v31 = vpack.c.bf16 %v163_v28, %v161_v27  ;;  %v165_v33 = vld [vmem:[#allocation5 + $0xa0] sm:$0xff] }
  0x2e   :  { %258 = vmatpush1.bf16.msra.mxu0 %v211_v13  ;;  %2938 = vmatpush1.bf16.msra.mxu1 %v211_v13  ;;  %v220_v32 = vpack.c.bf16 %v168_v30, %v166_v29  ;;  %v167_v34 = vld [vmem:[#allocation5 + $0xb0] sm:$0xff]  ;;  %v170_v35 = vld [vmem:[#allocation5 + $0xc8] sm:$0xff]  ;;  %v172_v36 = vld [vmem:[#allocation5 + $0xd8] sm:$0xff] }
  0x2f   :  { %259 = vmatprep.subr.bf16.mxu0 %v214_v14  ;;  %2923 = vmatprep.subr.bf16.mxu1 %v214_v14  ;;  %v219_v37 = vpack.c.bf16 %v167_v34, %v165_v33  ;;  %v169_v38 = vld [vmem:[#allocation5 + $0xc0] sm:$0xff]  ;;  %v171_v39 = vld [vmem:[#allocation5 + $0xd0] sm:$0xff]  ;;  %v222_v40 = vpack.c.bf16 %v172_v36, %v170_v35  ;;  %v174_v41 = vld [vmem:[#allocation5 + $0xe8] sm:$0xff] }
  0x30   :  { %v50_v42 = vld [vmem:[#allocation2 + $0x8] sm:$0xff]  ;;  %v52_v43 = vld [vmem:[#allocation2 + $0x18] sm:$0xff]  ;;  %v221_v49 = vpack.c.bf16 %v171_v39, %v169_v38  ;;  %v173_v51 = vld [vmem:[#allocation5 + $0xe0] sm:$0xff] }
  0x31   :  { %v176_v44 = vld [vmem:[#allocation5 + $0xf8] sm:$0xff]  ;;  %v114_v45 = vpack.c.bf16 %v52_v43, %v50_v42  ;;  %v82_v46 = vld [vmem:[#allocation2 + $0x108] sm:$0xff]  ;;  %v175_v52 = vld [vmem:[#allocation5 + $0xf0] sm:$0xff] }
  0x32   :  { %260 = vmatpush1.bf16.msra.mxu0 %v213_v19  ;;  %2939 = vmatpush1.bf16.msra.mxu1 %v213_v19  ;;  %v84_v47 = vld [vmem:[#allocation2 + $0x118] sm:$0xff]  ;;  %v224_v50 = vpack.c.bf16 %v176_v44, %v174_v41  ;;  %v178_v53 = vld [vmem:[#allocation5 + $0x108] sm:$0xff]  ;;  %v223_v55 = vpack.c.bf16 %v175_v52, %v173_v51  ;;  %v177_v57 = vld [vmem:[#allocation5 + $0x100] sm:$0xff] }
  0x33   :  { %261 = vmatprep.subr.bf16.mxu0 %v216_v20  ;;  %2924 = vmatprep.subr.bf16.mxu1 %v216_v20  ;;  %v130_v48 = vpack.c.bf16 %v84_v47, %v82_v46  ;;  %v180_v54 = vld [vmem:[#allocation5 + $0x118] sm:$0xff]  ;;  %v179_v58 = vld [vmem:[#allocation5 + $0x110] sm:$0xff]  ;;  %v182_v59 = vld [vmem:[#allocation5 + $0x128] sm:$0xff] }
  0x34   :  { %287 = vmatprep.mubr.bf16.mxu0 %v114_v45  ;;  %v226_v56 = vpack.c.bf16 %v180_v54, %v178_v53  ;;  %v184_v60 = vld [vmem:[#allocation5 + $0x138] sm:$0xff]  ;;  %v225_v61 = vpack.c.bf16 %v179_v58, %v177_v57  ;;  %v181_v63 = vld [vmem:[#allocation5 + $0x120] sm:$0xff]  ;;  %v183_v0 = vld [vmem:[#allocation5 + $0x130] sm:$0xff] }
  0x35   :  { %367 = vmatprep.mubr.bf16.mxu1 %v130_v48  ;;  %v228_v62 = vpack.c.bf16 %v184_v60, %v182_v59  ;;  %v186_v1 = vld [vmem:[#allocation5 + $0x148] sm:$0xff]  ;;  %v188_v2 = vld [vmem:[#allocation5 + $0x158] sm:$0xff]  ;;  %v227_v3 = vpack.c.bf16 %v183_v0, %v181_v63  ;;  %v185_v5 = vld [vmem:[#allocation5 + $0x140] sm:$0xff] }
  0x36   :  { %262 = vmatpush1.bf16.msra.mxu0 %v215_v25  ;;  %2940 = vmatpush1.bf16.msra.mxu1 %v215_v25  ;;  %v230_v4 = vpack.c.bf16 %v188_v2, %v186_v1  ;;  %v187_v6 = vld [vmem:[#allocation5 + $0x150] sm:$0xff]  ;;  %v190_v7 = vld [vmem:[#allocation5 + $0x168] sm:$0xff]  ;;  %v192_v8 = vld [vmem:[#allocation5 + $0x178] sm:$0xff] }
  0x37   :  { %263 = vmatprep.subr.bf16.mxu0 %v218_v26  ;;  %2925 = vmatprep.subr.bf16.mxu1 %v218_v26  ;;  %v229_v9 = vpack.c.bf16 %v187_v6, %v185_v5  ;;  %v232_v10 = vpack.c.bf16 %v192_v8, %v190_v7  ;;  %v189_v11 = vld [vmem:[#allocation5 + $0x160] sm:$0xff]  ;;  %v191_v12 = vld [vmem:[#allocation5 + $0x170] sm:$0xff]  ;;  %v194_v13 = vld [vmem:[#allocation5 + $0x188] sm:$0xff] }
  0x38   :  { %v196_v14 = vld [vmem:[#allocation5 + $0x198] sm:$0xff]  ;;  %v231_v15 = vpack.c.bf16 %v191_v12, %v189_v11  ;;  %v193_v17 = vld [vmem:[#allocation5 + $0x180] sm:$0xff]  ;;  %v195_v18 = vld [vmem:[#allocation5 + $0x190] sm:$0xff] }
  0x39   :  { %v234_v16 = vpack.c.bf16 %v196_v14, %v194_v13  ;;  %v198_v19 = vld [vmem:[#allocation5 + $0x1a8] sm:$0xff]  ;;  %v200_v20 = vld [vmem:[#allocation5 + $0x1b8] sm:$0xff]  ;;  %v233_v21 = vpack.c.bf16 %v195_v18, %v193_v17  ;;  %v197_v23 = vld [vmem:[#allocation5 + $0x1a0] sm:$0xff] }
  0x3a   :  { %264 = vmatpush1.bf16.msra.mxu0 %v217_v31  ;;  %2941 = vmatpush1.bf16.msra.mxu1 %v217_v31  ;;  %v236_v22 = vpack.c.bf16 %v200_v20, %v198_v19  ;;  %v199_v24 = vld [vmem:[#allocation5 + $0x1b0] sm:$0xff]  ;;  %v202_v25 = vld [vmem:[#allocation5 + $0x1c8] sm:$0xff]  ;;  %v204_v26 = vld [vmem:[#allocation5 + $0x1d8] sm:$0xff] }
  0x3b   :  { %265 = vmatprep.subr.bf16.mxu0 %v220_v32  ;;  %2926 = vmatprep.subr.bf16.mxu1 %v220_v32  ;;  %v235_v27 = vpack.c.bf16 %v199_v24, %v197_v23  ;;  %v238_v28 = vpack.c.bf16 %v204_v26, %v202_v25  ;;  %v201_v29 = vld [vmem:[#allocation5 + $0x1c0] sm:$0xff]  ;;  %v203_v30 = vld [vmem:[#allocation5 + $0x1d0] sm:$0xff]  ;;  %v206_v31 = vld [vmem:[#allocation5 + $0x1e8] sm:$0xff] }
  0x3c   :  { %v208_v32 = vld [vmem:[#allocation5 + $0x1f8] sm:$0xff]  ;;  %v237_v33 = vpack.c.bf16 %v203_v30, %v201_v29  ;;  %v205_v35 = vld [vmem:[#allocation5 + $0x1e0] sm:$0xff]  ;;  %v207_v36 = vld [vmem:[#allocation5 + $0x1f0] sm:$0xff] }
  0x3d   :  { %v240_v34 = vpack.c.bf16 %v208_v32, %v206_v31  ;;  %v51_v38 = vld [vmem:[#allocation2 + $0x10] sm:$0xff]  ;;  %v239_v39 = vpack.c.bf16 %v207_v36, %v205_v35  ;;  %v54_v42 = vld [vmem:[#allocation2 + $0x28] sm:$0xff]  ;;  %v56_v43 = vld [vmem:[#allocation2 + $0x38] sm:$0xff] }
  0x3e   :  { %266 = vmatpush1.bf16.msra.mxu0 %v219_v37  ;;  %2942 = vmatpush1.bf16.msra.mxu1 %v219_v37  ;;  %v49_v37 = vld [vmem:[#allocation2] sm:$0xff]  ;;  %v83_v41 = vld [vmem:[#allocation2 + $0x110] sm:$0xff]  ;;  %v86_v44 = vld [vmem:[#allocation2 + $0x128] sm:$0xff]  ;;  %v116_v48 = vpack.c.bf16 %v56_v43, %v54_v42 }
  0x3f   :  { %267 = vmatprep.subr.bf16.mxu0 %v222_v40  ;;  %2927 = vmatprep.subr.bf16.mxu1 %v222_v40  ;;  %v81_v40 = vld [vmem:[#allocation2 + $0x100] sm:$0xff]  ;;  %v88_v45 = vld [vmem:[#allocation2 + $0x138] sm:$0xff]  ;;  %v113_v46 = vpack.c.bf16 %v51_v38, %v49_v37  ;;  %v55_v51 = vld [vmem:[#allocation2 + $0x30] sm:$0xff] }
  0x40   :  { %v129_v47 = vpack.c.bf16 %v83_v41, %v81_v40  ;;  %v85_v52 = vld [vmem:[#allocation2 + $0x120] sm:$0xff]  ;;  %v87_v53 = vld [vmem:[#allocation2 + $0x130] sm:$0xff]  ;;  %v58_v54 = vld [vmem:[#allocation2 + $0x48] sm:$0xff] }
  0x41   :  { %v92_v57 = vld [vmem:[#allocation2 + $0x158] sm:$0xff]  ;;  %v131_v59 = vpack.c.bf16 %v87_v53, %v85_v52  ;;  %v59_v63 = vld [vmem:[#allocation2 + $0x50] sm:$0xff]  ;;  %v89_v0 = vld [vmem:[#allocation2 + $0x140] sm:$0xff] }
  0x42   :  { %268 = vmatpush1.bf16.msra.mxu0 %v221_v49  ;;  %2943 = vmatpush1.bf16.msra.mxu1 %v221_v49  ;;  %v132_v49 = vpack.c.bf16 %v88_v45, %v86_v44  ;;  %v91_v1 = vld [vmem:[#allocation2 + $0x150] sm:$0xff]  ;;  %v62_v2 = vld [vmem:[#allocation2 + $0x68] sm:$0xff]  ;;  %v96_v5 = vld [vmem:[#allocation2 + $0x178] sm:$0xff] }
  0x43   :  { %269 = vmatprep.subr.bf16.mxu0 %v224_v50  ;;  %2928 = vmatprep.subr.bf16.mxu1 %v224_v50  ;;  %v53_v50 = vld [vmem:[#allocation2 + $0x20] sm:$0xff]  ;;  %v133_v7 = vpack.c.bf16 %v91_v1, %v89_v0  ;;  %v63_v11 = vld [vmem:[#allocation2 + $0x70] sm:$0xff]  ;;  %v66_v14 = vld [vmem:[#allocation2 + $0x88] sm:$0xff]  ;;  %v245_v0 = vlaneseq }
  0x44   :  { %v115_v58 = vpack.c.bf16 %v55_v51, %v53_v50  ;;  %v93_v12 = vld [vmem:[#allocation2 + $0x160] sm:$0xff]  ;;  %v95_v13 = vld [vmem:[#allocation2 + $0x170] sm:$0xff]  ;;  %v100_v17 = vld [vmem:[#allocation2 + $0x198] sm:$0xff] }
  0x45   :  { %v135_v19 = vpack.c.bf16 %v95_v13, %v93_v12  ;;  %v67_v23 = vld [vmem:[#allocation2 + $0x90] sm:$0xff]  ;;  %v97_v24 = vld [vmem:[#allocation2 + $0x180] sm:$0xff]  ;;  %v70_v26 = vld [vmem:[#allocation2 + $0xa8] sm:$0xff]  ;;  %v246_v1 = vshrl.u32 %v245_v0, 7 }
  0x46   :  { %270 = vmatpush1.bf16.msra.mxu0 %v223_v55  ;;  %2944 = vmatpush1.bf16.msra.mxu1 %v223_v55  ;;  %v60_v55 = vld [vmem:[#allocation2 + $0x58] sm:$0xff]  ;;  %v99_v25 = vld [vmem:[#allocation2 + $0x190] sm:$0xff]  ;;  %v101_v36 = vld [vmem:[#allocation2 + $0x1a0] sm:$0xff] }
  0x47   :  { %271 = vmatprep.subr.bf16.mxu0 %v226_v56  ;;  %2929 = vmatprep.subr.bf16.mxu1 %v226_v56  ;;  %v90_v56 = vld [vmem:[#allocation2 + $0x148] sm:$0xff]  ;;  %v118_v60 = vpack.c.bf16 %v60_v55, %v58_v54  ;;  %v104_v29 = vld [vmem:[#allocation2 + $0x1b8] sm:$0xff]  ;;  %v137_v31 = vpack.c.bf16 %v99_v25, %v97_v24  ;;  %v71_v35 = vld [vmem:[#allocation2 + $0xb0] sm:$0xff] }
  0x48   :  { %v103_v37 = vld [vmem:[#allocation2 + $0x1b0] sm:$0xff]  ;;  %v74_v38 = vld [vmem:[#allocation2 + $0xc8] sm:$0xff]  ;;  %v108_v41 = vld [vmem:[#allocation2 + $0x1d8] sm:$0xff] }
  0x49   :  { %v106_v40 = vld [vmem:[#allocation2 + $0x1c8] sm:$0xff]  ;;  %v139_v43 = vpack.c.bf16 %v103_v37, %v101_v36  ;;  %v80_v51 = vld [vmem:[#allocation2 + $0xf8] sm:$0xff] }
  0x4a   :  { %272 = vmatpush1.bf16.msra.mxu0 %v225_v61  ;;  %2945 = vmatpush1.bf16.msra.mxu1 %v225_v61  ;;  %v134_v61 = vpack.c.bf16 %v92_v57, %v90_v56  ;;  %v142_v45 = vpack.c.bf16 %v108_v41, %v106_v40  ;;  %v78_v50 = vld [vmem:[#allocation2 + $0xe8] sm:$0xff]  ;;  %v112_v53 = vld [vmem:[#allocation2 + $0x1f8] sm:$0xff] }
  0x4b   :  { %273 = vmatprep.subr.bf16.mxu0 %v228_v62  ;;  %2930 = vmatprep.subr.bf16.mxu1 %v228_v62  ;;  %v57_v62 = vld [vmem:[#allocation2 + $0x40] sm:$0xff]  ;;  %v110_v52 = vld [vmem:[#allocation2 + $0x1e8] sm:$0xff]  ;;  %v128_v56 = vpack.c.bf16 %v80_v51, %v78_v50 }
  0x4c   :  { %v117_v6 = vpack.c.bf16 %v59_v63, %v57_v62  ;;  %v144_v57 = vpack.c.bf16 %v112_v53, %v110_v52 }
  0x4e   :  { %274 = vmatpush1.bf16.msra.mxu0 %v227_v3  ;;  %2946 = vmatpush1.bf16.msra.mxu1 %v227_v3  ;;  %v64_v3 = vld [vmem:[#allocation2 + $0x78] sm:$0xff] }
  0x4f   :  { %275 = vmatprep.subr.bf16.mxu0 %v230_v4  ;;  %2931 = vmatprep.subr.bf16.mxu1 %v230_v4  ;;  %v94_v4 = vld [vmem:[#allocation2 + $0x168] sm:$0xff]  ;;  %v120_v8 = vpack.c.bf16 %v64_v3, %v62_v2  ;;  %v3415_v2 = vsub.s32 0, %v246_v1  ;;  %v241_v3 = vld [vmem:[%s5893_s2] sm:$0x3] }
  0x51   :  { %6117 = vst [vmem:[#allocation11_spill] sm:$0xff] %v3415_v2 }
  0x52   :  { %276 = vmatpush1.bf16.msra.mxu0 %v229_v9  ;;  %2947 = vmatpush1.bf16.msra.mxu1 %v229_v9  ;;  %v136_v9 = vpack.c.bf16 %v96_v5, %v94_v4 }
  0x53   :  { %277 = vmatprep.subr.bf16.mxu0 %v232_v10  ;;  %2932 = vmatprep.subr.bf16.mxu1 %v232_v10  ;;  %v61_v10 = vld [vmem:[#allocation2 + $0x60] sm:$0xff] }
  0x54   :  { %v119_v18 = vpack.c.bf16 %v63_v11, %v61_v10  ;;  %v3423_v11 = vrot.slane %v241_v3, %v3415_v2 }
  0x56   :  { %278 = vmatpush1.bf16.msra.mxu0 %v231_v15  ;;  %2948 = vmatpush1.bf16.msra.mxu1 %v231_v15  ;;  %v68_v15 = vld [vmem:[#allocation2 + $0x98] sm:$0xff] }
  0x57   :  { %279 = vmatprep.subr.bf16.mxu0 %v234_v16  ;;  %2933 = vmatprep.subr.bf16.mxu1 %v234_v16  ;;  %v98_v16 = vld [vmem:[#allocation2 + $0x188] sm:$0xff]  ;;  %v122_v20 = vpack.c.bf16 %v68_v15, %v66_v14 }
  0x5a   :  { %280 = vmatpush1.bf16.msra.mxu0 %v233_v21  ;;  %2949 = vmatpush1.bf16.msra.mxu1 %v233_v21  ;;  %v138_v21 = vpack.c.bf16 %v100_v17, %v98_v16 }
  0x5b   :  { %281 = vmatprep.subr.bf16.mxu0 %v236_v22  ;;  %2934 = vmatprep.subr.bf16.mxu1 %v236_v22  ;;  %v65_v22 = vld [vmem:[#allocation2 + $0x80] sm:$0xff] }
  0x5c   :  { %v121_v30 = vpack.c.bf16 %v67_v23, %v65_v22 }
  0x5e   :  { %282 = vmatpush1.bf16.msra.mxu0 %v235_v27  ;;  %2950 = vmatpush1.bf16.msra.mxu1 %v235_v27  ;;  %v72_v27 = vld [vmem:[#allocation2 + $0xb8] sm:$0xff] }
  0x5f   :  { %283 = vmatprep.subr.bf16.mxu0 %v238_v28  ;;  %2935 = vmatprep.subr.bf16.mxu1 %v238_v28  ;;  %v102_v28 = vld [vmem:[#allocation2 + $0x1a8] sm:$0xff]  ;;  %v124_v32 = vpack.c.bf16 %v72_v27, %v70_v26 }
  0x62   :  { %284 = vmatpush1.bf16.msra.mxu0 %v237_v33  ;;  %2951 = vmatpush1.bf16.msra.mxu1 %v237_v33  ;;  %v140_v33 = vpack.c.bf16 %v104_v29, %v102_v28 }
  0x63   :  { %285 = vmatprep.subr.bf16.mxu0 %v240_v34  ;;  %2936 = vmatprep.subr.bf16.mxu1 %v240_v34  ;;  %v69_v34 = vld [vmem:[#allocation2 + $0xa0] sm:$0xff] }
  0x64   :  { %v123_v42 = vpack.c.bf16 %v71_v35, %v69_v34 }
  0x66   :  { %286 = vmatpush1.bf16.msra.mxu0 %v239_v39  ;;  %2952 = vmatpush1.bf16.msra.mxu1 %v239_v39  ;;  %v76_v39 = vld [vmem:[#allocation2 + $0xd8] sm:$0xff] }
  0x67   :  { %v126_v44 = vpack.c.bf16 %v76_v39, %v74_v38 }
  0x69   :  { %288 = vmatmul.mubr.bf16.vlgmr.msra.gmra.mrb[0].mxu0 %v113_v46  ;;  %368 = vmatmul.mubr.bf16.vlgmr.msra.gmra.mrb[0].mxu1 %v129_v47  ;;  %v73_v46 = vld [vmem:[#allocation2 + $0xc0] sm:$0xff]  ;;  %v75_v47 = vld [vmem:[#allocation2 + $0xd0] sm:$0xff] }
  0x6a   :  { %297 = vmatprep.mubr.bf16.mxu0 %v116_v48  ;;  %377 = vmatprep.mubr.bf16.mxu1 %v132_v49  ;;  %v105_v48 = vld [vmem:[#allocation2 + $0x1c0] sm:$0xff]  ;;  %v107_v49 = vld [vmem:[#allocation2 + $0x1d0] sm:$0xff]  ;;  %v125_v54 = vpack.c.bf16 %v75_v47, %v73_v46 }
  0x6b   :  { %v141_v55 = vpack.c.bf16 %v107_v49, %v105_v48 }
  0x71   :  { %298 = vmatmul.mubr.bf16.gmra.mrb[4].mxu0 %v115_v58  ;;  %378 = vmatmul.mubr.bf16.gmra.mrb[4].mxu1 %v131_v59  ;;  %v77_v58 = vld [vmem:[#allocation2 + $0xe0] sm:$0xff]  ;;  %v79_v59 = vld [vmem:[#allocation2 + $0xf0] sm:$0xff] }
  0x72   :  { %307 = vmatprep.mubr.bf16.mxu0 %v118_v60  ;;  %387 = vmatprep.mubr.bf16.mxu1 %v134_v61  ;;  %v109_v60 = vld [vmem:[#allocation2 + $0x1e0] sm:$0xff]  ;;  %v111_v61 = vld [vmem:[#allocation2 + $0x1f0] sm:$0xff]  ;;  %v127_v62 = vpack.c.bf16 %v79_v59, %v77_v58 }
  0x73   :  { %v143_v63 = vpack.c.bf16 %v111_v61, %v109_v60 }
  0x79   :  { %308 = vmatmul.mubr.bf16.gmra.mrb[8].mxu0 %v117_v6  ;;  %388 = vmatmul.mubr.bf16.gmra.mrb[8].mxu1 %v133_v7 }
  0x7a   :  { %317 = vmatprep.mubr.bf16.mxu0 %v120_v8  ;;  %397 = vmatprep.mubr.bf16.mxu1 %v136_v9  ;;  %v3420_v8 = vsub.s32 1, %v246_v1 }
  0x7c   :  { %6118 = vst [vmem:[#allocation12_spill] sm:$0xff] %v3420_v8  ;;  %v3426_v14 = vrot.slane %v241_v3, %v3420_v8 }
  0x81   :  { %318 = vmatmul.mubr.bf16.gmra.mrb[12].mxu0 %v119_v18  ;;  %398 = vmatmul.mubr.bf16.gmra.mrb[12].mxu1 %v135_v19 }
  0x82   :  { %327 = vmatprep.mubr.bf16.mxu0 %v122_v20  ;;  %407 = vmatprep.mubr.bf16.mxu1 %v138_v21 }
  0x89   :  { %328 = vmatmul.mubr.bf16.gmra.mrb[16].mxu0 %v121_v30  ;;  %408 = vmatmul.mubr.bf16.gmra.mrb[16].mxu1 %v137_v31 }
  0x8a   :  { %337 = vmatprep.mubr.bf16.mxu0 %v124_v32  ;;  %417 = vmatprep.mubr.bf16.mxu1 %v140_v33 }
  0x91   :  { %338 = vmatmul.mubr.bf16.gmra.mrb[20].mxu0 %v123_v42  ;;  %418 = vmatmul.mubr.bf16.gmra.mrb[20].mxu1 %v139_v43 }
  0x92   :  { %347 = vmatprep.mubr.bf16.mxu0 %v126_v44  ;;  %427 = vmatprep.mubr.bf16.mxu1 %v142_v45 }
  0x99   :  { %348 = vmatmul.mubr.bf16.gmra.mrb[24].mxu0 %v125_v54  ;;  %428 = vmatmul.mubr.bf16.gmra.mrb[24].mxu1 %v141_v55 }
  0x9a   :  { %357 = vmatprep.mubr.bf16.mxu0 %v128_v56  ;;  %437 = vmatprep.mubr.bf16.mxu1 %v144_v57 }
  0xa1   :  { %358 = vmatmul.mubr.bf16.gmra.mrb[28].mxu0 %v127_v62  ;;  %438 = vmatmul.mubr.bf16.gmra.mrb[28].mxu1 %v143_v63 }
 0x13c   :  { %v289_v4 = vpop.f32.mrb[0].mxu0  ;;  %v369_v5 = vpop.f32.mrb[0].mxu1 }
 0x13d   :  { %v291_v6 = vpop.f32.mrb[1].mxu0  ;;  %v371_v7 = vpop.f32.mrb[1].mxu1  ;;  %v290_v15 = vadd.f32 %v289_v4, %v3423_v11  ;;  %v370_v16 = vadd.f32 %v369_v5, %v3423_v11 }
 0x13e   :  { %v293_v9 = vpop.f32.mrb[2].mxu0  ;;  %v373_v10 = vpop.f32.mrb[2].mxu1  ;;  %v292_v19 = vadd.f32 %v291_v6, %v3426_v14  ;;  %v3438_v22 = vadd.f32 %v371_v7, %v3426_v14 }
 0x13f   :  { %v295_v12 = vpop.f32.mrb[3].mxu0  ;;  %v375_v13 = vpop.f32.mrb[3].mxu1  ;;  %v3433_v20 = vmul.f32 0.70710677, %v290_v15  ;;  %v3435_v21 = vmul.f32 0.70710677, %v370_v16  ;;  %v3460_v33 = vadd.f32 %v293_v9, %v3423_v11  ;;  %v3486_v47 = vadd.f32 %v373_v10, %v3423_v11 }
 0x140   :  { %v3450_v28 = vmul.f32 0.70710677, %v292_v19  ;;  %v3457_v32 = vmul.f32 0.70710677, %v3438_v22  ;;  %v3491_v52 = vadd.f32 %v295_v12, %v3426_v14  ;;  %v3500_v57 = vadd.f32 %v375_v13, %v3426_v14 }
 0x141   :  { %6119 = vst [vmem:[#allocation13_spill] sm:$0xff] %v3433_v20  ;;  %6120 = vst [vmem:[#allocation14_spill] sm:$0xff] %v3435_v21  ;;  %v576_v30 = vsub.f32 0.0, %v3433_v20  ;;  %v608_v31 = vsub.f32 0.0, %v3435_v21  ;;  %v3483_v46 = vmul.f32 0.70710677, %v3460_v33 }
 0x142   :  { %6121 = vst [vmem:[#allocation15_spill] sm:$0xff] %v3450_v28  ;;  %6122 = vst [vmem:[#allocation16_spill] sm:$0xff] %v3457_v32  ;;  %v577_v38 = vsub.f32 0.0, %v3450_v28  ;;  %v609_v43 = vsub.f32 0.0, %v3457_v32  ;;  %v3495_v54 = vmul.f32 0.70710677, %v3486_v47 }
 0x143   :  { %v640_v41 = vmax.f32 %v3433_v20, %v576_v30  ;;  %v672_v42 = vmax.f32 %v3435_v21, %v608_v31  ;;  %6123 = vst [vmem:[#allocation17_spill] sm:$0xff] %v3483_v46  ;;  %v578_v53 = vsub.f32 0.0, %v3483_v46  ;;  %v3511_v4 = vmul.f32 0.70710677, %v3491_v52 }
 0x144   :  { %v299_v17 = vpop.f32.mrb[4].mxu0  ;;  %v3430_v18 = vpop.f32.mrb[4].mxu1  ;;  %v641_v48 = vmax.f32 %v3450_v28, %v577_v38  ;;  %v673_v51 = vmax.f32 %v3457_v32, %v609_v43  ;;  %6124 = vst [vmem:[#allocation18_spill] sm:$0xff] %v3495_v54  ;;  %v3517_v7 = vmul.f32 0.5, %v290_v15  ;;  %v610_v10 = vsub.f32 0.0, %v3495_v54 }
 0x145   :  { %v3440_v23 = vpop.f32.mrb[5].mxu0  ;;  %v3442_v24 = vpop.f32.mrb[5].mxu1  ;;  %v1472_v49 = vsub.f32 0.0, %v640_v41  ;;  %v1504_v50 = vsub.f32 0.0, %v672_v42  ;;  %v704_v56 = vmul.f32 0.3275911, %v640_v41  ;;  %v642_v9 = vmax.f32 %v3483_v46, %v578_v53 }
 0x146   :  { %v3444_v25 = vpop.f32.mrb[6].mxu0  ;;  %v3446_v26 = vpop.f32.mrb[6].mxu1  ;;  %v736_v60 = vmul.f32 0.3275911, %v672_v42  ;;  %v1473_v61 = vsub.f32 0.0, %v641_v48  ;;  %v1505_v3 = vsub.f32 0.0, %v673_v51  ;;  %v3522_v12 = vadd.f32 %v299_v17, %v3423_v11 }
 0x147   :  { %v3448_v27 = vpop.f32.mrb[7].mxu0  ;;  %v3452_v29 = vpop.f32.mrb[7].mxu1  ;;  %v1536_v0 = vmul.f32 %v1472_v49, %v640_v41  ;;  %v1568_v1 = vmul.f32 %v1504_v50, %v672_v42  ;;  %6125 = vst [vmem:[#allocation19_spill] sm:$0xff] %v3511_v4  ;;  %6126 = vst [vmem:[#allocation20_spill] sm:$0xff] %v3517_v7  ;;  %v768_v30 = vadd.f32 1.0, %v704_v56  ;;  %v3526_v31 = vmul.f32 0.5, %v370_v16 }
 0x148   :  { %v705_v38 = vmul.f32 0.3275911, %v641_v48  ;;  %v3529_v41 = vmul.f32 0.70710677, %v3500_v57  ;;  %v800_v42 = vadd.f32 1.0, %v736_v60  ;;  %v3531_v43 = vmul.f32 0.5, %v292_v19 }
 0x149   :  { %6127 = vst [vmem:[#allocation21_spill] sm:$0xff] %v3526_v31  ;;  %v1537_v15 = vmul.f32 %v1473_v61, %v641_v48  ;;  %v737_v49 = vmul.f32 0.3275911, %v673_v51  ;;  %v1600_v50 = vmul.f32 1.442695, %v1536_v0  ;;  %v1569_v8 = vmul.f32 %v1505_v3, %v673_v51 }
 0x14a   :  { %6128 = vst [vmem:[#allocation22_spill] sm:$0xff] %v3529_v41  ;;  %6129 = vst [vmem:[#allocation23_spill] sm:$0xff] %v3531_v43  ;;  %v1664_v53 = vmul.f32 1.442695, %v1568_v1  ;;  %v579_v17 = vsub.f32 0.0, %v3511_v4  ;;  %v3535_v2 = vmul.f32 0.5, %v3438_v22  ;;  %v674_v16 = vmax.f32 %v3495_v54, %v610_v10 }
 0x14b   :  { %v1474_v56 = vsub.f32 0.0, %v642_v9  ;;  %v3539_v31 = vmul.f32 0.70710677, %v3522_v12  ;;  %2958 = vrcp.f32 %v768_v30  ;;  %v769_v48 = vadd.f32 1.0, %v705_v38 }
 0x14c   :  { %v3462_v34 = vpop.f32.mrb[8].mxu0  ;;  %v3464_v35 = vpop.f32.mrb[8].mxu1  ;;  %6130 = vst [vmem:[#allocation24_spill] sm:$0xff] %v3535_v2  ;;  %v611_v60 = vsub.f32 0.0, %v3529_v41  ;;  %v3548_v51 = vadd.f32 %v3430_v18, %v3423_v11  ;;  %2960 = vrcp.f32 %v800_v42  ;;  %v1602_v0 = vmul.f32 1.442695, %v1537_v15 }
 0x14d   :  { %v3466_v36 = vpop.f32.mrb[9].mxu0  ;;  %v3468_v37 = vpop.f32.mrb[9].mxu1  ;;  %6131 = vst [vmem:[#allocation25_spill] sm:$0xff] %v3539_v31  ;;  %v706_v1 = vmul.f32 0.3275911, %v642_v9  ;;  %2962 = vpow2.f32 %v1600_v50  ;;  %v801_v30 = vadd.f32 1.0, %v737_v49  ;;  %v643_v2 = vmax.f32 %v3511_v4, %v579_v17 }
 0x14e   :  { %v3471_v39 = vpop.f32.mrb[10].mxu0  ;;  %v3473_v40 = vpop.f32.mrb[10].mxu1  ;;  %v1666_v38 = vmul.f32 1.442695, %v1569_v8  ;;  %2964 = vpow2.f32 %v1664_v53  ;;  %v1538_v21 = vmul.f32 %v1474_v56, %v642_v9  ;;  %v1506_v54 = vsub.f32 0.0, %v674_v16 }
 0x14f   :  { %v3478_v44 = vpop.f32.mrb[11].mxu0  ;;  %v3480_v45 = vpop.f32.mrb[11].mxu1  ;;  %v580_v42 = vsub.f32 0.0, %v3539_v31  ;;  %2966 = vrcp.f32 %v769_v48  ;;  %v675_v15 = vmax.f32 %v3529_v41, %v611_v60  ;;  %v3566_v43 = vmul.f32 0.70710677, %v3548_v51 }
 0x150   :  { %v3570_v8 = vadd.f32 %v3440_v23, %v3426_v14  ;;  %2968 = vpow2.f32 %v1602_v0  ;;  %v3573_v49 = vmul.f32 0.5, %v3460_v33  ;;  %v770_v50 = vadd.f32 1.0, %v706_v1 }
 0x151   :  { %6132 = vst [vmem:[#allocation26_spill] sm:$0xff] %v3566_v43  ;;  %v3576_v9 = vmul.f32 0.5, %v3486_v47  ;;  %2970 = vrcp.f32 %v801_v30  ;;  %v738_v53 = vmul.f32 0.3275911, %v674_v16  ;;  %v1475_v17 = vsub.f32 0.0, %v643_v2 }
 0x152   :  { %6133 = vst [vmem:[#allocation27_spill] sm:$0xff] %v3573_v49  ;;  %v3580_v56 = vadd.f32 %v3442_v24, %v3426_v14  ;;  %2972 = vpow2.f32 %v1666_v38  ;;  %v1604_v48 = vmul.f32 1.442695, %v1538_v21  ;;  %v1570_v60 = vmul.f32 %v1506_v54, %v674_v16 }
 0x153   :  { %6134 = vst [vmem:[#allocation28_spill] sm:$0xff] %v3576_v9  ;;  %v644_v23 = vmax.f32 %v3539_v31, %v580_v42  ;;  %v1507_v1 = vsub.f32 0.0, %v675_v15  ;;  %v612_v47 = vsub.f32 0.0, %v3566_v43  ;;  %v3589_v30 = vmul.f32 0.70710677, %v3570_v8 }
 0x154   :  { %v3497_v55 = vpop.f32.mrb[12].mxu0  ;;  %v3502_v58 = vpop.f32.mrb[12].mxu1  ;;  %v3593_v49 = vadd.f32 %v3444_v25, %v3423_v11  ;;  %2974 = vrcp.f32 %v770_v50  ;;  %v3600_v54 = vmul.f32 0.5, %v3491_v52  ;;  %v707_v16 = vmul.f32 0.3275911, %v643_v2 }
 0x155   :  { %v3504_v59 = vpop.f32.mrb[13].mxu0  ;;  %v3506_v62 = vpop.f32.mrb[13].mxu1  ;;  %6135 = vst [vmem:[#allocation29_spill] sm:$0xff] %v3589_v30  ;;  %v3603_v38 = vmul.f32 0.5, %v3500_v57  ;;  %v802_v31 = vadd.f32 1.0, %v738_v53  ;;  %v1539_v9 = vmul.f32 %v1475_v17, %v643_v2  ;;  %v3610_v25 = vmul.f32 0.5, %v3522_v12 }
 0x156   :  { %v3508_v63 = vpop.f32.mrb[14].mxu0  ;;  %v3513_v5 = vpop.f32.mrb[14].mxu1  ;;  %6136 = vst [vmem:[#allocation30_spill] sm:$0xff] %v3600_v54  ;;  %v3613_v41 = vmul.f32 0.70710677, %v3580_v56  ;;  %2976 = vpow2.f32 %v1604_v48  ;;  %v1476_v7 = vsub.f32 0.0, %v644_v23  ;;  %v1571_v2 = vmul.f32 %v1507_v1, %v675_v15 }
 0x157   :  { %v3515_v6 = vpop.f32.mrb[15].mxu0  ;;  %v3524_v13 = vpop.f32.mrb[15].mxu1  ;;  %6137 = vst [vmem:[#allocation31_spill] sm:$0xff] %v3603_v38  ;;  %6139 = vst [vmem:[#allocation33_spill] sm:$0xff] %v3610_v25  ;;  %v1668_v57 = vmul.f32 1.442695, %v1570_v60  ;;  %v676_v12 = vmax.f32 %v3566_v43, %v612_v47  ;;  %v3637_v60 = vadd.f32 %v3446_v26, %v3423_v11  ;;  %2978 = vrcp.f32 %v802_v31 }
 0x158   :  { %v3607_v4 = vpop.eup %2958  ;;  %6140 = vst [vmem:[#allocation34_spill] sm:$0xff] %v3613_v41  ;;  %v739_v38 = vmul.f32 0.3275911, %v675_v15  ;;  %v581_v17 = vsub.f32 0.0, %v3589_v30  ;;  %v3628_v25 = vmul.f32 0.70710677, %v3593_v49  ;;  %v3641_v15 = vadd.f32 %v3448_v27, %v3426_v14 }
 0x159   :  { %6138 = vst [vmem:[#allocation32_spill] sm:$0xff] %v3607_v4  ;;  %v3619_v54 = vpop.eup %2960  ;;  %v771_v4 = vadd.f32 1.0, %v707_v16  ;;  %v3633_v48 = vmul.f32 0.5, %v3548_v51  ;;  %v1606_v47 = vmul.f32 1.442695, %v1539_v9  ;;  %2980 = vpow2.f32 %v1668_v57 }
 0x15a   :  { %6143 = vst [vmem:[#allocation37_spill] sm:$0xff] %v3619_v54  ;;  %v3623_v53 = vpop.eup %2962  ;;  %6146 = vst [vmem:[#allocation40_spill] sm:$0xff] %v3628_v25  ;;  %v708_v43 = vmul.f32 0.3275911, %v644_v23  ;;  %v613_v54 = vsub.f32 0.0, %v3613_v41  ;;  %v803_v51 = vadd.f32 1.0, %v739_v38  ;;  %v1540_v16 = vmul.f32 %v1476_v7, %v644_v23 }
 0x15b   :  { %6145 = vst [vmem:[#allocation39_spill] sm:$0xff] %v3623_v53  ;;  %v3630_v20 = vpop.eup %2964  ;;  %6148 = vst [vmem:[#allocation42_spill] sm:$0xff] %v3633_v48  ;;  %v1508_v48 = vsub.f32 0.0, %v676_v12  ;;  %v1670_v27 = vmul.f32 1.442695, %v1571_v2  ;;  %v645_v31 = vmax.f32 %v3589_v30, %v581_v17  ;;  %v582_v9 = vsub.f32 0.0, %v3628_v25 }
 0x15c   :  { %v3541_v46 = vpop.f32.mrb[16].mxu0  ;;  %v3543_v19 = vpop.f32.mrb[16].mxu1  ;;  %6147 = vst [vmem:[#allocation41_spill] sm:$0xff] %v3630_v20  ;;  %2982 = vrcp.f32 %v771_v4  ;;  %v3661_v7 = vmul.f32 0.70710677, %v3637_v60  ;;  %v772_v2 = vadd.f32 1.0, %v708_v43  ;;  %v677_v17 = vmax.f32 %v3613_v41, %v613_v54 }
 0x15d   :  { %v3550_v22 = vpop.f32.mrb[17].mxu0  ;;  %v3552_v61 = vpop.f32.mrb[17].mxu1  ;;  %v3664_v23 = vmul.f32 0.70710677, %v3641_v15  ;;  %2984 = vpow2.f32 %v1606_v47  ;;  %v3673_v30 = vadd.f32 %v3452_v29, %v3426_v14  ;;  %v1477_v54 = vsub.f32 0.0, %v645_v31 }
 0x15e   :  { %v3554_v3 = vpop.f32.mrb[18].mxu0  ;;  %v3556_v10 = vpop.f32.mrb[18].mxu1  ;;  %6154 = vst [vmem:[#allocation48_spill] sm:$0xff] %v3661_v7  ;;  %2986 = vrcp.f32 %v803_v51  ;;  %v1509_v41 = vsub.f32 0.0, %v677_v17  ;;  %v646_v29 = vmax.f32 %v3628_v25, %v582_v9 }
 0x15f   :  { %v3559_v32 = vpop.f32.mrb[19].mxu0  ;;  %v3561_v18 = vpop.f32.mrb[19].mxu1  ;;  %6155 = vst [vmem:[#allocation49_spill] sm:$0xff] %v3664_v23  ;;  %2988 = vpow2.f32 %v1670_v27  ;;  %v583_v51 = vsub.f32 0.0, %v3664_v23  ;;  %v3702_v27 = vadd.f32 %v3462_v34, %v3423_v11 }
 0x160   :  { %v3643_v1 = vpop.eup %2966  ;;  %2990 = vrcp.f32 %v772_v2  ;;  %v1573_v2 = vmul.f32 %v1509_v41, %v677_v17  ;;  %v3721_v41 = vadd.f32 %v3466_v36, %v3426_v14 }
 0x161   :  { %6149 = vst [vmem:[#allocation43_spill] sm:$0xff] %v3643_v1  ;;  %v3646_v20 = vpop.eup %2968 }
 0x162   :  { %6150 = vst [vmem:[#allocation44_spill] sm:$0xff] %v3646_v20  ;;  %v1608_v20 = vmul.f32 1.442695, %v1540_v16  ;;  %v3698_v16 = vmul.f32 0.5, %v3593_v49  ;;  %v647_v49 = vmax.f32 %v3664_v23, %v583_v51  ;;  %v1674_v51 = vmul.f32 1.442695, %v1573_v2 }
 0x164   :  { %v3583_v0 = vpop.f32.mrb[20].mxu0  ;;  %v3585_v33 = vpop.f32.mrb[20].mxu1  ;;  %2992 = vpow2.f32 %v1608_v20  ;;  %6165 = vst [vmem:[#allocation59_spill] sm:$0xff] %v3698_v16  ;;  %v711_v2 = vmul.f32 0.3275911, %v647_v49 }
 0x165   :  { %v3595_v24 = vpop.f32.mrb[21].mxu0  ;;  %v3597_v21 = vpop.f32.mrb[21].mxu1 }
 0x166   :  { %v3605_v42 = vpop.f32.mrb[22].mxu0  ;;  %v3615_v50 = vpop.f32.mrb[22].mxu1 }
 0x167   :  { %6141 = vst [vmem:[#allocation35_spill] sm:$0xff] %v3615_v50  ;;  %v3617_v52 = vpop.f32.mrb[23].mxu0  ;;  %v3621_v28 = vpop.f32.mrb[23].mxu1 }
 0x168   :  { %6142 = vst [vmem:[#allocation36_spill] sm:$0xff] %v3617_v52  ;;  %6144 = vst [vmem:[#allocation38_spill] sm:$0xff] %v3621_v28  ;;  %v3652_v28 = vpop.eup %2970  ;;  %v740_v52 = vmul.f32 0.3275911, %v676_v12 }
 0x169   :  { %6151 = vst [vmem:[#allocation45_spill] sm:$0xff] %v3652_v28  ;;  %v3658_v50 = vpop.eup %2972 }
 0x16a   :  { %6153 = vst [vmem:[#allocation47_spill] sm:$0xff] %v3658_v50  ;;  %v3679_v28 = vpop.eup %2974  ;;  %v804_v43 = vadd.f32 1.0, %v740_v52 }
 0x16b   :  { %6160 = vst [vmem:[#allocation54_spill] sm:$0xff] %v3679_v28  ;;  %v710_v28 = vmul.f32 0.3275911, %v646_v29 }
 0x16c   :  { %v3648_v53 = vpop.f32.mrb[24].mxu0  ;;  %v3650_v26 = vpop.f32.mrb[24].mxu1  ;;  %2994 = vrcp.f32 %v804_v43 }
 0x16d   :  { %v3656_v1 = vpop.f32.mrb[25].mxu0  ;;  %v3666_v38 = vpop.f32.mrb[25].mxu1 }
 0x16e   :  { %6152 = vst [vmem:[#allocation46_spill] sm:$0xff] %v3656_v1  ;;  %6156 = vst [vmem:[#allocation50_spill] sm:$0xff] %v3666_v38  ;;  %v3668_v57 = vpop.f32.mrb[26].mxu0  ;;  %v3675_v50 = vpop.f32.mrb[26].mxu1  ;;  %v1572_v1 = vmul.f32 %v1508_v48, %v676_v12  ;;  %v3682_v38 = vmul.f32 0.5, %v3570_v8  ;;  %v3692_v12 = vmul.f32 0.5, %v3580_v56  ;;  %v1541_v56 = vmul.f32 %v1477_v54, %v645_v31 }
 0x16f   :  { %6157 = vst [vmem:[#allocation51_spill] sm:$0xff] %v3668_v57  ;;  %6158 = vst [vmem:[#allocation52_spill] sm:$0xff] %v3675_v50  ;;  %v3677_v4 = vpop.f32.mrb[27].mxu0  ;;  %v3684_v47 = vpop.f32.mrb[27].mxu1  ;;  %v709_v50 = vmul.f32 0.3275911, %v645_v31 }
 0x170   :  { %6159 = vst [vmem:[#allocation53_spill] sm:$0xff] %v3677_v4  ;;  %6161 = vst [vmem:[#allocation55_spill] sm:$0xff] %v3682_v38  ;;  %v3687_v57 = vpop.eup %2976  ;;  %v614_v4 = vsub.f32 0.0, %v3661_v7  ;;  %v741_v8 = vmul.f32 0.3275911, %v677_v17 }
 0x171   :  { %6162 = vst [vmem:[#allocation56_spill] sm:$0xff] %v3687_v57  ;;  %6163 = vst [vmem:[#allocation57_spill] sm:$0xff] %v3692_v12  ;;  %v3695_v48 = vmul.f32 0.70710677, %v3673_v30  ;;  %v1672_v52 = vmul.f32 1.442695, %v1572_v1  ;;  %v3706_v38 = vpop.eup %2978  ;;  %v3714_v1 = vadd.f32 %v3464_v35, %v3423_v11 }
 0x172   :  { %v1478_v12 = vsub.f32 0.0, %v646_v29  ;;  %v3708_v25 = vpop.eup %2980  ;;  %v773_v57 = vadd.f32 1.0, %v709_v50  ;;  %v678_v20 = vmax.f32 %v3661_v7, %v614_v4  ;;  %v805_v16 = vadd.f32 1.0, %v741_v8 }
 0x173   :  { %6164 = vst [vmem:[#allocation58_spill] sm:$0xff] %v3695_v48  ;;  %6166 = vst [vmem:[#allocation60_spill] sm:$0xff] %v3708_v25  ;;  %v615_v43 = vsub.f32 0.0, %v3695_v48  ;;  %v3723_v31 = vpop.eup %2982  ;;  %2996 = vpow2.f32 %v1672_v52  ;;  %v3726_v50 = vmul.f32 0.5, %v3637_v60  ;;  %v3729_v35 = vmul.f32 0.70710677, %v3702_v27 }
 0x174   :  { %v3704_v9 = vpop.f32.mrb[28].mxu0  ;;  %v3716_v34 = vpop.f32.mrb[28].mxu1  ;;  %6167 = vst [vmem:[#allocation61_spill] sm:$0xff] %v3723_v31  ;;  %v1510_v17 = vsub.f32 0.0, %v678_v20  ;;  %v1610_v54 = vmul.f32 1.442695, %v1541_v56  ;;  %v1542_v8 = vmul.f32 %v1478_v12, %v646_v29  ;;  %2998 = vrcp.f32 %v773_v57 }
 0x175   :  { %6168 = vst [vmem:[#allocation62_spill] sm:$0xff] %v3726_v50  ;;  %6169 = vst [vmem:[#allocation63_spill] sm:$0xff] %v3729_v35  ;;  %v3731_v4 = vpop.eup %2984  ;;  %v3734_v7 = vmul.f32 0.5, %v3641_v15  ;;  %v742_v23 = vmul.f32 0.3275911, %v678_v20  ;;  %v1479_v52 = vsub.f32 0.0, %v647_v49  ;;  %3000 = vrcp.f32 %v805_v16 }
 0x176   :  { %6170 = vst [vmem:[#allocation64_spill] sm:$0xff] %v3731_v4  ;;  %v3736_v36 = vpop.eup %2986  ;;  %v3739_v60 = vmul.f32 0.70710677, %v3714_v1  ;;  %v774_v50 = vadd.f32 1.0, %v710_v28  ;;  %v679_v31 = vmax.f32 %v3695_v48, %v615_v43  ;;  %v3743_v4 = vmul.f32 0.70710677, %v3721_v41 }
 0x177   :  { %6171 = vst [vmem:[#allocation65_spill] sm:$0xff] %v3734_v7  ;;  %v3745_v56 = vpop.eup %2988  ;;  %v1574_v29 = vmul.f32 %v1510_v17, %v678_v20  ;;  %v584_v15 = vsub.f32 0.0, %v3729_v35  ;;  %v3750_v57 = vadd.f32 %v3468_v37, %v3426_v14  ;;  %v3754_v12 = vadd.f32 %v3471_v39, %v3423_v11 }
 0x178   :  { %6172 = vst [vmem:[#allocation66_spill] sm:$0xff] %v3739_v60  ;;  %6173 = vst [vmem:[#allocation67_spill] sm:$0xff] %v3743_v4  ;;  %v3756_v16 = vpop.eup %2990  ;;  %3002 = vpow2.f32 %v1610_v54  ;;  %v1612_v28 = vmul.f32 1.442695, %v1542_v8  ;;  %v1511_v43 = vsub.f32 0.0, %v679_v31  ;;  %v806_v20 = vadd.f32 1.0, %v742_v23 }
 0x179   :  { %6174 = vst [vmem:[#allocation68_spill] sm:$0xff] %v3745_v56  ;;  %6175 = vst [vmem:[#allocation69_spill] sm:$0xff] %v3756_v16  ;;  %v3758_v48 = vpop.eup %2992  ;;  %3004 = vpow2.f32 %v1674_v51  ;;  %v1543_v17 = vmul.f32 %v1479_v52, %v647_v49  ;;  %v616_v7 = vsub.f32 0.0, %v3739_v60  ;;  %v3764_v37 = vmul.f32 0.5, %v3673_v30 }
 0x17a   :  { %6176 = vst [vmem:[#allocation70_spill] sm:$0xff] %v3758_v48  ;;  %v3761_v56 = vpop.eup %2994  ;;  %3006 = vrcp.f32 %v774_v50  ;;  %v743_v39 = vmul.f32 0.3275911, %v679_v31  ;;  %v585_v16 = vsub.f32 0.0, %v3743_v4  ;;  %v1676_v54 = vmul.f32 1.442695, %v1574_v29 }
 0x17b   :  { %6177 = vst [vmem:[#allocation71_spill] sm:$0xff] %v3761_v56  ;;  %6178 = vst [vmem:[#allocation72_spill] sm:$0xff] %v3764_v37  ;;  %v648_v8 = vmax.f32 %v3729_v35, %v584_v15  ;;  %v3769_v25 = vmul.f32 0.70710677, %v3750_v57  ;;  %v3772_v23 = vmul.f32 0.70710677, %v3754_v12  ;;  %3008 = vpow2.f32 %v1612_v28 }
 0x17c   :  { %v775_v49 = vadd.f32 1.0, %v711_v2  ;;  %v1575_v51 = vmul.f32 %v1511_v43, %v679_v31  ;;  %v3776_v50 = vadd.f32 %v3473_v40, %v3423_v11  ;;  %3010 = vrcp.f32 %v806_v20 }
 0x17d   :  { %6179 = vst [vmem:[#allocation73_spill] sm:$0xff] %v3769_v25  ;;  %6180 = vst [vmem:[#allocation74_spill] sm:$0xff] %v3772_v23  ;;  %v3778_v30 = vpop.eup %2996  ;;  %v1614_v52 = vmul.f32 1.442695, %v1543_v17  ;;  %v680_v29 = vmax.f32 %v3739_v60, %v616_v7  ;;  %v3783_v15 = vadd.f32 %v3478_v44, %v3426_v14  ;;  %v807_v37 = vadd.f32 1.0, %v743_v39 }
 0x17e   :  { %6181 = vst [vmem:[#allocation75_spill] sm:$0xff] %v3778_v30  ;;  %v3786_v35 = vmul.f32 0.5, %v3702_v27  ;;  %v1480_v28 = vsub.f32 0.0, %v648_v8  ;;  %v649_v31 = vmax.f32 %v3743_v4, %v585_v16  ;;  %v3789_v2 = vpop.eup %2998  ;;  %3012 = vpow2.f32 %v1676_v54 }
 0x17f   :  { %v712_v40 = vmul.f32 0.3275911, %v648_v8  ;;  %v617_v43 = vsub.f32 0.0, %v3769_v25  ;;  %v586_v20 = vsub.f32 0.0, %v3772_v23  ;;  %v3793_v7 = vpop.eup %3000  ;;  %3014 = vrcp.f32 %v775_v49 }
 0x180   :  { %6182 = vst [vmem:[#allocation76_spill] sm:$0xff] %v3786_v35  ;;  %6183 = vst [vmem:[#allocation77_spill] sm:$0xff] %v3793_v7  ;;  %v1678_v44 = vmul.f32 1.442695, %v1575_v51  ;;  %v1512_v17 = vsub.f32 0.0, %v680_v29  ;;  %3016 = vpow2.f32 %v1614_v52  ;;  %v3799_v27 = vmul.f32 0.5, %v3714_v1 }
 0x181   :  { %v3796_v39 = vmul.f32 0.70710677, %v3776_v50  ;;  %v744_v16 = vmul.f32 0.3275911, %v680_v29  ;;  %v3802_v54 = vmul.f32 0.70710677, %v3783_v15  ;;  %3018 = vrcp.f32 %v807_v37 }
 0x182   :  { %6185 = vst [vmem:[#allocation79_spill] sm:$0xff] %v3799_v27  ;;  %v3804_v60 = vpop.eup %3002  ;;  %v1544_v35 = vmul.f32 %v1480_v28, %v648_v8  ;;  %v1481_v4 = vsub.f32 0.0, %v649_v31  ;;  %v3808_v49 = vadd.f32 %v3480_v45, %v3426_v14  ;;  %v776_v30 = vadd.f32 1.0, %v712_v40 }
 0x183   :  { %6184 = vst [vmem:[#allocation78_spill] sm:$0xff] %v3796_v39  ;;  %6186 = vst [vmem:[#allocation80_spill] sm:$0xff] %v3802_v54  ;;  %v3810_v51 = vpop.eup %3004  ;;  %v3813_v52 = vmul.f32 0.5, %v3721_v41  ;;  %v681_v1 = vmax.f32 %v3769_v25, %v617_v43  ;;  %v650_v27 = vmax.f32 %v3772_v23, %v586_v20  ;;  %3020 = vpow2.f32 %v1678_v44 }
 0x184   :  { %6187 = vst [vmem:[#allocation81_spill] sm:$0xff] %v3804_v60  ;;  %6188 = vst [vmem:[#allocation82_spill] sm:$0xff] %v3810_v51  ;;  %v3817_v7 = vpop.eup %3006  ;;  %v1576_v37 = vmul.f32 %v1512_v17, %v680_v29  ;;  %v618_v8 = vsub.f32 0.0, %v3796_v39  ;;  %v3822_v45 = vadd.f32 %v3497_v55, %v3423_v11  ;;  %v808_v28 = vadd.f32 1.0, %v744_v16 }
 0x185   :  { %6189 = vst [vmem:[#allocation83_spill] sm:$0xff] %v3813_v52  ;;  %v713_v51 = vmul.f32 0.3275911, %v649_v31  ;;  %v3825_v40 = vmul.f32 0.5, %v3750_v57  ;;  %v587_v41 = vsub.f32 0.0, %v3802_v54  ;;  %v3828_v43 = vpop.eup %3008  ;;  %v1545_v25 = vmul.f32 %v1481_v4, %v649_v31 }
 0x186   :  { %6191 = vst [vmem:[#allocation85_spill] sm:$0xff] %v3828_v43  ;;  %v1616_v20 = vmul.f32 1.442695, %v1544_v35  ;;  %v1513_v52 = vsub.f32 0.0, %v681_v1  ;;  %v3831_v29 = vmul.f32 0.70710677, %v3808_v49  ;;  %v3833_v44 = vpop.eup %3010  ;;  %3022 = vrcp.f32 %v776_v30 }
 0x187   :  { %6190 = vst [vmem:[#allocation84_spill] sm:$0xff] %v3825_v40  ;;  %6193 = vst [vmem:[#allocation87_spill] sm:$0xff] %v3833_v44  ;;  %v745_v55 = vmul.f32 0.3275911, %v681_v1  ;;  %v3836_v17 = vmul.f32 0.5, %v3754_v12  ;;  %v1482_v16 = vsub.f32 0.0, %v650_v27  ;;  %v682_v23 = vmax.f32 %v3796_v39, %v618_v8 }
 0x188   :  { %6192 = vst [vmem:[#allocation86_spill] sm:$0xff] %v3831_v29  ;;  %v1680_v57 = vmul.f32 1.442695, %v1576_v37  ;;  %v714_v40 = vmul.f32 0.3275911, %v650_v27  ;;  %v3842_v35 = vpop.eup %3012  ;;  %3024 = vrcp.f32 %v808_v28  ;;  %v777_v4 = vadd.f32 1.0, %v713_v51 }
 0x189   :  { %6194 = vst [vmem:[#allocation88_spill] sm:$0xff] %v3836_v17  ;;  %v3840_v43 = vmul.f32 0.70710677, %v3822_v45  ;;  %6196 = vst [vmem:[#allocation90_spill] sm:$0xff] %v3842_v35  ;;  %v651_v31 = vmax.f32 %v3802_v54, %v587_v41  ;;  %v3847_v30 = vadd.f32 %v3502_v58, %v3423_v11  ;;  %v3849_v12 = vpop.eup %3014  ;;  %3026 = vpow2.f32 %v1616_v20 }
 0x18a   :  { %v1618_v37 = vmul.f32 1.442695, %v1545_v25  ;;  %v1577_v17 = vmul.f32 %v1513_v52, %v681_v1  ;;  %v619_v8 = vsub.f32 0.0, %v3831_v29  ;;  %v3852_v39 = vpop.eup %3016  ;;  %v809_v44 = vadd.f32 1.0, %v745_v55 }
 0x18b   :  { %6195 = vst [vmem:[#allocation89_spill] sm:$0xff] %v3840_v43  ;;  %6197 = vst [vmem:[#allocation91_spill] sm:$0xff] %v3852_v39  ;;  %v1546_v56 = vmul.f32 %v1482_v16, %v650_v27  ;;  %v1514_v35 = vsub.f32 0.0, %v682_v23  ;;  %v3856_v51 = vadd.f32 %v3504_v59, %v3426_v14  ;;  %v3858_v28 = vpop.eup %3018  ;;  %3028 = vpow2.f32 %v1680_v57  ;;  %v3875_v16 = vpop.f32.mrb[29].mxu0 }
 0x18c   :  { %6198 = vst [vmem:[#allocation92_spill] sm:$0xff] %v3858_v28  ;;  %v778_v58 = vadd.f32 1.0, %v714_v40  ;;  %v746_v41 = vmul.f32 0.3275911, %v682_v23  ;;  %v588_v20 = vsub.f32 0.0, %v3840_v43  ;;  %3030 = vrcp.f32 %v777_v4  ;;  %v3877_v57 = vpop.f32.mrb[29].mxu1 }
 0x18d   :  { %v1483_v25 = vsub.f32 0.0, %v651_v31  ;;  %v3862_v52 = vmul.f32 0.70710677, %v3847_v30  ;;  %v3866_v27 = vadd.f32 %v3506_v62, %v3426_v14  ;;  %v3868_v1 = vpop.eup %3020  ;;  %3032 = vpow2.f32 %v1618_v37  ;;  %v3882_v28 = vpop.f32.mrb[30].mxu1 }
 0x18e   :  { %6200 = vst [vmem:[#allocation94_spill] sm:$0xff] %v3868_v1  ;;  %v1682_v59 = vmul.f32 1.442695, %v1577_v17  ;;  %v683_v55 = vmax.f32 %v3831_v29, %v619_v8  ;;  %v3873_v40 = vadd.f32 %v3508_v63, %v3423_v11  ;;  %3034 = vrcp.f32 %v809_v44 }
 0x18f   :  { %6199 = vst [vmem:[#allocation93_spill] sm:$0xff] %v3862_v52  ;;  %v1620_v4 = vmul.f32 1.442695, %v1546_v56  ;;  %v1578_v54 = vmul.f32 %v1514_v35, %v682_v23  ;;  %v3880_v62 = vmul.f32 0.70710677, %v3856_v51  ;;  %3036 = vrcp.f32 %v778_v58 }
 0x190   :  { %v810_v17 = vadd.f32 1.0, %v746_v41  ;;  %v715_v37 = vmul.f32 0.3275911, %v651_v31  ;;  %v652_v8 = vmax.f32 %v3840_v43, %v588_v20  ;;  %v3885_v29 = vpop.eup %3022  ;;  %v1547_v63 = vmul.f32 %v1483_v25, %v651_v31 }
 0x191   :  { %6201 = vst [vmem:[#allocation95_spill] sm:$0xff] %v3880_v62  ;;  %6202 = vst [vmem:[#allocation96_spill] sm:$0xff] %v3885_v29  ;;  %v1515_v1 = vsub.f32 0.0, %v683_v55  ;;  %v620_v39 = vsub.f32 0.0, %v3862_v52  ;;  %v3889_v44 = vmul.f32 0.70710677, %v3866_v27  ;;  %3038 = vpow2.f32 %v1682_v59 }
 0x192   :  { %v3892_v56 = vmul.f32 0.5, %v3776_v50  ;;  %v747_v23 = vmul.f32 0.3275911, %v683_v55  ;;  %v3895_v35 = vmul.f32 0.70710677, %v3873_v40  ;;  %v3897_v58 = vpop.eup %3024  ;;  %3040 = vpow2.f32 %v1620_v4 }
 0x193   :  { %6203 = vst [vmem:[#allocation97_spill] sm:$0xff] %v3889_v44  ;;  %6206 = vst [vmem:[#allocation100_spill] sm:$0xff] %v3897_v58  ;;  %v1684_v41 = vmul.f32 1.442695, %v1578_v54  ;;  %v3900_v31 = vmul.f32 0.5, %v3783_v15  ;;  %v589_v20 = vsub.f32 0.0, %v3880_v62  ;;  %v3903_v25 = vpop.eup %3026  ;;  %3042 = vrcp.f32 %v810_v17 }
 0x194   :  { %6204 = vst [vmem:[#allocation98_spill] sm:$0xff] %v3892_v56  ;;  %6205 = vst [vmem:[#allocation99_spill] sm:$0xff] %v3895_v35  ;;  %v779_v59 = vadd.f32 1.0, %v715_v37  ;;  %v716_v43 = vmul.f32 0.3275911, %v652_v8  ;;  %v1484_v50 = vsub.f32 0.0, %v652_v8  ;;  %v1579_v29 = vmul.f32 %v1515_v1, %v683_v55 }
 0x195   :  { %6207 = vst [vmem:[#allocation101_spill] sm:$0xff] %v3900_v31  ;;  %v1622_v56 = vmul.f32 1.442695, %v1547_v63  ;;  %v684_v60 = vmax.f32 %v3862_v52, %v620_v39  ;;  %v621_v48 = vsub.f32 0.0, %v3889_v44  ;;  %v3907_v58 = vpop.eup %3028  ;;  %v3910_v54 = vmul.f32 0.5, %v3808_v49 }
 0x196   :  { %6208 = vst [vmem:[#allocation102_spill] sm:$0xff] %v3907_v58  ;;  %v811_v15 = vadd.f32 1.0, %v747_v23  ;;  %v590_v4 = vsub.f32 0.0, %v3895_v35  ;;  %v3915_v17 = vadd.f32 %v3515_v6, %v3426_v14  ;;  %v3917_v37 = vpop.eup %3030  ;;  %3044 = vpow2.f32 %v1684_v41 }
 0x197   :  { %6209 = vst [vmem:[#allocation103_spill] sm:$0xff] %v3910_v54  ;;  %v1516_v1 = vsub.f32 0.0, %v684_v60  ;;  %v653_v39 = vmax.f32 %v3880_v62, %v589_v20  ;;  %v3922_v55 = vadd.f32 %v3513_v5, %v3423_v11  ;;  %v3924_v63 = vpop.eup %3032  ;;  %3046 = vrcp.f32 %v779_v59 }
 0x198   :  { %v3927_v49 = vmul.f32 0.5, %v3822_v45  ;;  %v780_v23 = vadd.f32 1.0, %v716_v43  ;;  %v1548_v52 = vmul.f32 %v1484_v50, %v652_v8  ;;  %v3929_v6 = vpop.eup %3034  ;;  %3048 = vpow2.f32 %v1622_v56 }
 0x199   :  { %v1686_v54 = vmul.f32 1.442695, %v1579_v29  ;;  %v3932_v41 = vmul.f32 0.5, %v3847_v30  ;;  %v685_v20 = vmax.f32 %v3889_v44, %v621_v48  ;;  %v3935_v62 = vpop.eup %3036  ;;  %3050 = vrcp.f32 %v811_v15 }
 0x19a   :  { %6210 = vst [vmem:[#allocation104_spill] sm:$0xff] %v3927_v49  ;;  %v748_v5 = vmul.f32 0.3275911, %v684_v60  ;;  %v654_v59 = vmax.f32 %v3895_v35, %v590_v4  ;;  %v3939_v45 = vmul.f32 0.70710677, %v3915_v17  ;;  %v1580_v43 = vmul.f32 %v1516_v1, %v684_v60 }
 0x19b   :  { %6211 = vst [vmem:[#allocation105_spill] sm:$0xff] %v3932_v41  ;;  %v1485_v8 = vsub.f32 0.0, %v653_v39  ;;  %v3942_v50 = vmul.f32 0.70710677, %v3922_v55  ;;  %v3946_v29 = vadd.f32 %v3524_v13, %v3426_v14  ;;  %v3948_v30 = vpop.eup %3038  ;;  %3052 = vrcp.f32 %v780_v23 }
 0x19c   :  { %6212 = vst [vmem:[#allocation106_spill] sm:$0xff] %v3939_v45  ;;  %6214 = vst [vmem:[#allocation108_spill] sm:$0xff] %v3948_v30  ;;  %v1624_v48 = vmul.f32 1.442695, %v1548_v52  ;;  %v717_v56 = vmul.f32 0.3275911, %v653_v39  ;;  %v3950_v41 = vpop.eup %3040  ;;  %3054 = vpow2.f32 %v1686_v54  ;;  %v3963_v52 = vadd.f32 %v3541_v46, %v3423_v11 }
 0x19d   :  { %6213 = vst [vmem:[#allocation107_spill] sm:$0xff] %v3942_v50  ;;  %v1517_v15 = vsub.f32 0.0, %v685_v20  ;;  %v3953_v4 = vmul.f32 0.5, %v3856_v51  ;;  %v3956_v60 = vmul.f32 0.5, %v3866_v27  ;;  %v749_v1 = vmul.f32 0.3275911, %v685_v20  ;;  %v3958_v44 = vpop.eup %3042 }
 0x19e   :  { %6217 = vst [vmem:[#allocation111_spill] sm:$0xff] %v3958_v44  ;;  %v812_v13 = vadd.f32 1.0, %v748_v5  ;;  %v1486_v49 = vsub.f32 0.0, %v654_v59  ;;  %v591_v35 = vsub.f32 0.0, %v3939_v45  ;;  %v1688_v23 = vmul.f32 1.442695, %v1580_v43 }
 0x19f   :  { %6215 = vst [vmem:[#allocation109_spill] sm:$0xff] %v3953_v4  ;;  %6216 = vst [vmem:[#allocation110_spill] sm:$0xff] %v3956_v60  ;;  %v1549_v30 = vmul.f32 %v1485_v8, %v653_v39  ;;  %v622_v54 = vsub.f32 0.0, %v3942_v50  ;;  %v3967_v51 = vmul.f32 0.70710677, %v3946_v29  ;;  %3056 = vpow2.f32 %v1624_v48  ;;  %v3982_v8 = vpop.f32.mrb[30].mxu0 }
 0x1a0   :  { %v781_v27 = vadd.f32 1.0, %v717_v56  ;;  %v1581_v60 = vmul.f32 %v1517_v15, %v685_v20  ;;  %v3971_v5 = vadd.f32 %v3543_v19, %v3423_v11  ;;  %v3973_v4 = vpop.eup %3044  ;;  %v813_v58 = vadd.f32 1.0, %v749_v1  ;;  %v3984_v48 = vpop.f32.mrb[31].mxu1 }
 0x1a1   :  { %6218 = vst [vmem:[#allocation112_spill] sm:$0xff] %v3967_v51  ;;  %6219 = vst [vmem:[#allocation113_spill] sm:$0xff] %v3973_v4  ;;  %v3976_v46 = vmul.f32 0.5, %v3873_v40  ;;  %v718_v43 = vmul.f32 0.3275911, %v654_v59  ;;  %v3980_v39 = vadd.f32 %v3550_v22, %v3426_v14  ;;  %v3986_v20 = vpop.eup %3046  ;;  %3058 = vrcp.f32 %v812_v13  ;;  %v3992_v40 = vpop.f32.mrb[31].mxu0 }
 0x1a2   :  { %v1550_v19 = vmul.f32 %v1486_v49, %v654_v59  ;;  %v655_v56 = vmax.f32 %v3939_v45, %v591_v35  ;;  %v3990_v15 = vmul.f32 0.70710677, %v3963_v52  ;;  %v3994_v1 = vpop.eup %3048  ;;  %3060 = vpow2.f32 %v1688_v23 }
 0x1a3   :  { %6220 = vst [vmem:[#allocation114_spill] sm:$0xff] %v3976_v46  ;;  %6222 = vst [vmem:[#allocation116_spill] sm:$0xff] %v3994_v1  ;;  %v1626_v22 = vmul.f32 1.442695, %v1549_v30  ;;  %v686_v46 = vmax.f32 %v3942_v50, %v622_v54  ;;  %v623_v4 = vsub.f32 0.0, %v3967_v51  ;;  %v3998_v31 = vpop.eup %3050  ;;  %3062 = vrcp.f32 %v781_v27 }
 0x1a4   :  { %6221 = vst [vmem:[#allocation115_spill] sm:$0xff] %v3990_v15  ;;  %6223 = vst [vmem:[#allocation117_spill] sm:$0xff] %v3998_v31  ;;  %v1690_v13 = vmul.f32 1.442695, %v1581_v60  ;;  %v4001_v49 = vmul.f32 0.5, %v3922_v55  ;;  %3064 = vrcp.f32 %v813_v58  ;;  %v782_v59 = vadd.f32 1.0, %v718_v43 }
 0x1a5   :  { %v4004_v35 = vmul.f32 0.70710677, %v3971_v5  ;;  %v1518_v45 = vsub.f32 0.0, %v686_v46  ;;  %v4007_v23 = vmul.f32 0.70710677, %v3980_v39  ;;  %v4009_v30 = vpop.eup %3052  ;;  %v1487_v50 = vsub.f32 0.0, %v655_v56 }
 0x1a6   :  { %6224 = vst [vmem:[#allocation118_spill] sm:$0xff] %v4001_v49  ;;  %6227 = vst [vmem:[#allocation121_spill] sm:$0xff] %v4009_v30  ;;  %v1628_v54 = vmul.f32 1.442695, %v1550_v19  ;;  %v592_v31 = vsub.f32 0.0, %v3990_v15  ;;  %v4014_v60 = vadd.f32 %v3552_v61, %v3426_v14  ;;  %v4016_v55 = vpop.eup %3054  ;;  %3066 = vpow2.f32 %v1626_v22 }
 0x1a7   :  { %6225 = vst [vmem:[#allocation119_spill] sm:$0xff] %v4004_v35  ;;  %6226 = vst [vmem:[#allocation120_spill] sm:$0xff] %v4007_v23  ;;  %v750_v27 = vmul.f32 0.3275911, %v686_v46  ;;  %v687_v58 = vmax.f32 %v3967_v51, %v623_v4  ;;  %v4021_v43 = vadd.f32 %v3554_v3, %v3423_v11  ;;  %3068 = vpow2.f32 %v1690_v13 }
 0x1a8   :  { %6228 = vst [vmem:[#allocation122_spill] sm:$0xff] %v4016_v55  ;;  %v4024_v19 = vmul.f32 0.5, %v3915_v17  ;;  %v719_v49 = vmul.f32 0.3275911, %v655_v56  ;;  %v624_v30 = vsub.f32 0.0, %v4004_v35  ;;  %3070 = vrcp.f32 %v782_v59 }
 0x1a9   :  { %v1582_v61 = vmul.f32 %v1518_v45, %v686_v46  ;;  %v1519_v44 = vsub.f32 0.0, %v687_v58  ;;  %v593_v55 = vsub.f32 0.0, %v4007_v23  ;;  %v4028_v22 = vpop.eup %3056  ;;  %3072 = vpow2.f32 %v1628_v54 }
 0x1aa   :  { %6229 = vst [vmem:[#allocation123_spill] sm:$0xff] %v4024_v19  ;;  %6230 = vst [vmem:[#allocation124_spill] sm:$0xff] %v4028_v22  ;;  %v1551_v4 = vmul.f32 %v1487_v50, %v655_v56  ;;  %v656_v51 = vmax.f32 %v3990_v15, %v592_v31  ;;  %v4032_v3 = vmul.f32 0.70710677, %v4014_v60  ;;  %v814_v13 = vadd.f32 1.0, %v750_v27 }
 0x1ab   :  { %v4035_v17 = vmul.f32 0.5, %v3946_v29  ;;  %v751_v19 = vmul.f32 0.3275911, %v687_v58  ;;  %v4038_v59 = vmul.f32 0.70710677, %v4021_v43  ;;  %v4040_v45 = vpop.eup %3058  ;;  %v783_v46 = vadd.f32 1.0, %v719_v49 }
 0x1ac   :  { %6231 = vst [vmem:[#allocation125_spill] sm:$0xff] %v4032_v3  ;;  %6234 = vst [vmem:[#allocation128_spill] sm:$0xff] %v4040_v45  ;;  %v1488_v1 = vsub.f32 0.0, %v656_v51  ;;  %v688_v54 = vmax.f32 %v4004_v35, %v624_v30  ;;  %v4045_v31 = vadd.f32 %v3556_v10, %v3423_v11  ;;  %v4047_v50 = vpop.eup %3060  ;;  %v1692_v56 = vmul.f32 1.442695, %v1582_v61 }
 0x1ad   :  { %6232 = vst [vmem:[#allocation126_spill] sm:$0xff] %v4035_v17  ;;  %6233 = vst [vmem:[#allocation127_spill] sm:$0xff] %v4038_v59  ;;  %v1583_v27 = vmul.f32 %v1519_v44, %v687_v58  ;;  %v4050_v29 = vmul.f32 0.5, %v3963_v52  ;;  %v657_v17 = vmax.f32 %v4007_v23, %v593_v55  ;;  %v4053_v15 = vpop.eup %3062  ;;  %v1630_v45 = vmul.f32 1.442695, %v1551_v4 }
 0x1ae   :  { %6235 = vst [vmem:[#allocation129_spill] sm:$0xff] %v4047_v50  ;;  %v720_v49 = vmul.f32 0.3275911, %v656_v51  ;;  %v1520_v22 = vsub.f32 0.0, %v688_v54  ;;  %v625_v30 = vsub.f32 0.0, %v4032_v3  ;;  %v4056_v35 = vpop.eup %3064  ;;  %3074 = vrcp.f32 %v814_v13 }
 0x1af   :  { %6236 = vst [vmem:[#allocation130_spill] sm:$0xff] %v4050_v29  ;;  %v815_v10 = vadd.f32 1.0, %v751_v19  ;;  %v594_v50 = vsub.f32 0.0, %v4038_v59  ;;  %v4061_v44 = vadd.f32 %v3559_v32, %v3426_v14  ;;  %3076 = vrcp.f32 %v783_v46 }
 0x1b0   :  { %v1552_v52 = vmul.f32 %v1488_v1, %v656_v51  ;;  %v4064_v55 = vmul.f32 0.5, %v3971_v5  ;;  %v4067_v58 = vmul.f32 0.70710677, %v4045_v31  ;;  %v4069_v61 = vpop.eup %3066  ;;  %3078 = vpow2.f32 %v1692_v56 }
 0x1b1   :  { %v1694_v4 = vmul.f32 1.442695, %v1583_v27  ;;  %v752_v13 = vmul.f32 0.3275911, %v688_v54  ;;  %v1489_v19 = vsub.f32 0.0, %v657_v17  ;;  %v4071_v29 = vpop.eup %3068  ;;  %3080 = vpow2.f32 %v1630_v45 }
 0x1b2   :  { %6237 = vst [vmem:[#allocation131_spill] sm:$0xff] %v4064_v55  ;;  %6238 = vst [vmem:[#allocation132_spill] sm:$0xff] %v4067_v58  ;;  %v784_v23 = vadd.f32 1.0, %v720_v49  ;;  %v1584_v32 = vmul.f32 %v1520_v22, %v688_v54  ;;  %v689_v46 = vmax.f32 %v4032_v3, %v625_v30  ;;  %v4074_v51 = vpop.eup %3070  ;;  %3082 = vrcp.f32 %v815_v10 }
 0x1b3   :  { %6239 = vst [vmem:[#allocation133_spill] sm:$0xff] %v4071_v29  ;;  %v658_v5 = vmax.f32 %v4038_v59, %v594_v50  ;;  %v4078_v1 = vmul.f32 0.70710677, %v4061_v44  ;;  %v4082_v56 = vadd.f32 %v3561_v18, %v3426_v14  ;;  %v4084_v27 = vpop.eup %3072  ;;  %v1632_v55 = vmul.f32 1.442695, %v1552_v52 }
 0x1b4   :  { %v721_v45 = vmul.f32 0.3275911, %v657_v17  ;;  %v1521_v49 = vsub.f32 0.0, %v689_v46  ;;  %v626_v22 = vsub.f32 0.0, %v4067_v58  ;;  %3084 = vpow2.f32 %v1694_v4 }
 0x1b5   :  { %6240 = vst [vmem:[#allocation134_spill] sm:$0xff] %v4078_v1  ;;  %v816_v54 = vadd.f32 1.0, %v752_v13  ;;  %v4088_v30 = vmul.f32 0.5, %v3980_v39  ;;  %v1553_v50 = vmul.f32 %v1489_v19, %v657_v17  ;;  %3086 = vrcp.f32 %v784_v23 }
 0x1b6   :  { %v1696_v10 = vmul.f32 1.442695, %v1584_v32  ;;  %v4091_v3 = vmul.f32 0.5, %v4014_v60  ;;  %v4095_v18 = vadd.f32 %v3583_v0, %v3423_v11  ;;  %v753_v52 = vmul.f32 0.3275911, %v689_v46 }
 0x1b7   :  { %6241 = vst [vmem:[#allocation135_spill] sm:$0xff] %v4088_v30  ;;  %v1490_v59 = vsub.f32 0.0, %v658_v5  ;;  %v595_v29 = vsub.f32 0.0, %v4078_v1  ;;  %v4099_v4 = vmul.f32 0.70710677, %v4082_v56  ;;  %3088 = vpow2.f32 %v1632_v55 }
 0x1b8   :  { %6242 = vst [vmem:[#allocation136_spill] sm:$0xff] %v4091_v3  ;;  %v785_v39 = vadd.f32 1.0, %v721_v45  ;;  %v1585_v13 = vmul.f32 %v1521_v49, %v689_v46  ;;  %v690_v23 = vmax.f32 %v4067_v58, %v626_v22  ;;  %v4102_v17 = vpop.eup %3074  ;;  %3090 = vrcp.f32 %v816_v54 }
 0x1b9   :  { %6243 = vst [vmem:[#allocation137_spill] sm:$0xff] %v4099_v4  ;;  %6244 = vst [vmem:[#allocation138_spill] sm:$0xff] %v4102_v17  ;;  %v1634_v60 = vmul.f32 1.442695, %v1553_v50  ;;  %v4106_v0 = vadd.f32 %v3585_v33, %v3423_v11  ;;  %v4110_v19 = vadd.f32 %v3595_v24, %v3426_v14  ;;  %v4112_v32 = vpop.eup %3076  ;;  %3092 = vpow2.f32 %v1696_v10 }
 0x1ba   :  { %v722_v55 = vmul.f32 0.3275911, %v658_v5  ;;  %v1522_v45 = vsub.f32 0.0, %v690_v23  ;;  %v4115_v46 = vmul.f32 0.70710677, %v4095_v18  ;;  %v4117_v49 = vpop.eup %3078  ;;  %v817_v22 = vadd.f32 1.0, %v753_v52 }
 0x1bb   :  { %6246 = vst [vmem:[#allocation140_spill] sm:$0xff] %v4117_v49  ;;  %v1554_v54 = vmul.f32 %v1490_v59, %v658_v5  ;;  %v659_v50 = vmax.f32 %v4078_v1, %v595_v29  ;;  %v627_v33 = vsub.f32 0.0, %v4099_v4  ;;  %v4121_v3 = vpop.eup %3080  ;;  %3094 = vrcp.f32 %v785_v39 }
 0x1bc   :  { %6245 = vst [vmem:[#allocation139_spill] sm:$0xff] %v4115_v46  ;;  %v1698_v24 = vmul.f32 1.442695, %v1585_v13  ;;  %v4124_v58 = vmul.f32 0.5, %v4021_v43  ;;  %v4127_v10 = vmul.f32 0.5, %v4045_v31  ;;  %v4129_v30 = vpop.eup %3082  ;;  %3096 = vpow2.f32 %v1634_v60 }
 0x1bd   :  { %6249 = vst [vmem:[#allocation143_spill] sm:$0xff] %v4129_v30  ;;  %v754_v49 = vmul.f32 0.3275911, %v690_v23  ;;  %v4132_v59 = vmul.f32 0.70710677, %v4106_v0  ;;  %v786_v5 = vadd.f32 1.0, %v722_v55  ;;  %v1586_v52 = vmul.f32 %v1522_v45, %v690_v23 }
 0x1be   :  { %6247 = vst [vmem:[#allocation141_spill] sm:$0xff] %v4124_v58  ;;  %6248 = vst [vmem:[#allocation142_spill] sm:$0xff] %v4127_v10  ;;  %v4135_v29 = vmul.f32 0.70710677, %v4110_v19  ;;  %v596_v39 = vsub.f32 0.0, %v4115_v46  ;;  %v4140_v43 = vadd.f32 %v3597_v21, %v3426_v14  ;;  %v4142_v31 = vpop.eup %3084  ;;  %3098 = vrcp.f32 %v817_v22 }
 0x1bf   :  { %6250 = vst [vmem:[#allocation144_spill] sm:$0xff] %v4132_v59  ;;  %6252 = vst [vmem:[#allocation146_spill] sm:$0xff] %v4142_v31  ;;  %v1636_v13 = vmul.f32 1.442695, %v1554_v54  ;;  %v1491_v60 = vsub.f32 0.0, %v659_v50  ;;  %v691_v10 = vmax.f32 %v4099_v4, %v627_v33  ;;  %v4145_v58 = vpop.eup %3086  ;;  %3100 = vpow2.f32 %v1698_v24 }
 0x1c0   :  { %6251 = vst [vmem:[#allocation145_spill] sm:$0xff] %v4135_v29  ;;  %6253 = vst [vmem:[#allocation147_spill] sm:$0xff] %v4145_v58  ;;  %v4148_v1 = vmul.f32 0.5, %v4061_v44  ;;  %v723_v23 = vmul.f32 0.3275911, %v659_v50  ;;  %v4152_v55 = vadd.f32 %v3605_v42, %v3423_v11  ;;  %v818_v21 = vadd.f32 1.0, %v754_v49 }
 0x1c1   :  { %v1523_v45 = vsub.f32 0.0, %v691_v10  ;;  %v628_v31 = vsub.f32 0.0, %v4132_v59  ;;  %v597_v22 = vsub.f32 0.0, %v4135_v29  ;;  %v4156_v54 = vpop.eup %3088  ;;  %3102 = vrcp.f32 %v786_v5 }
 0x1c2   :  { %6254 = vst [vmem:[#allocation148_spill] sm:$0xff] %v4148_v1  ;;  %6255 = vst [vmem:[#allocation149_spill] sm:$0xff] %v4156_v54  ;;  %v1700_v33 = vmul.f32 1.442695, %v1586_v52  ;;  %v660_v24 = vmax.f32 %v4115_v46, %v596_v39  ;;  %v4160_v44 = vmul.f32 0.70710677, %v4140_v43  ;;  %v4162_v4 = vpop.eup %3090  ;;  %3104 = vpow2.f32 %v1636_v13 }
 0x1c3   :  { %6257 = vst [vmem:[#allocation151_spill] sm:$0xff] %v4162_v4  ;;  %v1555_v42 = vmul.f32 %v1491_v60, %v659_v50  ;;  %v4165_v49 = vmul.f32 0.5, %v4082_v56  ;;  %v4168_v1 = vmul.f32 0.70710677, %v4152_v55  ;;  %v4170_v58 = vpop.eup %3092  ;;  %v787_v54 = vadd.f32 1.0, %v723_v23  ;;  %v6263_v60 = vld [vmem:[#allocation35_spill] sm:$0xff] }
 0x1c4   :  { %6256 = vst [vmem:[#allocation150_spill] sm:$0xff] %v4160_v44  ;;  %6260 = vst [vmem:[#allocation154_spill] sm:$0xff] %v4170_v58  ;;  %v755_v5 = vmul.f32 0.3275911, %v691_v10  ;;  %v4173_v52 = vmul.f32 0.5, %v4095_v18  ;;  %v1492_v39 = vsub.f32 0.0, %v660_v24  ;;  %3106 = vrcp.f32 %v818_v21 }
 0x1c5   :  { %6258 = vst [vmem:[#allocation152_spill] sm:$0xff] %v4165_v49  ;;  %6259 = vst [vmem:[#allocation153_spill] sm:$0xff] %v4168_v1  ;;  %v1587_v46 = vmul.f32 %v1523_v45, %v691_v10  ;;  %v692_v4 = vmax.f32 %v4132_v59, %v628_v31  ;;  %v661_v50 = vmax.f32 %v4135_v29, %v597_v22  ;;  %v4177_v13 = vpop.eup %3094  ;;  %3108 = vpow2.f32 %v1700_v33  ;;  %v6264_v23 = vld [vmem:[#allocation36_spill] sm:$0xff] }
 0x1c6   :  { %6261 = vst [vmem:[#allocation155_spill] sm:$0xff] %v4173_v52  ;;  %6262 = vst [vmem:[#allocation156_spill] sm:$0xff] %v4177_v13  ;;  %v629_v56 = vsub.f32 0.0, %v4160_v44  ;;  %v4182_v49 = vadd.f32 %v6263_v60, %v3423_v11  ;;  %v4186_v18 = vadd.f32 %v6264_v23, %v3426_v14  ;;  %v4188_v52 = vpop.eup %3096  ;;  %v1638_v10 = vmul.f32 1.442695, %v1555_v42 }
 0x1c7   :  { %6265 = vst [vmem:[#allocation35_spill] sm:$0xff] %v4188_v52  ;;  %v724_v21 = vmul.f32 0.3275911, %v660_v24  ;;  %v1524_v31 = vsub.f32 0.0, %v692_v4  ;;  %v598_v45 = vsub.f32 0.0, %v4168_v1  ;;  %3110 = vrcp.f32 %v787_v54 }
 0x1c8   :  { %v819_v22 = vadd.f32 1.0, %v755_v5  ;;  %v1556_v33 = vmul.f32 %v1492_v39, %v660_v24  ;;  %v4192_v59 = vmul.f32 0.5, %v4106_v0  ;;  %v4194_v29 = vpop.eup %3098  ;;  %v1702_v60 = vmul.f32 1.442695, %v1587_v46  ;;  %v6272_v0 = vld [vmem:[#allocation38_spill] sm:$0xff] }
 0x1c9   :  { %6267 = vst [vmem:[#allocation157_spill] sm:$0xff] %v4194_v29  ;;  %v4197_v58 = vmul.f32 0.5, %v4110_v19  ;;  %v1493_v23 = vsub.f32 0.0, %v661_v50  ;;  %v4200_v52 = vmul.f32 0.70710677, %v4182_v49  ;;  %v4202_v42 = vpop.eup %3100  ;;  %v693_v54 = vmax.f32 %v4160_v44, %v629_v56 }
 0x1ca   :  { %6266 = vst [vmem:[#allocation36_spill] sm:$0xff] %v4192_v59  ;;  %6270 = vst [vmem:[#allocation160_spill] sm:$0xff] %v4202_v42  ;;  %v756_v13 = vmul.f32 0.3275911, %v692_v4  ;;  %v4206_v24 = vmul.f32 0.70710677, %v4186_v18  ;;  %v4210_v5 = vadd.f32 %v6272_v0, %v3426_v14  ;;  %3112 = vpow2.f32 %v1638_v10 }
 0x1cb   :  { %6268 = vst [vmem:[#allocation158_spill] sm:$0xff] %v4197_v58  ;;  %6269 = vst [vmem:[#allocation159_spill] sm:$0xff] %v4200_v52  ;;  %v788_v46 = vadd.f32 1.0, %v724_v21  ;;  %v1588_v19 = vmul.f32 %v1524_v31, %v692_v4  ;;  %v662_v39 = vmax.f32 %v4168_v1, %v598_v45  ;;  %v4213_v59 = vpop.eup %3102  ;;  %3114 = vrcp.f32 %v819_v22 }
 0x1cc   :  { %6271 = vst [vmem:[#allocation161_spill] sm:$0xff] %v4206_v24  ;;  %6273 = vst [vmem:[#allocation38_spill] sm:$0xff] %v4213_v59  ;;  %v1640_v58 = vmul.f32 1.442695, %v1556_v33  ;;  %v725_v42 = vmul.f32 0.3275911, %v661_v50  ;;  %v4217_v56 = vadd.f32 %v3648_v53, %v3423_v11  ;;  %v4219_v44 = vpop.eup %3104  ;;  %3116 = vpow2.f32 %v1702_v60 }
 0x1cd   :  { %6274 = vst [vmem:[#allocation162_spill] sm:$0xff] %v4219_v44  ;;  %v1557_v29 = vmul.f32 %v1493_v23, %v661_v50  ;;  %v1525_v0 = vsub.f32 0.0, %v693_v54  ;;  %v630_v10 = vsub.f32 0.0, %v4200_v52  ;;  %v820_v21 = vadd.f32 1.0, %v756_v13 }
 0x1ce   :  { %v757_v4 = vmul.f32 0.3275911, %v693_v54  ;;  %v599_v31 = vsub.f32 0.0, %v4206_v24  ;;  %v4224_v45 = vmul.f32 0.70710677, %v4210_v5  ;;  %v4226_v22 = vpop.eup %3106  ;;  %3118 = vrcp.f32 %v788_v46 }
 0x1cf   :  { %6276 = vst [vmem:[#allocation164_spill] sm:$0xff] %v4226_v22  ;;  %v1704_v33 = vmul.f32 1.442695, %v1588_v19  ;;  %v4229_v53 = vmul.f32 0.5, %v4140_v43  ;;  %v1494_v1 = vsub.f32 0.0, %v662_v39  ;;  %v4231_v60 = vpop.eup %3108  ;;  %3120 = vpow2.f32 %v1640_v58 }
 0x1d0   :  { %6275 = vst [vmem:[#allocation163_spill] sm:$0xff] %v4224_v45  ;;  %6278 = vst [vmem:[#allocation166_spill] sm:$0xff] %v4231_v60  ;;  %v789_v50 = vadd.f32 1.0, %v725_v42  ;;  %v4234_v13 = vmul.f32 0.70710677, %v4217_v56  ;;  %v4238_v23 = vadd.f32 %v3650_v26, %v3423_v11  ;;  %v1589_v59 = vmul.f32 %v1525_v0, %v693_v54  ;;  %v6283_v54 = vld [vmem:[#allocation46_spill] sm:$0xff] }
 0x1d1   :  { %6277 = vst [vmem:[#allocation165_spill] sm:$0xff] %v4229_v53  ;;  %v1642_v44 = vmul.f32 1.442695, %v1557_v29  ;;  %v4241_v46 = vmul.f32 0.5, %v4152_v55  ;;  %v694_v43 = vmax.f32 %v4200_v52, %v630_v10  ;;  %v4244_v19 = vpop.eup %3110  ;;  %3122 = vrcp.f32 %v820_v21 }
 0x1d2   :  { %6279 = vst [vmem:[#allocation167_spill] sm:$0xff] %v4234_v13  ;;  %6281 = vst [vmem:[#allocation169_spill] sm:$0xff] %v4244_v19  ;;  %v821_v53 = vadd.f32 1.0, %v757_v4  ;;  %v663_v58 = vmax.f32 %v4206_v24, %v599_v31  ;;  %v631_v42 = vsub.f32 0.0, %v4224_v45  ;;  %3124 = vpow2.f32 %v1704_v33 }
 0x1d3   :  { %6280 = vst [vmem:[#allocation168_spill] sm:$0xff] %v4241_v46  ;;  %v726_v60 = vmul.f32 0.3275911, %v662_v39  ;;  %v1558_v22 = vmul.f32 %v1494_v1, %v662_v39  ;;  %v1526_v26 = vsub.f32 0.0, %v694_v43  ;;  %3126 = vrcp.f32 %v789_v50  ;;  %v6286_v1 = vld [vmem:[#allocation50_spill] sm:$0xff] }
 0x1d4   :  { %v600_v29 = vsub.f32 0.0, %v4234_v13  ;;  %v4250_v55 = vmul.f32 0.70710677, %v4238_v23  ;;  %v4254_v0 = vadd.f32 %v6283_v54, %v3426_v14  ;;  %v4256_v10 = vpop.eup %3112  ;;  %3128 = vpow2.f32 %v1642_v44 }
 0x1d5   :  { %6284 = vst [vmem:[#allocation46_spill] sm:$0xff] %v4256_v10  ;;  %v1706_v21 = vmul.f32 1.442695, %v1589_v59  ;;  %v4259_v4 = vmul.f32 0.5, %v4182_v49  ;;  %v4263_v39 = vadd.f32 %v6286_v1, %v3426_v14  ;;  %v4265_v31 = vpop.eup %3114  ;;  %3130 = vrcp.f32 %v821_v53 }
 0x1d6   :  { %6282 = vst [vmem:[#allocation170_spill] sm:$0xff] %v4250_v55  ;;  %6287 = vst [vmem:[#allocation50_spill] sm:$0xff] %v4265_v31  ;;  %v4268_v33 = vmul.f32 0.5, %v4186_v18  ;;  %v1495_v50 = vsub.f32 0.0, %v663_v58  ;;  %v695_v54 = vmax.f32 %v4224_v45, %v631_v42  ;;  %v4271_v52 = vpop.eup %3116  ;;  %v790_v44 = vadd.f32 1.0, %v726_v60  ;;  %v6293_v60 = vld [vmem:[#allocation51_spill] sm:$0xff] }
 0x1d7   :  { %6285 = vst [vmem:[#allocation171_spill] sm:$0xff] %v4259_v4  ;;  %6289 = vst [vmem:[#allocation173_spill] sm:$0xff] %v4271_v52  ;;  %v1644_v59 = vmul.f32 1.442695, %v1558_v22  ;;  %v758_v46 = vmul.f32 0.3275911, %v694_v43  ;;  %v1590_v49 = vmul.f32 %v1526_v26, %v694_v43  ;;  %v664_v24 = vmax.f32 %v4234_v13, %v600_v29 }
 0x1d8   :  { %6288 = vst [vmem:[#allocation172_spill] sm:$0xff] %v4268_v33  ;;  %v1527_v4 = vsub.f32 0.0, %v695_v54  ;;  %v632_v1 = vsub.f32 0.0, %v4250_v55  ;;  %v4276_v31 = vmul.f32 0.70710677, %v4254_v0  ;;  %v4278_v53 = vpop.eup %3118  ;;  %3132 = vpow2.f32 %v1706_v21  ;;  %v6296_v45 = vld [vmem:[#allocation52_spill] sm:$0xff] }
 0x1d9   :  { %6291 = vst [vmem:[#allocation175_spill] sm:$0xff] %v4278_v53  ;;  %v727_v18 = vmul.f32 0.3275911, %v663_v58  ;;  %v4281_v42 = vmul.f32 0.70710677, %v4263_v39  ;;  %v4285_v22 = vadd.f32 %v6293_v60, %v3423_v11  ;;  %v4287_v43 = vpop.eup %3120  ;;  %v1559_v26 = vmul.f32 %v1495_v50, %v663_v58 }
 0x1da   :  { %6290 = vst [vmem:[#allocation174_spill] sm:$0xff] %v4276_v31  ;;  %6294 = vst [vmem:[#allocation51_spill] sm:$0xff] %v4287_v43  ;;  %v4290_v29 = vmul.f32 0.5, %v4210_v5  ;;  %v1496_v13 = vsub.f32 0.0, %v664_v24  ;;  %v4294_v33 = vadd.f32 %v6296_v45, %v3423_v11  ;;  %3134 = vrcp.f32 %v790_v44 }
 0x1db   :  { %6292 = vst [vmem:[#allocation176_spill] sm:$0xff] %v4281_v42  ;;  %v822_v21 = vadd.f32 1.0, %v758_v46  ;;  %v759_v52 = vmul.f32 0.3275911, %v695_v54  ;;  %v601_v53 = vsub.f32 0.0, %v4276_v31  ;;  %v4297_v10 = vpop.eup %3122  ;;  %3136 = vpow2.f32 %v1644_v59 }
 0x1dc   :  { %6295 = vst [vmem:[#allocation177_spill] sm:$0xff] %v4290_v29  ;;  %6297 = vst [vmem:[#allocation52_spill] sm:$0xff] %v4297_v10  ;;  %v1708_v60 = vmul.f32 1.442695, %v1590_v49  ;;  %v1591_v19 = vmul.f32 %v1527_v4, %v695_v54  ;;  %v696_v58 = vmax.f32 %v4250_v55, %v632_v1  ;;  %v4300_v50 = vpop.eup %3124  ;;  %v791_v5 = vadd.f32 1.0, %v727_v18  ;;  %v6302_v1 = vld [vmem:[#allocation53_spill] sm:$0xff] }
 0x1dd   :  { %6298 = vst [vmem:[#allocation178_spill] sm:$0xff] %v4300_v50  ;;  %v728_v29 = vmul.f32 0.3275911, %v664_v24  ;;  %v633_v43 = vsub.f32 0.0, %v4281_v42  ;;  %v4304_v45 = vmul.f32 0.70710677, %v4285_v22  ;;  %v4306_v46 = vpop.eup %3126  ;;  %v1560_v30 = vmul.f32 %v1496_v13, %v664_v24 }
 0x1de   :  { %v1646_v44 = vmul.f32 1.442695, %v1559_v26  ;;  %v1528_v17 = vsub.f32 0.0, %v696_v58  ;;  %v4309_v59 = vmul.f32 0.70710677, %v4294_v33  ;;  %v4311_v4 = vpop.eup %3128  ;;  %3138 = vrcp.f32 %v822_v21 }
 0x1df   :  { %6299 = vst [vmem:[#allocation179_spill] sm:$0xff] %v4304_v45  ;;  %6301 = vst [vmem:[#allocation181_spill] sm:$0xff] %v4311_v4  ;;  %v823_v54 = vadd.f32 1.0, %v759_v52  ;;  %v665_v49 = vmax.f32 %v4276_v31, %v601_v53  ;;  %v4316_v18 = vadd.f32 %v6302_v1, %v3426_v14  ;;  %v4318_v55 = vpop.eup %3130  ;;  %3140 = vpow2.f32 %v1708_v60 }
 0x1e0   :  { %6300 = vst [vmem:[#allocation180_spill] sm:$0xff] %v4309_v59  ;;  %6303 = vst [vmem:[#allocation53_spill] sm:$0xff] %v4318_v55  ;;  %v1710_v50 = vmul.f32 1.442695, %v1591_v19  ;;  %v4321_v24 = vmul.f32 0.5, %v4217_v56  ;;  %v602_v13 = vsub.f32 0.0, %v4304_v45  ;;  %3142 = vrcp.f32 %v791_v5 }
 0x1e1   :  { %v792_v26 = vadd.f32 1.0, %v728_v29  ;;  %v760_v4 = vmul.f32 0.3275911, %v696_v58  ;;  %v697_v52 = vmax.f32 %v4281_v42, %v633_v43  ;;  %3144 = vpow2.f32 %v1646_v44 }
 0x1e2   :  { %6304 = vst [vmem:[#allocation182_spill] sm:$0xff] %v4321_v24  ;;  %v1648_v53 = vmul.f32 1.442695, %v1560_v30  ;;  %v1592_v21 = vmul.f32 %v1528_v17, %v696_v58  ;;  %v634_v1 = vsub.f32 0.0, %v4309_v59  ;;  %v4326_v31 = vpop.eup %3132  ;;  %3146 = vrcp.f32 %v823_v54 }
 0x1e3   :  { %6305 = vst [vmem:[#allocation183_spill] sm:$0xff] %v4326_v31  ;;  %v1497_v60 = vsub.f32 0.0, %v665_v49  ;;  %v666_v19 = vmax.f32 %v4304_v45, %v602_v13  ;;  %v4330_v56 = vmul.f32 0.70710677, %v4316_v18  ;;  %3148 = vpow2.f32 %v1710_v50 }
 0x1e4   :  { %v4333_v29 = vmul.f32 0.5, %v4238_v23  ;;  %v729_v5 = vmul.f32 0.3275911, %v665_v49  ;;  %v1529_v43 = vsub.f32 0.0, %v697_v52  ;;  %v4335_v44 = vpop.eup %3134  ;;  %3150 = vrcp.f32 %v792_v26 }
 0x1e5   :  { %6306 = vst [vmem:[#allocation184_spill] sm:$0xff] %v4330_v56  ;;  %v824_v30 = vadd.f32 1.0, %v760_v4  ;;  %v761_v17 = vmul.f32 0.3275911, %v697_v52  ;;  %v603_v58 = vsub.f32 0.0, %v4330_v56  ;;  %v4338_v54 = vpop.eup %3136  ;;  %3152 = vpow2.f32 %v1648_v53 }
 0x1e6   :  { %6307 = vst [vmem:[#allocation185_spill] sm:$0xff] %v4333_v29  ;;  %6308 = vst [vmem:[#allocation186_spill] sm:$0xff] %v4338_v54  ;;  %v1712_v13 = vmul.f32 1.442695, %v1592_v21  ;;  %v4341_v42 = vmul.f32 0.5, %v4254_v0  ;;  %v698_v50 = vmax.f32 %v4309_v59, %v634_v1  ;;  %v1561_v23 = vmul.f32 %v1497_v60, %v665_v49 }
 0x1e7   :  { %v1498_v29 = vsub.f32 0.0, %v666_v19  ;;  %v436_v24 = vadd.f32 %v3684_v47, %v3426_v14  ;;  %v4348_v4 = vadd.f32 %v3704_v9, %v3423_v11  ;;  %v793_v26 = vadd.f32 1.0, %v729_v5 }
 0x1e8   :  { %6309 = vst [vmem:[#allocation187_spill] sm:$0xff] %v4341_v42  ;;  %v1593_v45 = vmul.f32 %v1529_v43, %v697_v52  ;;  %v1530_v31 = vsub.f32 0.0, %v698_v50  ;;  %v667_v53 = vmax.f32 %v4330_v56, %v603_v58  ;;  %v4351_v21 = vpop.eup %3138  ;;  %3154 = vrcp.f32 %v824_v30 }
 0x1e9   :  { %6310 = vst [vmem:[#allocation188_spill] sm:$0xff] %v4351_v21  ;;  %v825_v0 = vadd.f32 1.0, %v761_v17  ;;  %v730_v42 = vmul.f32 0.3275911, %v666_v19  ;;  %v4355_v49 = vadd.f32 %v3716_v34, %v3423_v11  ;;  %v4357_v1 = vpop.eup %3140  ;;  %3156 = vpow2.f32 %v1712_v13  ;;  %v6316_v17 = vld [vmem:[#allocation32_spill] sm:$0xff] }
 0x1ea   :  { %6312 = vst [vmem:[#allocation190_spill] sm:$0xff] %v4357_v1  ;;  %v4360_v47 = vmul.f32 0.5, %v4263_v39  ;;  %v762_v9 = vmul.f32 0.3275911, %v698_v50  ;;  %v4362_v52 = vmul.f32 0.70710677, %v436_v24  ;;  %v4364_v60 = vpop.eup %3142  ;;  %v1562_v43 = vmul.f32 %v1498_v29, %v666_v19 }
 0x1eb   :  { %6311 = vst [vmem:[#allocation189_spill] sm:$0xff] %v4355_v49  ;;  %v1650_v5 = vmul.f32 1.442695, %v1561_v23  ;;  %v4367_v30 = vmul.f32 0.70710677, %v4348_v4  ;;  %v4370_v34 = vpop.eup %3144  ;;  %3158 = vrcp.f32 %v793_v26  ;;  %v1594_v13 = vmul.f32 %v1530_v31, %v698_v50 }
 0x1ec   :  { %6313 = vst [vmem:[#allocation191_spill] sm:$0xff] %v4360_v47  ;;  %6314 = vst [vmem:[#allocation192_spill] sm:$0xff] %v4362_v52  ;;  %v896_v58 = vmul.f32 1.0614054, %v6316_v17  ;;  %v1714_v59 = vmul.f32 1.442695, %v1593_v45  ;;  %v4372_v39 = vpop.eup %3146  ;;  %3160 = vrcp.f32 %v825_v0 }
 0x1ed   :  { %6315 = vst [vmem:[#allocation193_spill] sm:$0xff] %v4367_v30  ;;  %6317 = vst [vmem:[#allocation32_spill] sm:$0xff] %v4370_v34  ;;  %v1499_v56 = vsub.f32 0.0, %v667_v53  ;;  %v794_v47 = vadd.f32 1.0, %v730_v42  ;;  %v635_v1 = vsub.f32 0.0, %v4362_v52  ;;  %v4378_v19 = vpop.eup %3148  ;;  %v826_v29 = vadd.f32 1.0, %v762_v9 }
 0x1ee   :  { %6318 = vst [vmem:[#allocation194_spill] sm:$0xff] %v4372_v39  ;;  %v4376_v23 = vmul.f32 0.70710677, %v4355_v49  ;;  %6320 = vst [vmem:[#allocation196_spill] sm:$0xff] %v4378_v19  ;;  %v731_v21 = vmul.f32 0.3275911, %v667_v53  ;;  %v4382_v45 = vpop.eup %3150  ;;  %3162 = vpow2.f32 %v1650_v5 }
 0x1ef   :  { %v604_v54 = vsub.f32 0.0, %v4367_v30  ;;  %v6321_v34 = vld [vmem:[#allocation43_spill] sm:$0xff]  ;;  %v4385_v31 = vmul.f32 0.5, %v4285_v22  ;;  %v1652_v42 = vmul.f32 1.442695, %v1562_v43  ;;  %v4387_v0 = vpop.eup %3152  ;;  %3164 = vpow2.f32 %v1714_v59 }
 0x1f0   :  { %6319 = vst [vmem:[#allocation195_spill] sm:$0xff] %v4376_v23  ;;  %v897_v26 = vmul.f32 1.0614054, %v6321_v34  ;;  %v960_v50 = vadd.f32 -1.4531521, %v896_v58  ;;  %v1563_v39 = vmul.f32 %v1499_v56, %v667_v53  ;;  %3166 = vrcp.f32 %v794_v47 }
 0x1f1   :  { %6322 = vst [vmem:[#allocation43_spill] sm:$0xff] %v4385_v31  ;;  %v1716_v49 = vmul.f32 1.442695, %v1594_v13  ;;  %v699_v9 = vmax.f32 %v4362_v52, %v635_v1  ;;  %v636_v55 = vsub.f32 0.0, %v4376_v23  ;;  %v4393_v5 = vmul.f32 0.5, %v4294_v33 }
 0x1f2   :  { %v961_v19 = vadd.f32 -1.4531521, %v897_v26  ;;  %v1024_v10 = vmul.f32 %v6316_v17, %v960_v50  ;;  %3168 = vrcp.f32 %v826_v29  ;;  %v795_v22 = vadd.f32 1.0, %v731_v21  ;;  %v4396_v58 = vpop.eup %3154 }
 0x1f3   :  { %6323 = vst [vmem:[#allocation197_spill] sm:$0xff] %v4393_v5  ;;  %v668_v43 = vmax.f32 %v4367_v30, %v604_v54  ;;  %3170 = vpow2.f32 %v1652_v42  ;;  %v1531_v59 = vsub.f32 0.0, %v699_v9  ;;  %v4399_v47 = vpop.eup %3156  ;;  %v4402_v1 = vmul.f32 0.5, %v4316_v18 }
 0x1f4   :  { %v1025_v56 = vmul.f32 %v6321_v34, %v961_v19  ;;  %v1088_v53 = vadd.f32 1.4214138, %v1024_v10  ;;  %6324 = vst [vmem:[#allocation198_spill] sm:$0xff] %v4399_v47  ;;  %3172 = vpow2.f32 %v1716_v49  ;;  %v1654_v13 = vmul.f32 1.442695, %v1563_v39 }
 0x1f5   :  { %6325 = vst [vmem:[#allocation199_spill] sm:$0xff] %v4402_v1  ;;  %v4404_v33 = vmul.f32 0.5, %v436_v24  ;;  %v1500_v29 = vsub.f32 0.0, %v668_v43  ;;  %v700_v21 = vmax.f32 %v4376_v23, %v636_v55  ;;  %v4408_v42 = vpop.eup %3158  ;;  %3174 = vrcp.f32 %v795_v22  ;;  %v6336_v1 = vld [vmem:[#allocation39_spill] sm:$0xff] }
 0x1f6   :  { %v1089_v54 = vadd.f32 1.4214138, %v1025_v56  ;;  %v1152_v26 = vmul.f32 %v6316_v17, %v1088_v53  ;;  %v763_v19 = vmul.f32 0.3275911, %v699_v9  ;;  %v4411_v10 = vmul.f32 0.5, %v4348_v4  ;;  %v4413_v50 = vpop.eup %3160 }
 0x1f7   :  { %6326 = vst [vmem:[#allocation200_spill] sm:$0xff] %v4404_v33  ;;  %v732_v49 = vmul.f32 0.3275911, %v668_v43  ;;  %v1595_v18 = vmul.f32 %v1531_v59, %v699_v9  ;;  %v362_v55 = vadd.f32 %v3875_v16, %v3426_v14  ;;  %3176 = vpow2.f32 %v1654_v13 }
 0x1f8   :  { %6327 = vst [vmem:[#allocation201_spill] sm:$0xff] %v4411_v10  ;;  %v1153_v24 = vmul.f32 %v6321_v34, %v1089_v54  ;;  %v1216_v39 = vadd.f32 -0.28449672, %v1152_v26  ;;  %v1532_v56 = vsub.f32 0.0, %v700_v21  ;;  %v4420_v53 = vadd.f32 %v3877_v57, %v3426_v14  ;;  %v4426_v22 = vpop.eup %3162 }
 0x1f9   :  { %v4424_v4 = vadd.f32 %v3882_v28, %v3423_v11  ;;  %v1564_v23 = vmul.f32 %v1500_v29, %v668_v43  ;;  %v764_v9 = vmul.f32 0.3275911, %v700_v21  ;;  %v4429_v26 = vpop.eup %3164  ;;  %v827_v16 = vadd.f32 1.0, %v763_v19 }
 0x1fa   :  { %6328 = vst [vmem:[#allocation202_spill] sm:$0xff] %v4420_v53  ;;  %v1217_v59 = vadd.f32 -0.28449672, %v1153_v24  ;;  %v1280_v54 = vmul.f32 %v6316_v17, %v1216_v39  ;;  %6330 = vst [vmem:[#allocation204_spill] sm:$0xff] %v4429_v26  ;;  %v796_v13 = vadd.f32 1.0, %v732_v49  ;;  %v4436_v33 = vpop.eup %3166  ;;  %v1596_v24 = vmul.f32 %v1532_v56, %v700_v21 }
 0x1fb   :  { %6329 = vst [vmem:[#allocation203_spill] sm:$0xff] %v4424_v4  ;;  %v4431_v10 = vmul.f32 0.70710677, %v362_v55  ;;  %v4434_v57 = vmul.f32 0.70710677, %v4420_v53  ;;  %3178 = vrcp.f32 %v827_v16 }
 0x1fc   :  { %v1718_v28 = vmul.f32 1.442695, %v1595_v18  ;;  %v1281_v5 = vmul.f32 %v6321_v34, %v1217_v59  ;;  %v1344_v30 = vadd.f32 0.2548296, %v1280_v54  ;;  %v4440_v43 = vmul.f32 0.70710677, %v4424_v4  ;;  %v4442_v29 = vpop.eup %3168 }
 0x1fd   :  { %6331 = vst [vmem:[#allocation205_spill] sm:$0xff] %v4431_v10  ;;  %6332 = vst [vmem:[#allocation206_spill] sm:$0xff] %v4434_v57  ;;  %v605_v19 = vsub.f32 0.0, %v4431_v10  ;;  %v637_v49 = vsub.f32 0.0, %v4434_v57  ;;  %v930_v39 = vmul.f32 1.0614054, %v3706_v38  ;;  %v4447_v53 = vpop.eup %3170  ;;  %3180 = vrcp.f32 %v796_v13 }
 0x1fe   :  { %6333 = vst [vmem:[#allocation207_spill] sm:$0xff] %v4440_v43  ;;  %6334 = vst [vmem:[#allocation208_spill] sm:$0xff] %v4442_v29  ;;  %v1656_v52 = vmul.f32 1.442695, %v1564_v23  ;;  %v1345_v26 = vadd.f32 0.2548296, %v1281_v5  ;;  %v1408_v18 = vmul.f32 %v6316_v17, %v1344_v30  ;;  %v4451_v54 = vpop.eup %3172  ;;  %3182 = vpow2.f32 %v1718_v28 }
 0x1ff   :  { %v638_v59 = vsub.f32 0.0, %v4440_v43  ;;  %6335 = vst [vmem:[#allocation209_spill] sm:$0xff] %v4451_v54  ;;  %v828_v4 = vadd.f32 1.0, %v764_v9  ;;  %v669_v21 = vmax.f32 %v4431_v10, %v605_v19  ;;  %v931_v56 = vmul.f32 1.0614054, %v3736_v36  ;;  %v4458_v5 = vpop.eup %3174  ;;  %v6337_v17 = vld [vmem:[#allocation13_spill] sm:$0xff] }
 0x200   :  { %v1409_v47 = vmul.f32 %v6321_v34, %v1345_v26  ;;  %v1728_v31 = vmul.f32 %v6336_v1, %v1408_v18  ;;  %v701_v23 = vmax.f32 %v4434_v57, %v637_v49  ;;  %v1720_v30 = vmul.f32 1.442695, %v1596_v24  ;;  %v6338_v9 = vld [vmem:[#allocation44_spill] sm:$0xff]  ;;  %v6340_v34 = vld [vmem:[#allocation15_spill] sm:$0xff] }
 0x201   :  { %vm1856_vm0 = vcmp.lt.f32.partialorder %v6337_v17, 0.0  ;;  %v994_v54 = vadd.f32 -1.4531521, %v930_v39  ;;  %3184 = vpow2.f32 %v1656_v52  ;;  %v702_v10 = vmax.f32 %v4440_v43, %v638_v59  ;;  %v4463_v13 = vpop.eup %3176 }
 0x202   :  { %v1729_v16 = vmul.f32 %v6338_v9, %v1409_v47  ;;  %v1792_v19 = vsub.f32 1.0, %v1728_v31  ;;  %6339 = vst [vmem:[#allocation39_spill] sm:$0xff] %v4463_v13  ;;  %3186 = vrcp.f32 %v828_v4  ;;  %vm1857_vm1 = vcmp.lt.f32.partialorder %v6340_v34, 0.0 }
 0x203   :  { %v733_v1 = vmul.f32 0.3275911, %v669_v21  ;;  %v995_v26 = vadd.f32 -1.4531521, %v931_v56  ;;  %v1501_v28 = vsub.f32 0.0, %v669_v21  ;;  %3188 = vpow2.f32 %v1720_v30 }
 0x204   :  { %v1793_v49 = vsub.f32 1.0, %v1729_v16  ;;  %v1920_v18 = vsub.f32 0.0, %v1792_v19  ;;  %v765_v24 = vmul.f32 0.3275911, %v701_v23  ;;  %v4466_v57 = vmul.f32 0.5, %v362_v55 }
 0x205   :  { %v1533_v52 = vsub.f32 0.0, %v701_v23  ;;  %v1058_v47 = vmul.f32 %v3706_v38, %v994_v54  ;;  %v766_v59 = vmul.f32 0.3275911, %v702_v10  ;;  %v1534_v4 = vsub.f32 0.0, %v702_v10  ;;  %v4478_v54 = vpop.eup %3178 }
 0x206   :  { %6341 = vst [vmem:[#allocation13_spill] sm:$0xff] %v4466_v57  ;;  %v1921_v31 = vsub.f32 0.0, %v1793_v49  ;;  %v1984_v39 = vsel %vm1856_vm0, %v1920_v18, %v1792_v19  ;;  %v797_v43 = vadd.f32 1.0, %v733_v1  ;;  %v1059_v56 = vmul.f32 %v3736_v36, %v995_v26  ;;  %6342 = vst [vmem:[#allocation44_spill] sm:$0xff] %v4478_v54  ;;  %v6343_v19 = vld [vmem:[#allocation20_spill] sm:$0xff]  ;;  %v6363_v54 = vld [vmem:[#allocation22_spill] sm:$0xff] }
 0x207   :  { %v2048_v9 = vadd.f32 1.0, %v1984_v39  ;;  %v1122_v16 = vadd.f32 1.4214138, %v1058_v47  ;;  %v1565_v30 = vmul.f32 %v1501_v28, %v669_v21  ;;  %v829_v55 = vadd.f32 1.0, %v765_v24  ;;  %v4483_v13 = vpop.eup %3180 }
 0x208   :  { %v1985_v29 = vsel %vm1857_vm1, %v1921_v31, %v1793_v49  ;;  %v4476_v57 = vadd.f32 %v3982_v8, %v3423_v11  ;;  %v1597_v39 = vmul.f32 %v1533_v52, %v701_v23  ;;  %v1123_v1 = vadd.f32 1.4214138, %v1059_v56  ;;  %6345 = vst [vmem:[#allocation20_spill] sm:$0xff] %v4483_v13  ;;  %v4489_v49 = vpop.eup %3182  ;;  %v6348_v11 = vld [vmem:[#allocation23_spill] sm:$0xff] }
 0x209   :  { %v2049_v17 = vadd.f32 1.0, %v1985_v29  ;;  %v4481_v18 = vmul.f32 %v2048_v9, %v6343_v19  ;;  %v830_v26 = vadd.f32 1.0, %v766_v59  ;;  %v1598_v47 = vmul.f32 %v1534_v4, %v702_v10  ;;  %6347 = vst [vmem:[#allocation211_spill] sm:$0xff] %v4489_v49  ;;  %v6362_v49 = vld [vmem:[#allocation68_spill] sm:$0xff] }
 0x20a   :  { %v1186_v34 = vmul.f32 %v3706_v38, %v1122_v16  ;;  %v4487_v21 = vmul.f32 0.70710677, %v4476_v57  ;;  %v1187_v29 = vmul.f32 %v3736_v36, %v1123_v1  ;;  %v4497_v23 = vadd.f32 %v3992_v40, %v3426_v14  ;;  %v6356_v16 = vld [vmem:[#allocation37_spill] sm:$0xff] }
 0x20b   :  { %6344 = vst [vmem:[#allocation15_spill] sm:$0xff] %v4481_v18  ;;  %v4492_v8 = vmul.f32 %v2049_v17, %v6348_v11  ;;  %v4501_v28 = vadd.f32 %v3984_v48, %v3426_v14  ;;  %v4503_v10 = vpop.eup %3184  ;;  %3190 = vrcp.f32 %v797_v43  ;;  %v1658_v24 = vmul.f32 1.442695, %v1565_v30  ;;  %v6358_v1 = vld [vmem:[#allocation45_spill] sm:$0xff] }
 0x20c   :  { %6346 = vst [vmem:[#allocation210_spill] sm:$0xff] %v4487_v21  ;;  %6350 = vst [vmem:[#allocation212_spill] sm:$0xff] %v4497_v23  ;;  %v1250_v52 = vadd.f32 -0.28449672, %v1186_v34  ;;  %v606_v31 = vsub.f32 0.0, %v4487_v21  ;;  %v4506_v59 = vpop.eup %3186  ;;  %3192 = vrcp.f32 %v829_v55  ;;  %vm1891_vm3 = vcmp.lt.f32.partialorder %v6363_v54, 0.0 }
 0x20d   :  { %6349 = vst [vmem:[#allocation23_spill] sm:$0xff] %v4492_v8  ;;  %6351 = vst [vmem:[#allocation213_spill] sm:$0xff] %v4501_v28  ;;  %v2176_v4 = vadd.f32 %v4492_v8, %v4481_v18  ;;  %v1722_v9 = vmul.f32 1.442695, %v1597_v39  ;;  %v1251_v56 = vadd.f32 -0.28449672, %v1187_v29  ;;  %v4519_v17 = vpop.eup %3188  ;;  %3194 = vpow2.f32 %v1658_v24 }
 0x20e   :  { %6352 = vst [vmem:[#allocation214_spill] sm:$0xff] %v4503_v10  ;;  %6353 = vst [vmem:[#allocation215_spill] sm:$0xff] %v4506_v59  ;;  %v4511_v40 = vmul.f32 0.70710677, %v4497_v23  ;;  %v1314_v14 = vmul.f32 %v3706_v38, %v1250_v52  ;;  %v670_v48 = vmax.f32 %v4487_v21, %v606_v31  ;;  %v4516_v43 = vmul.f32 0.70710677, %v4501_v28 }
 0x20f   :  { %v928_v30 = vmul.f32 1.0614054, %v6356_v16  ;;  %6357 = vst [vmem:[#allocation37_spill] sm:$0xff] %v4519_v17  ;;  %2177 = vadd.xlane.f32.xlu0 %v2176_v4  ;;  %v1315_v19 = vmul.f32 %v3736_v36, %v1251_v56  ;;  %v929_v34 = vmul.f32 1.0614054, %v6358_v1  ;;  %v6360_v18 = vld [vmem:[#allocation18_spill] sm:$0xff]  ;;  %3196 = vpow2.f32 %v1722_v9 }
 0x210   :  { %6354 = vst [vmem:[#allocation216_spill] sm:$0xff] %v4511_v40  ;;  %6355 = vst [vmem:[#allocation217_spill] sm:$0xff] %v4516_v43  ;;  %v607_v39 = vsub.f32 0.0, %v4511_v40  ;;  %v1378_v11 = vadd.f32 0.2548296, %v1314_v14  ;;  %v1502_v52 = vsub.f32 0.0, %v670_v48  ;;  %3198 = vrcp.f32 %v830_v26 }
 0x211   :  { %v734_v29 = vmul.f32 0.3275911, %v670_v48  ;;  %v639_v31 = vsub.f32 0.0, %v4516_v43  ;;  %v4525_v28 = vmul.f32 1.442695, %v1598_v47  ;;  %vm1890_vm2 = vcmp.lt.f32.partialorder %v6360_v18, 0.0 }
 0x212   :  { %v1379_v8 = vadd.f32 0.2548296, %v1315_v19  ;;  %v671_v4 = vmax.f32 %v4511_v40, %v607_v39  ;;  %v1442_v55 = vmul.f32 %v3706_v38, %v1378_v11  ;;  %v1566_v56 = vmul.f32 %v1502_v52, %v670_v48  ;;  %v6361_v24 = vld [vmem:[#allocation60_spill] sm:$0xff] }
 0x213   :  { %6359 = vst [vmem:[#allocation45_spill] sm:$0xff] %v4525_v28  ;;  %v703_v17 = vmax.f32 %v4516_v43, %v639_v31  ;;  %v992_v23 = vadd.f32 -1.4531521, %v928_v30  ;;  %v798_v21 = vadd.f32 1.0, %v734_v29  ;;  %v993_v19 = vadd.f32 -1.4531521, %v929_v34 }
 0x214   :  { %v1443_v14 = vmul.f32 %v3736_v36, %v1379_v8  ;;  %v735_v59 = vmul.f32 0.3275911, %v671_v4  ;;  %v1503_v10 = vsub.f32 0.0, %v671_v4  ;;  %v1762_v47 = vmul.f32 %v6361_v24, %v1442_v55  ;;  %v6366_v55 = vld [vmem:[#allocation69_spill] sm:$0xff] }
 0x215   :  { %v1660_v28 = vmul.f32 1.442695, %v1566_v56  ;;  %v767_v38 = vmul.f32 0.3275911, %v703_v17  ;;  %v4535_v48 = vpop.eup %3190  ;;  %v4538_v36 = vmul.f32 0.5, %v4476_v57  ;;  %v1056_v8 = vmul.f32 %v6356_v16, %v992_v23 }
 0x216   :  { %v1763_v13 = vmul.f32 %v6362_v49, %v1443_v14  ;;  %v799_v39 = vadd.f32 1.0, %v735_v59  ;;  %v1826_v30 = vsub.f32 1.0, %v1762_v47  ;;  %3200 = vrcp.f32 %v798_v21  ;;  %v4542_v59 = vpop.eup %3192 }
 0x217   :  { %6364 = vst [vmem:[#allocation18_spill] sm:$0xff] %v4538_v36  ;;  %v1567_v11 = vmul.f32 %v1503_v10, %v671_v4  ;;  %v1535_v29 = vsub.f32 0.0, %v703_v17  ;;  %3202 = vpow2.f32 %v1660_v28  ;;  %v1057_v49 = vmul.f32 %v6358_v1, %v993_v19  ;;  %6365 = vst [vmem:[#allocation60_spill] sm:$0xff] %v4542_v59  ;;  %v4549_v10 = vpop.eup %3194  ;;  %v6379_v36 = vld [vmem:[#allocation41_spill] sm:$0xff] }
 0x218   :  { %v1827_v9 = vsub.f32 1.0, %v1763_v13  ;;  %v1954_v34 = vsub.f32 0.0, %v1826_v30  ;;  %v1120_v52 = vadd.f32 1.4214138, %v1056_v8  ;;  %3204 = vrcp.f32 %v799_v39 }
 0x219   :  { %v831_v26 = vadd.f32 1.0, %v767_v38  ;;  %v900_v56 = vmul.f32 1.0614054, %v6366_v55  ;;  %v1121_v23 = vadd.f32 1.4214138, %v1057_v49  ;;  %v6367_v38 = vld [vmem:[#allocation28_spill] sm:$0xff]  ;;  %v4562_v54 = vpop.eup %3196 }
 0x21a   :  { %v1955_v31 = vsub.f32 0.0, %v1827_v9  ;;  %v2018_v57 = vsel %vm1890_vm2, %v1954_v34, %v1826_v30  ;;  %v1184_v13 = vmul.f32 %v6356_v16, %v1120_v52  ;;  %v901_v21 = vmul.f32 1.0614054, %v3789_v2  ;;  %v6369_v34 = vld [vmem:[#allocation54_spill] sm:$0xff]  ;;  %v6370_v52 = vld [vmem:[#allocation61_spill] sm:$0xff]  ;;  %6371 = vst [vmem:[#allocation22_spill] sm:$0xff] %v4562_v54 }
 0x21b   :  { %v2082_v4 = vadd.f32 1.0, %v2018_v57  ;;  %v4553_v14 = vmul.f32 1.442695, %v1567_v11  ;;  %v964_v24 = vadd.f32 -1.4531521, %v900_v56  ;;  %v1185_v19 = vmul.f32 %v6358_v1, %v1121_v23 }
 0x21c   :  { %v2019_v28 = vsel %vm1891_vm3, %v1955_v31, %v1827_v9  ;;  %v1248_v39 = vadd.f32 -0.28449672, %v1184_v13  ;;  %v965_v18 = vadd.f32 -1.4531521, %v901_v21  ;;  %v898_v49 = vmul.f32 1.0614054, %v6369_v34 }
 0x21d   :  { %v2083_v47 = vadd.f32 1.0, %v2019_v28  ;;  %v4557_v30 = vmul.f32 %v2082_v4, %v6367_v38  ;;  %v1028_v8 = vmul.f32 %v6366_v55, %v964_v24  ;;  %v899_v43 = vmul.f32 1.0614054, %v6370_v52  ;;  %v6372_v9 = vld [vmem:[#allocation31_spill] sm:$0xff]  ;;  %v4571_v4 = vpop.eup %3198 }
 0x21e   :  { %v1249_v31 = vadd.f32 -0.28449672, %v1185_v19  ;;  %v1312_v56 = vmul.f32 %v6356_v16, %v1248_v39  ;;  %v1029_v57 = vmul.f32 %v3789_v2, %v965_v18  ;;  %v4569_v23 = vmul.f32 %v1535_v29, %v703_v17  ;;  %6375 = vst [vmem:[#allocation54_spill] sm:$0xff] %v4571_v4  ;;  %v6376_v19 = vld [vmem:[#allocation14_spill] sm:$0xff]  ;;  %v6380_v4 = vld [vmem:[#allocation47_spill] sm:$0xff] }
 0x21f   :  { %6368 = vst [vmem:[#allocation68_spill] sm:$0xff] %v4557_v30  ;;  %v4565_v11 = vmul.f32 %v2083_v47, %v6372_v9  ;;  %v1092_v13 = vadd.f32 1.4214138, %v1028_v8  ;;  %v962_v21 = vadd.f32 -1.4531521, %v898_v49  ;;  %vm1888_vm4 = vcmp.lt.f32.partialorder %v6376_v19, 0.0 }
 0x220   :  { %6374 = vst [vmem:[#allocation28_spill] sm:$0xff] %v4569_v23  ;;  %v963_v28 = vadd.f32 -1.4531521, %v899_v43  ;;  %v1313_v38 = vmul.f32 %v6358_v1, %v1249_v31  ;;  %v1376_v54 = vadd.f32 0.2548296, %v1312_v56  ;;  %v4576_v9 = vpop.eup %3200  ;;  %3206 = vrcp.f32 %v831_v26 }
 0x221   :  { %6373 = vst [vmem:[#allocation69_spill] sm:$0xff] %v4565_v11  ;;  %v2227_v24 = vadd.f32 %v4565_v11, %v4557_v30  ;;  %v1093_v47 = vadd.f32 1.4214138, %v1029_v57  ;;  %v1156_v39 = vmul.f32 %v6366_v55, %v1092_v13  ;;  %v1026_v17 = vmul.f32 %v6369_v34, %v962_v21  ;;  %v4583_v18 = vpop.eup %3202  ;;  %v6378_v11 = vld [vmem:[#allocation16_spill] sm:$0xff] }
 0x222   :  { %v1027_v29 = vmul.f32 %v6370_v52, %v963_v28  ;;  %v902_v43 = vmul.f32 1.0614054, %v3817_v7  ;;  %6377 = vst [vmem:[#allocation61_spill] sm:$0xff] %v4583_v18  ;;  %v1377_v8 = vadd.f32 0.2548296, %v1313_v38  ;;  %v1440_v49 = vmul.f32 %v6356_v16, %v1376_v54  ;;  %v4588_v57 = vpop.eup %3204 }
 0x223   :  { %2228 = vadd.xlane.f32.xlu1 %v2227_v24  ;;  %v1157_v31 = vmul.f32 %v3789_v2, %v1093_v47  ;;  %v903_v56 = vmul.f32 1.0614054, %v3849_v12  ;;  %vm1889_vm5 = vcmp.lt.f32.partialorder %v6378_v11, 0.0  ;;  %v1220_v13 = vadd.f32 -0.28449672, %v1156_v39 }
 0x224   :  { %v1090_v21 = vadd.f32 1.4214138, %v1026_v17  ;;  %v1091_v28 = vadd.f32 1.4214138, %v1027_v29  ;;  %v1441_v30 = vmul.f32 %v6358_v1, %v1377_v8  ;;  %v1760_v23 = vmul.f32 %v6379_v36, %v1440_v49 }
 0x225   :  { %v1221_v24 = vadd.f32 -0.28449672, %v1157_v31  ;;  %v966_v38 = vadd.f32 -1.4531521, %v902_v43  ;;  %v1284_v16 = vmul.f32 %v6366_v55, %v1220_v13  ;;  %v967_v40 = vadd.f32 -1.4531521, %v903_v56 }
 0x226   :  { %v1154_v54 = vmul.f32 %v6369_v34, %v1090_v21  ;;  %v1155_v47 = vmul.f32 %v6370_v52, %v1091_v28  ;;  %v1761_v18 = vmul.f32 %v6380_v4, %v1441_v30  ;;  %v1824_v59 = vsub.f32 1.0, %v1760_v23  ;;  %v6381_v43 = vld [vmem:[#allocation25_spill] sm:$0xff] }
 0x227   :  { %v1285_v26 = vmul.f32 %v3789_v2, %v1221_v24  ;;  %v1030_v39 = vmul.f32 %v3817_v7, %v966_v38  ;;  %v1348_v17 = vadd.f32 0.2548296, %v1284_v16  ;;  %v1031_v36 = vmul.f32 %v3849_v12, %v967_v40  ;;  %v6382_v21 = vld [vmem:[#allocation29_spill] sm:$0xff]  ;;  %v6383_v16 = vld [vmem:[#allocation70_spill] sm:$0xff] }
 0x228   :  { %v1218_v1 = vadd.f32 -0.28449672, %v1154_v54  ;;  %v1219_v29 = vadd.f32 -0.28449672, %v1155_v47  ;;  %vm1860_vm6 = vcmp.lt.f32.partialorder %v6381_v43, 0.0  ;;  %v1825_v8 = vsub.f32 1.0, %v1761_v18 }
 0x229   :  { %v1952_v49 = vsub.f32 0.0, %v1824_v59  ;;  %v1349_v31 = vadd.f32 0.2548296, %v1285_v26  ;;  %v1094_v13 = vadd.f32 1.4214138, %v1030_v39  ;;  %vm1861_vm7 = vcmp.lt.f32.partialorder %v6382_v21, 0.0 }
 0x22a   :  { %v1412_v30 = vmul.f32 %v6366_v55, %v1348_v17  ;;  %v1282_v23 = vmul.f32 %v6369_v34, %v1218_v1  ;;  %v1283_v4 = vmul.f32 %v6370_v52, %v1219_v29  ;;  %v1095_v56 = vadd.f32 1.4214138, %v1031_v36  ;;  %v6384_v39 = vld [vmem:[#allocation17_spill] sm:$0xff]  ;;  %v6398_v21 = vld [vmem:[#allocation55_spill] sm:$0xff] }
 0x22b   :  { %v1953_v28 = vsub.f32 0.0, %v1825_v8  ;;  %v2016_v24 = vsel %vm1888_vm4, %v1952_v49, %v1824_v59  ;;  %v1413_v40 = vmul.f32 %v3789_v2, %v1349_v31  ;;  %v1158_v18 = vmul.f32 %v3817_v7, %v1094_v13  ;;  %v6385_v17 = vld [vmem:[#allocation81_spill] sm:$0xff]  ;;  %v4615_v59 = vpop.eup %3206  ;;  %v6386_v2 = vld [vmem:[#allocation19_spill] sm:$0xff] }
 0x22c   :  { %v2080_v38 = vadd.f32 1.0, %v2016_v24  ;;  %v1732_v54 = vmul.f32 %v6383_v16, %v1412_v30  ;;  %v1346_v47 = vadd.f32 0.2548296, %v1282_v23  ;;  %v1347_v26 = vadd.f32 0.2548296, %v1283_v4  ;;  %v6387_v49 = vld [vmem:[#allocation21_spill] sm:$0xff] }
 0x22d   :  { %vm1858_vm8 = vcmp.lt.f32.partialorder %v6384_v39, 0.0  ;;  %v2017_v55 = vsel %vm1889_vm5, %v1953_v28, %v1825_v8  ;;  %v1733_v1 = vmul.f32 %v6385_v17, %v1413_v40  ;;  %v1159_v29 = vmul.f32 %v3849_v12, %v1095_v56  ;;  %v6389_v28 = vld [vmem:[#allocation24_spill] sm:$0xff]  ;;  %v6392_v16 = vld [vmem:[#allocation71_spill] sm:$0xff] }
 0x22e   :  { %v1222_v19 = vadd.f32 -0.28449672, %v1158_v18  ;;  %vm1859_vm9 = vcmp.lt.f32.partialorder %v6386_v2, 0.0  ;;  %v2081_v36 = vadd.f32 1.0, %v2017_v55  ;;  %v4619_v31 = vmul.f32 %v2080_v38, %v6387_v49  ;;  %v6391_v40 = vld [vmem:[#allocation56_spill] sm:$0xff]  ;;  %v6401_v39 = vld [vmem:[#allocation27_spill] sm:$0xff] }
 0x22f   :  { %v1796_v13 = vsub.f32 1.0, %v1732_v54  ;;  %v1410_v30 = vmul.f32 %v6369_v34, %v1346_v47  ;;  %v1797_v23 = vsub.f32 1.0, %v1733_v1  ;;  %v1411_v11 = vmul.f32 %v6370_v52, %v1347_v26  ;;  %v6393_v38 = vld [vmem:[#allocation64_spill] sm:$0xff]  ;;  %v6394_v1 = vld [vmem:[#allocation77_spill] sm:$0xff]  ;;  %v6404_v2 = vld [vmem:[#allocation30_spill] sm:$0xff] }
 0x230   :  { %6388 = vst [vmem:[#allocation31_spill] sm:$0xff] %v4619_v31  ;;  %v1223_v8 = vadd.f32 -0.28449672, %v1159_v29  ;;  %v1286_v4 = vmul.f32 %v3817_v7, %v1222_v19  ;;  %v4625_v56 = vmul.f32 %v2081_v36, %v6389_v28  ;;  %v932_v55 = vmul.f32 1.0614054, %v6392_v16  ;;  %v6395_v19 = vld [vmem:[#allocation40_spill] sm:$0xff] }
 0x231   :  { %v1924_v24 = vsub.f32 0.0, %v1796_v13  ;;  %v1730_v18 = vmul.f32 %v6391_v40, %v1410_v30  ;;  %v1925_v17 = vsub.f32 0.0, %v1797_v23  ;;  %v1731_v49 = vmul.f32 %v6393_v38, %v1411_v11  ;;  %v6396_v40 = vld [vmem:[#allocation49_spill] sm:$0xff] }
 0x232   :  { %6390 = vst [vmem:[#allocation14_spill] sm:$0xff] %v4625_v56  ;;  %v1287_v54 = vmul.f32 %v3849_v12, %v1223_v8  ;;  %v1350_v34 = vadd.f32 0.2548296, %v1286_v4  ;;  %v2224_v52 = vadd.f32 %v4625_v56, %v4619_v31  ;;  %v933_v29 = vmul.f32 1.0614054, %v6394_v1 }
 0x233   :  { %v1988_v47 = vsel %vm1860_vm6, %v1924_v24, %v1796_v13  ;;  %v1794_v26 = vsub.f32 1.0, %v1730_v18  ;;  %vm1862_vm10 = vcmp.lt.f32.partialorder %v6395_v19, 0.0  ;;  %v1989_v36 = vsel %vm1861_vm7, %v1925_v17, %v1797_v23  ;;  %v6397_v13 = vld [vmem:[#allocation33_spill] sm:$0xff] }
 0x234   :  { %v2052_v30 = vadd.f32 1.0, %v1988_v47  ;;  %v1795_v28 = vsub.f32 1.0, %v1731_v49  ;;  %v1351_v11 = vadd.f32 0.2548296, %v1287_v54  ;;  %vm1863_vm11 = vcmp.lt.f32.partialorder %v6396_v40, 0.0  ;;  %2225 = vadd.xlane.f32.xlu0 %v2224_v52  ;;  %v6399_v49 = vld [vmem:[#allocation85_spill] sm:$0xff] }
 0x235   :  { %v2053_v8 = vadd.f32 1.0, %v1989_v36  ;;  %v1922_v4 = vsub.f32 0.0, %v1794_v26  ;;  %v1414_v38 = vmul.f32 %v3817_v7, %v1350_v34  ;;  %v996_v43 = vadd.f32 -1.4531521, %v932_v55  ;;  %v6400_v34 = vld [vmem:[#allocation91_spill] sm:$0xff] }
 0x236   :  { %v4642_v24 = vmul.f32 %v2052_v30, %v6397_v13  ;;  %v1923_v18 = vsub.f32 0.0, %v1795_v28  ;;  %v1415_v56 = vmul.f32 %v3849_v12, %v1351_v11  ;;  %v997_v31 = vadd.f32 -1.4531521, %v933_v29  ;;  %v6406_v13 = vld [vmem:[#allocation92_spill] sm:$0xff] }
 0x237   :  { %v4646_v23 = vmul.f32 %v2053_v8, %v6398_v21  ;;  %v1986_v17 = vsel %vm1858_vm8, %v1922_v4, %v1794_v26  ;;  %v1734_v54 = vmul.f32 %v6399_v49, %v1414_v38  ;;  %v1060_v52 = vmul.f32 %v6392_v16, %v996_v43  ;;  %v6403_v38 = vld [vmem:[#allocation87_spill] sm:$0xff] }
 0x238   :  { %v1987_v7 = vsel %vm1859_vm9, %v1923_v18, %v1795_v28  ;;  %v2050_v55 = vadd.f32 1.0, %v1986_v17  ;;  %v1735_v47 = vmul.f32 %v6400_v34, %v1415_v56  ;;  %v1061_v36 = vmul.f32 %v6394_v1, %v997_v31 }
 0x239   :  { %v2182_v12 = vadd.f32 %v4646_v23, %v4642_v24  ;;  %v2051_v29 = vadd.f32 1.0, %v1987_v7  ;;  %v1798_v30 = vsub.f32 1.0, %v1734_v54  ;;  %v1124_v11 = vadd.f32 1.4214138, %v1060_v52  ;;  %v6407_v54 = vld [vmem:[#allocation96_spill] sm:$0xff] }
 0x23a   :  { %v4659_v26 = vmul.f32 %v2050_v55, %v6401_v39  ;;  %v1799_v8 = vsub.f32 1.0, %v1735_v47  ;;  %v1125_v4 = vadd.f32 1.4214138, %v1061_v36  ;;  %v934_v43 = vmul.f32 1.0614054, %v6403_v38 }
 0x23b   :  { %2183 = vadd.xlane.f32.xlu1 %v2182_v12  ;;  %v4663_v28 = vmul.f32 %v2051_v29, %v6404_v2  ;;  %v1926_v56 = vsub.f32 0.0, %v1798_v30  ;;  %v1188_v31 = vmul.f32 %v6392_v16, %v1124_v11  ;;  %v935_v18 = vmul.f32 1.0614054, %v6406_v13 }
 0x23c   :  { %6402 = vst [vmem:[#allocation16_spill] sm:$0xff] %v4659_v26  ;;  %v1927_v21 = vsub.f32 0.0, %v1799_v8  ;;  %v1189_v17 = vmul.f32 %v6394_v1, %v1125_v4  ;;  %v998_v49 = vadd.f32 -1.4531521, %v934_v43  ;;  %v904_v52 = vmul.f32 1.0614054, %v6407_v54 }
 0x23d   :  { %6405 = vst [vmem:[#allocation41_spill] sm:$0xff] %v4663_v28  ;;  %v2179_v7 = vadd.f32 %v4663_v28, %v4659_v26  ;;  %v1990_v55 = vsel %vm1862_vm10, %v1926_v56, %v1798_v30  ;;  %v1252_v34 = vadd.f32 -0.28449672, %v1188_v31  ;;  %v999_v47 = vadd.f32 -1.4531521, %v935_v18  ;;  %v6408_v28 = vld [vmem:[#allocation59_spill] sm:$0xff] }
 0x23e   :  { %v1991_v36 = vsel %vm1863_vm11, %v1927_v21, %v1799_v8  ;;  %v2054_v12 = vadd.f32 1.0, %v1990_v55  ;;  %v1253_v29 = vadd.f32 -0.28449672, %v1189_v17  ;;  %v1062_v11 = vmul.f32 %v6403_v38, %v998_v49  ;;  %v6409_v8 = vld [vmem:[#allocation65_spill] sm:$0xff]  ;;  %v6411_v49 = vld [vmem:[#allocation26_spill] sm:$0xff] }
 0x23f   :  { %2180 = vadd.xlane.f32.xlu0 %v2179_v7  ;;  %v2055_v39 = vadd.f32 1.0, %v1991_v36  ;;  %v1316_v4 = vmul.f32 %v6392_v16, %v1252_v34  ;;  %v1063_v43 = vmul.f32 %v6406_v13, %v999_v47  ;;  %v905_v2 = vmul.f32 1.0614054, %v3917_v37  ;;  %v6412_v47 = vld [vmem:[#allocation34_spill] sm:$0xff] }
 0x240   :  { %v4680_v19 = vmul.f32 %v2054_v12, %v6408_v28  ;;  %v1317_v30 = vmul.f32 %v6394_v1, %v1253_v29  ;;  %v1126_v56 = vadd.f32 1.4214138, %v1062_v11  ;;  %v968_v40 = vadd.f32 -1.4531521, %v904_v52  ;;  %v6414_v26 = vld [vmem:[#allocation82_spill] sm:$0xff] }
 0x241   :  { %v4684_v31 = vmul.f32 %v2055_v39, %v6409_v8  ;;  %v1380_v18 = vadd.f32 0.2548296, %v1316_v4  ;;  %v1127_v21 = vadd.f32 1.4214138, %v1063_v43  ;;  %v969_v17 = vadd.f32 -1.4531521, %v905_v2 }
 0x242   :  { %vm1892_vm12 = vcmp.lt.f32.partialorder %v6411_v49, 0.0  ;;  %v1381_v7 = vadd.f32 0.2548296, %v1317_v30  ;;  %v1190_v55 = vmul.f32 %v6403_v38, %v1126_v56  ;;  %v1032_v34 = vmul.f32 %v6407_v54, %v968_v40  ;;  %v6413_v2 = vld [vmem:[#allocation75_spill] sm:$0xff] }
 0x243   :  { %6410 = vst [vmem:[#allocation47_spill] sm:$0xff] %v4684_v31  ;;  %v906_v28 = vmul.f32 1.0614054, %v3935_v62  ;;  %vm1893_vm13 = vcmp.lt.f32.partialorder %v6412_v47, 0.0  ;;  %v2185_v52 = vadd.f32 %v4684_v31, %v4680_v19  ;;  %v1444_v36 = vmul.f32 %v6392_v16, %v1380_v18 }
 0x244   :  { %v1191_v12 = vmul.f32 %v6406_v13, %v1127_v21  ;;  %v1033_v29 = vmul.f32 %v3917_v37, %v969_v17  ;;  %v1445_v11 = vmul.f32 %v6394_v1, %v1381_v7  ;;  %v1254_v39 = vadd.f32 -0.28449672, %v1190_v55 }
 0x245   :  { %v1096_v4 = vadd.f32 1.4214138, %v1032_v34  ;;  %v907_v43 = vmul.f32 1.0614054, %v3986_v20  ;;  %2186 = vadd.xlane.f32.xlu1 %v2185_v52  ;;  %v1764_v30 = vmul.f32 %v6413_v2, %v1444_v36  ;;  %v970_v8 = vadd.f32 -1.4531521, %v906_v28 }
 0x246   :  { %v1255_v56 = vadd.f32 -0.28449672, %v1191_v12  ;;  %v1097_v40 = vadd.f32 1.4214138, %v1033_v29  ;;  %v1765_v31 = vmul.f32 %v6414_v26, %v1445_v11  ;;  %v1318_v16 = vmul.f32 %v6403_v38, %v1254_v39  ;;  %v6415_v28 = vld [vmem:[#allocation48_spill] sm:$0xff]  ;;  %v6416_v39 = vld [vmem:[#allocation58_spill] sm:$0xff] }
 0x247   :  { %v1160_v18 = vmul.f32 %v6407_v54, %v1096_v4  ;;  %v971_v21 = vadd.f32 -1.4531521, %v907_v43  ;;  %v1828_v17 = vsub.f32 1.0, %v1764_v30  ;;  %v1034_v55 = vmul.f32 %v3935_v62, %v970_v8 }
 0x248   :  { %v1319_v1 = vmul.f32 %v6406_v13, %v1255_v56  ;;  %v1161_v7 = vmul.f32 %v3917_v37, %v1097_v40  ;;  %v1829_v34 = vsub.f32 1.0, %v1765_v31  ;;  %v1382_v52 = vadd.f32 0.2548296, %v1318_v16 }
 0x249   :  { %v1224_v36 = vadd.f32 -0.28449672, %v1160_v18  ;;  %v1035_v12 = vmul.f32 %v3986_v20, %v971_v21  ;;  %vm1894_vm14 = vcmp.lt.f32.partialorder %v6415_v28, 0.0  ;;  %3208 = vpow2.f32 %v4553_v14  ;;  %v6417_v18 = vld [vmem:[#allocation90_spill] sm:$0xff] }
 0x24a   :  { %v1956_v26 = vsub.f32 0.0, %v1828_v17  ;;  %v1383_v29 = vadd.f32 0.2548296, %v1319_v1  ;;  %v1225_v11 = vadd.f32 -0.28449672, %v1161_v7  ;;  %vm1895_vm15 = vcmp.lt.f32.partialorder %v6416_v39, 0.0 }
 0x24b   :  { %v1957_v4 = vsub.f32 0.0, %v1829_v34  ;;  %v1446_v43 = vmul.f32 %v6403_v38, %v1382_v52  ;;  %v1288_v2 = vmul.f32 %v6407_v54, %v1224_v36  ;;  %v1098_v30 = vadd.f32 1.4214138, %v1034_v55  ;;  %v6418_v7 = vld [vmem:[#allocation63_spill] sm:$0xff]  ;;  %v6419_v52 = vld [vmem:[#allocation94_spill] sm:$0xff]  ;;  %v6427_v39 = vld [vmem:[#allocation72_spill] sm:$0xff] }
 0x24c   :  { %v2020_v31 = vsel %vm1892_vm12, %v1956_v26, %v1828_v17  ;;  %v1447_v56 = vmul.f32 %v6406_v13, %v1383_v29  ;;  %v1289_v40 = vmul.f32 %v3917_v37, %v1225_v11  ;;  %v1099_v8 = vadd.f32 1.4214138, %v1035_v12  ;;  %v6420_v17 = vld [vmem:[#allocation67_spill] sm:$0xff]  ;;  %v6421_v13 = vld [vmem:[#allocation42_spill] sm:$0xff]  ;;  %v6422_v29 = vld [vmem:[#allocation57_spill] sm:$0xff] }
 0x24d   :  { %v2021_v14 = vsel %vm1893_vm13, %v1957_v4, %v1829_v34  ;;  %v2084_v16 = vadd.f32 1.0, %v2020_v31  ;;  %v1766_v21 = vmul.f32 %v6417_v18, %v1446_v43  ;;  %v1352_v1 = vadd.f32 0.2548296, %v1288_v2 }
 0x24e   :  { %vm1864_vm0 = vcmp.lt.f32.partialorder %v6418_v7, 0.0  ;;  %v2085_v38 = vadd.f32 1.0, %v2021_v14  ;;  %v1767_v55 = vmul.f32 %v6419_v52, %v1447_v56  ;;  %v1353_v36 = vadd.f32 0.2548296, %v1289_v40  ;;  %v6423_v40 = vld [vmem:[#allocation100_spill] sm:$0xff] }
 0x24f   :  { %v1162_v49 = vmul.f32 %v3935_v62, %v1098_v30  ;;  %vm1865_vm1 = vcmp.lt.f32.partialorder %v6420_v17, 0.0  ;;  %v4723_v26 = vmul.f32 %v2084_v16, %v6421_v13  ;;  %v1830_v12 = vsub.f32 1.0, %v1766_v21 }
 0x250   :  { %v1416_v47 = vmul.f32 %v6407_v54, %v1352_v1  ;;  %v1163_v34 = vmul.f32 %v3986_v20, %v1099_v8  ;;  %v4728_v11 = vmul.f32 %v2085_v38, %v6422_v29  ;;  %v1831_v4 = vsub.f32 1.0, %v1767_v55  ;;  %v6426_v29 = vld [vmem:[#allocation62_spill] sm:$0xff] }
 0x251   :  { %v1417_v43 = vmul.f32 %v3917_v37, %v1353_v36  ;;  %v1226_v2 = vadd.f32 -0.28449672, %v1162_v49  ;;  %v1958_v31 = vsub.f32 0.0, %v1830_v12  ;;  %v936_v14 = vmul.f32 1.0614054, %v6423_v40 }
 0x252   :  { %v1736_v30 = vmul.f32 %v3903_v25, %v1416_v47  ;;  %v1227_v56 = vadd.f32 -0.28449672, %v1163_v34  ;;  %v2230_v16 = vadd.f32 %v4728_v11, %v4723_v26  ;;  %v1959_v18 = vsub.f32 0.0, %v1831_v4  ;;  %v6425_v34 = vld [vmem:[#allocation80_spill] sm:$0xff] }
 0x253   :  { %v1737_v54 = vmul.f32 %v3924_v63, %v1417_v43  ;;  %v1290_v8 = vmul.f32 %v3935_v62, %v1226_v2  ;;  %v2022_v21 = vsel %vm1894_vm14, %v1958_v31, %v1830_v12  ;;  %v937_v38 = vmul.f32 1.0614054, %v3929_v6  ;;  %v4741_v25 = vpop.eup %3208  ;;  %v6424_v63 = vld [vmem:[#allocation74_spill] sm:$0xff] }
 0x254   :  { %v1800_v1 = vsub.f32 1.0, %v1736_v30  ;;  %v1291_v37 = vmul.f32 %v3986_v20, %v1227_v56  ;;  %2231 = vadd.xlane.f32.xlu0 %v2230_v16  ;;  %v2023_v52 = vsel %vm1895_vm15, %v1959_v18, %v1831_v4  ;;  %v2086_v55 = vadd.f32 1.0, %v2022_v21 }
 0x255   :  { %v1801_v36 = vsub.f32 1.0, %v1737_v54  ;;  %v1354_v49 = vadd.f32 0.2548296, %v1290_v8  ;;  %vm1866_vm2 = vcmp.lt.f32.partialorder %v6424_v63, 0.0  ;;  %v2087_v13 = vadd.f32 1.0, %v2023_v52 }
 0x256   :  { %v1928_v47 = vsub.f32 0.0, %v1800_v1  ;;  %v1355_v28 = vadd.f32 0.2548296, %v1291_v37  ;;  %v1000_v12 = vadd.f32 -1.4531521, %v936_v14  ;;  %vm1867_vm3 = vcmp.lt.f32.partialorder %v6425_v34, 0.0 }
 0x257   :  { %v4748_v43 = vmul.f32 %v2086_v55, %v6426_v29  ;;  %v1929_v2 = vsub.f32 0.0, %v1801_v36  ;;  %v1418_v31 = vmul.f32 %v3935_v62, %v1354_v49  ;;  %v1001_v30 = vadd.f32 -1.4531521, %v937_v38  ;;  %v6428_v38 = vld [vmem:[#allocation116_spill] sm:$0xff]  ;;  %v6437_v34 = vld [vmem:[#allocation101_spill] sm:$0xff] }
 0x258   :  { %v4752_v4 = vmul.f32 %v2087_v13, %v6427_v39  ;;  %v1992_v56 = vsel %vm1864_vm0, %v1928_v47, %v1800_v1  ;;  %v1419_v16 = vmul.f32 %v3986_v20, %v1355_v28  ;;  %v1064_v18 = vmul.f32 %v6423_v40, %v1000_v12  ;;  %v6429_v1 = vld [vmem:[#allocation76_spill] sm:$0xff]  ;;  %v6430_v13 = vld [vmem:[#allocation111_spill] sm:$0xff]  ;;  %v6432_v12 = vld [vmem:[#allocation117_spill] sm:$0xff] }
 0x259   :  { %v1993_v14 = vsel %vm1865_vm1, %v1929_v2, %v1801_v36  ;;  %v2056_v54 = vadd.f32 1.0, %v1992_v56  ;;  %v1738_v8 = vmul.f32 %v3950_v41, %v1418_v31  ;;  %v1065_v21 = vmul.f32 %v3929_v6, %v1001_v30  ;;  %v6431_v36 = vld [vmem:[#allocation83_spill] sm:$0xff]  ;;  %v6433_v39 = vld [vmem:[#allocation121_spill] sm:$0xff] }
 0x25a   :  { %v2233_v62 = vadd.f32 %v4752_v4, %v4748_v43  ;;  %v2057_v37 = vadd.f32 1.0, %v1993_v14  ;;  %v1739_v52 = vmul.f32 %v6428_v38, %v1419_v16  ;;  %v1128_v7 = vadd.f32 1.4214138, %v1064_v18 }
 0x25b   :  { %v4766_v55 = vmul.f32 %v2056_v54, %v6429_v1  ;;  %v1802_v20 = vsub.f32 1.0, %v1738_v8  ;;  %v1129_v49 = vadd.f32 1.4214138, %v1065_v21  ;;  %v938_v17 = vmul.f32 1.0614054, %v6430_v13 }
 0x25c   :  { %2234 = vadd.xlane.f32.xlu1 %v2233_v62  ;;  %v4770_v47 = vmul.f32 %v2057_v37, %v6431_v36  ;;  %v1803_v41 = vsub.f32 1.0, %v1739_v52  ;;  %v1192_v28 = vmul.f32 %v6423_v40, %v1128_v7  ;;  %v939_v29 = vmul.f32 1.0614054, %v6432_v12 }
 0x25d   :  { %v1930_v2 = vsub.f32 0.0, %v1802_v20  ;;  %v1193_v31 = vmul.f32 %v3929_v6, %v1129_v49  ;;  %v1002_v30 = vadd.f32 -1.4531521, %v938_v17  ;;  %v908_v56 = vmul.f32 1.0614054, %v6433_v39 }
 0x25e   :  { %v2188_v16 = vadd.f32 %v4770_v47, %v4766_v55  ;;  %v1931_v18 = vsub.f32 0.0, %v1803_v41  ;;  %v1256_v14 = vadd.f32 -0.28449672, %v1192_v28  ;;  %v1003_v54 = vadd.f32 -1.4531521, %v939_v29 }
 0x25f   :  { %v1994_v8 = vsel %vm1866_vm2, %v1930_v2, %v1802_v20  ;;  %v1257_v21 = vadd.f32 -0.28449672, %v1193_v31  ;;  %v1066_v62 = vmul.f32 %v6430_v13, %v1002_v30  ;;  %v909_v37 = vmul.f32 1.0614054, %v4053_v15  ;;  %v6434_v20 = vld [vmem:[#allocation88_spill] sm:$0xff]  ;;  %v6436_v30 = vld [vmem:[#allocation66_spill] sm:$0xff] }
 0x260   :  { %2189 = vadd.xlane.f32.xlu0 %v2188_v16  ;;  %v1995_v38 = vsel %vm1867_vm3, %v1931_v18, %v1803_v41  ;;  %v2058_v52 = vadd.f32 1.0, %v1994_v8  ;;  %v1320_v7 = vmul.f32 %v6423_v40, %v1256_v14  ;;  %v1067_v1 = vmul.f32 %v6432_v12, %v1003_v54  ;;  %v6439_v54 = vld [vmem:[#allocation73_spill] sm:$0xff] }
 0x261   :  { %v2059_v49 = vadd.f32 1.0, %v1995_v38  ;;  %v1321_v17 = vmul.f32 %v3929_v6, %v1257_v21  ;;  %v1130_v36 = vadd.f32 1.4214138, %v1066_v62  ;;  %v972_v63 = vadd.f32 -1.4531521, %v908_v56 }
 0x262   :  { %v4788_v28 = vmul.f32 %v2058_v52, %v6434_v20  ;;  %v1384_v29 = vadd.f32 0.2548296, %v1320_v7  ;;  %v1131_v2 = vadd.f32 1.4214138, %v1067_v1  ;;  %v973_v31 = vadd.f32 -1.4531521, %v909_v37 }
 0x263   :  { %vm1896_vm4 = vcmp.lt.f32.partialorder %v6436_v30, 0.0  ;;  %v4792_v41 = vmul.f32 %v2059_v49, %v6437_v34  ;;  %v1385_v16 = vadd.f32 0.2548296, %v1321_v17  ;;  %v1194_v18 = vmul.f32 %v6430_v13, %v1130_v36  ;;  %v6440_v1 = vld [vmem:[#allocation102_spill] sm:$0xff] }
 0x264   :  { %6435 = vst [vmem:[#allocation25_spill] sm:$0xff] %v4788_v28  ;;  %v1036_v14 = vmul.f32 %v6433_v39, %v972_v63  ;;  %vm1897_vm5 = vcmp.lt.f32.partialorder %v6439_v54, 0.0  ;;  %v1448_v56 = vmul.f32 %v6423_v40, %v1384_v29  ;;  %v1195_v8 = vmul.f32 %v6432_v12, %v1131_v2  ;;  %v6441_v40 = vld [vmem:[#allocation108_spill] sm:$0xff] }
 0x265   :  { %6438 = vst [vmem:[#allocation29_spill] sm:$0xff] %v4792_v41  ;;  %v1037_v21 = vmul.f32 %v4053_v15, %v973_v31  ;;  %v910_v62 = vmul.f32 1.0614054, %v4074_v51  ;;  %v2191_v37 = vadd.f32 %v4792_v41, %v4788_v28  ;;  %v1449_v38 = vmul.f32 %v3929_v6, %v1385_v16  ;;  %v6445_v28 = vld [vmem:[#allocation89_spill] sm:$0xff] }
 0x266   :  { %v1258_v52 = vadd.f32 -0.28449672, %v1194_v18  ;;  %v1100_v7 = vadd.f32 1.4214138, %v1036_v14  ;;  %v1768_v49 = vmul.f32 %v6440_v1, %v1448_v56  ;;  %v1259_v17 = vadd.f32 -0.28449672, %v1195_v8 }
 0x267   :  { %v1101_v36 = vadd.f32 1.4214138, %v1037_v21  ;;  %v911_v63 = vmul.f32 1.0614054, %v4112_v32  ;;  %2192 = vadd.xlane.f32.xlu1 %v2191_v37  ;;  %v1769_v20 = vmul.f32 %v6441_v40, %v1449_v38  ;;  %v974_v31 = vadd.f32 -1.4531521, %v910_v62 }
 0x268   :  { %v1322_v29 = vmul.f32 %v6430_v13, %v1258_v52  ;;  %v1164_v2 = vmul.f32 %v6433_v39, %v1100_v7  ;;  %v1832_v34 = vsub.f32 1.0, %v1768_v49  ;;  %v1323_v41 = vmul.f32 %v6432_v12, %v1259_v17  ;;  %v6442_v21 = vld [vmem:[#allocation78_spill] sm:$0xff] }
 0x269   :  { %v1165_v6 = vmul.f32 %v4053_v15, %v1101_v36  ;;  %v975_v16 = vadd.f32 -1.4531521, %v911_v63  ;;  %v1833_v18 = vsub.f32 1.0, %v1769_v20  ;;  %v1038_v8 = vmul.f32 %v4074_v51, %v974_v31  ;;  %v6443_v7 = vld [vmem:[#allocation86_spill] sm:$0xff]  ;;  %v6444_v31 = vld [vmem:[#allocation113_spill] sm:$0xff] }
 0x26a   :  { %v1386_v14 = vadd.f32 0.2548296, %v1322_v29  ;;  %v1228_v56 = vadd.f32 -0.28449672, %v1164_v2  ;;  %vm1898_vm6 = vcmp.lt.f32.partialorder %v6442_v21, 0.0  ;;  %v1960_v37 = vsub.f32 0.0, %v1832_v34 }
 0x26b   :  { %v1387_v38 = vadd.f32 0.2548296, %v1323_v41  ;;  %v1229_v1 = vadd.f32 -0.28449672, %v1165_v6  ;;  %v1039_v52 = vmul.f32 %v4112_v32, %v975_v16  ;;  %vm1899_vm7 = vcmp.lt.f32.partialorder %v6443_v7, 0.0  ;;  %v6453_v21 = vld [vmem:[#allocation106_spill] sm:$0xff] }
 0x26c   :  { %v1961_v62 = vsub.f32 0.0, %v1833_v18  ;;  %v1450_v49 = vmul.f32 %v6430_v13, %v1386_v14  ;;  %v1292_v17 = vmul.f32 %v6433_v39, %v1228_v56  ;;  %v1102_v36 = vadd.f32 1.4214138, %v1038_v8  ;;  %v6446_v14 = vld [vmem:[#allocation122_spill] sm:$0xff]  ;;  %v6456_v7 = vld [vmem:[#allocation103_spill] sm:$0xff] }
 0x26d   :  { %v2024_v63 = vsel %vm1896_vm4, %v1960_v37, %v1832_v34  ;;  %v1451_v40 = vmul.f32 %v6432_v12, %v1387_v38  ;;  %v1293_v20 = vmul.f32 %v4053_v15, %v1229_v1  ;;  %v1103_v29 = vadd.f32 1.4214138, %v1039_v52  ;;  %v6447_v34 = vld [vmem:[#allocation95_spill] sm:$0xff]  ;;  %v6449_v1 = vld [vmem:[#allocation84_spill] sm:$0xff] }
 0x26e   :  { %v2025_v41 = vsel %vm1897_vm5, %v1961_v62, %v1833_v18  ;;  %v2088_v2 = vadd.f32 1.0, %v2024_v63  ;;  %v1770_v6 = vmul.f32 %v6444_v31, %v1450_v49  ;;  %v1356_v16 = vadd.f32 0.2548296, %v1292_v17  ;;  %v6448_v12 = vld [vmem:[#allocation79_spill] sm:$0xff] }
 0x26f   :  { %vm1868_vm8 = vcmp.lt.f32.partialorder %v6445_v28, 0.0  ;;  %v2089_v13 = vadd.f32 1.0, %v2025_v41  ;;  %v1771_v56 = vmul.f32 %v6446_v14, %v1451_v40  ;;  %v1357_v8 = vadd.f32 0.2548296, %v1293_v20  ;;  %v6450_v40 = vld [vmem:[#allocation124_spill] sm:$0xff] }
 0x270   :  { %v1166_v30 = vmul.f32 %v4074_v51, %v1102_v36  ;;  %vm1869_vm9 = vcmp.lt.f32.partialorder %v6447_v34, 0.0  ;;  %v4829_v37 = vmul.f32 %v2088_v2, %v6448_v12  ;;  %v1834_v38 = vsub.f32 1.0, %v1770_v6  ;;  %v6451_v41 = vld [vmem:[#allocation128_spill] sm:$0xff] }
 0x271   :  { %v1420_v54 = vmul.f32 %v6433_v39, %v1356_v16  ;;  %v1167_v18 = vmul.f32 %v4112_v32, %v1103_v29  ;;  %v4834_v52 = vmul.f32 %v2089_v13, %v6449_v1  ;;  %v1835_v62 = vsub.f32 1.0, %v1771_v56 }
 0x272   :  { %v1421_v49 = vmul.f32 %v4053_v15, %v1357_v8  ;;  %v1230_v17 = vadd.f32 -0.28449672, %v1166_v30  ;;  %v1962_v63 = vsub.f32 0.0, %v1834_v38  ;;  %v940_v31 = vmul.f32 1.0614054, %v6451_v41 }
 0x273   :  { %v1740_v36 = vmul.f32 %v6450_v40, %v1420_v54  ;;  %v1231_v20 = vadd.f32 -0.28449672, %v1167_v18  ;;  %v2236_v2 = vadd.f32 %v4834_v52, %v4829_v37  ;;  %v1963_v6 = vsub.f32 0.0, %v1835_v62  ;;  %v6452_v54 = vld [vmem:[#allocation99_spill] sm:$0xff] }
 0x274   :  { %v1741_v39 = vmul.f32 %v4069_v61, %v1421_v49  ;;  %v1294_v29 = vmul.f32 %v4074_v51, %v1230_v17  ;;  %v2026_v16 = vsel %vm1898_vm6, %v1962_v63, %v1834_v38  ;;  %v941_v14 = vmul.f32 1.0614054, %v4056_v35  ;;  %v6454_v38 = vld [vmem:[#allocation98_spill] sm:$0xff] }
 0x275   :  { %v1804_v13 = vsub.f32 1.0, %v1740_v36  ;;  %v1295_v15 = vmul.f32 %v4112_v32, %v1231_v20  ;;  %2237 = vadd.xlane.f32.xlu0 %v2236_v2  ;;  %v2027_v56 = vsel %vm1899_vm7, %v1963_v6, %v1835_v62  ;;  %v2090_v8 = vadd.f32 1.0, %v2026_v16 }
 0x276   :  { %v1805_v30 = vsub.f32 1.0, %v1741_v39  ;;  %v1358_v12 = vadd.f32 0.2548296, %v1294_v29  ;;  %vm1870_vm10 = vcmp.lt.f32.partialorder %v6452_v54, 0.0  ;;  %v2091_v61 = vadd.f32 1.0, %v2027_v56 }
 0x277   :  { %v1932_v18 = vsub.f32 0.0, %v1804_v13  ;;  %v1359_v1 = vadd.f32 0.2548296, %v1295_v15  ;;  %v1004_v49 = vadd.f32 -1.4531521, %v940_v31  ;;  %vm1871_vm11 = vcmp.lt.f32.partialorder %v6453_v21, 0.0 }
 0x278   :  { %v4852_v17 = vmul.f32 %v2090_v8, %v6454_v38  ;;  %v1933_v63 = vsub.f32 0.0, %v1805_v30  ;;  %v1422_v40 = vmul.f32 %v4074_v51, %v1358_v12  ;;  %v1005_v36 = vadd.f32 -1.4531521, %v941_v14  ;;  %v6459_v12 = vld [vmem:[#allocation138_spill] sm:$0xff]  ;;  %v6467_v21 = vld [vmem:[#allocation123_spill] sm:$0xff] }
 0x279   :  { %v4856_v62 = vmul.f32 %v2091_v61, %v6456_v7  ;;  %v1996_v20 = vsel %vm1868_vm8, %v1932_v18, %v1804_v13  ;;  %v1423_v2 = vmul.f32 %v4112_v32, %v1359_v1  ;;  %v1068_v6 = vmul.f32 %v6451_v41, %v1004_v49  ;;  %v6458_v13 = vld [vmem:[#allocation104_spill] sm:$0xff]  ;;  %v6461_v1 = vld [vmem:[#allocation143_spill] sm:$0xff] }
 0x27a   :  { %6455 = vst [vmem:[#allocation70_spill] sm:$0xff] %v4852_v17  ;;  %v1997_v31 = vsel %vm1869_vm9, %v1933_v63, %v1805_v30  ;;  %v2060_v39 = vadd.f32 1.0, %v1996_v20  ;;  %v1742_v29 = vmul.f32 %v4084_v27, %v1422_v40  ;;  %v1069_v16 = vmul.f32 %v4056_v35, %v1005_v36  ;;  %v6460_v30 = vld [vmem:[#allocation109_spill] sm:$0xff]  ;;  %v6462_v40 = vld [vmem:[#allocation147_spill] sm:$0xff] }
 0x27b   :  { %6457 = vst [vmem:[#allocation17_spill] sm:$0xff] %v4856_v62  ;;  %v2239_v51 = vadd.f32 %v4856_v62, %v4852_v17  ;;  %v2061_v15 = vadd.f32 1.0, %v1997_v31  ;;  %v1743_v14 = vmul.f32 %v4121_v3, %v1423_v2  ;;  %v1132_v28 = vadd.f32 1.4214138, %v1068_v6 }
 0x27c   :  { %v4870_v56 = vmul.f32 %v2060_v39, %v6458_v13  ;;  %v1806_v32 = vsub.f32 1.0, %v1742_v29  ;;  %v1133_v8 = vadd.f32 1.4214138, %v1069_v16  ;;  %v942_v34 = vmul.f32 1.0614054, %v6459_v12  ;;  %v6463_v16 = vld [vmem:[#allocation156_spill] sm:$0xff] }
 0x27d   :  { %2240 = vadd.xlane.f32.xlu1 %v2239_v51  ;;  %v4874_v61 = vmul.f32 %v2061_v15, %v6460_v30  ;;  %v1807_v27 = vsub.f32 1.0, %v1743_v14  ;;  %v1196_v18 = vmul.f32 %v6451_v41, %v1132_v28  ;;  %v943_v49 = vmul.f32 1.0614054, %v6461_v1 }
 0x27e   :  { %v1934_v38 = vsub.f32 0.0, %v1806_v32  ;;  %v1197_v3 = vmul.f32 %v4056_v35, %v1133_v8  ;;  %v1006_v63 = vadd.f32 -1.4531521, %v942_v34  ;;  %v912_v36 = vmul.f32 1.0614054, %v6462_v40 }
 0x27f   :  { %v2194_v7 = vadd.f32 %v4874_v61, %v4870_v56  ;;  %v1935_v20 = vsub.f32 0.0, %v1807_v27  ;;  %v1260_v2 = vadd.f32 -0.28449672, %v1196_v18  ;;  %v1007_v6 = vadd.f32 -1.4531521, %v943_v49 }
 0x280   :  { %v1998_v31 = vsel %vm1870_vm10, %v1934_v38, %v1806_v32  ;;  %v1261_v39 = vadd.f32 -0.28449672, %v1197_v3  ;;  %v1070_v29 = vmul.f32 %v6459_v12, %v1006_v63  ;;  %v913_v51 = vmul.f32 1.0614054, %v6463_v16  ;;  %v6464_v32 = vld [vmem:[#allocation114_spill] sm:$0xff]  ;;  %v6466_v63 = vld [vmem:[#allocation93_spill] sm:$0xff] }
 0x281   :  { %2195 = vadd.xlane.f32.xlu0 %v2194_v7  ;;  %v1999_v15 = vsel %vm1871_vm11, %v1935_v20, %v1807_v27  ;;  %v2062_v14 = vadd.f32 1.0, %v1998_v31  ;;  %v1324_v28 = vmul.f32 %v6451_v41, %v1260_v2  ;;  %v1071_v13 = vmul.f32 %v6461_v1, %v1007_v6  ;;  %v6469_v6 = vld [vmem:[#allocation97_spill] sm:$0xff] }
 0x282   :  { %v2063_v8 = vadd.f32 1.0, %v1999_v15  ;;  %v1325_v34 = vmul.f32 %v4056_v35, %v1261_v39  ;;  %v1134_v30 = vadd.f32 1.4214138, %v1070_v29  ;;  %v976_v54 = vadd.f32 -1.4531521, %v912_v36  ;;  %v6470_v29 = vld [vmem:[#allocation38_spill] sm:$0xff] }
 0x283   :  { %v4892_v18 = vmul.f32 %v2062_v14, %v6464_v32  ;;  %v1388_v49 = vadd.f32 0.2548296, %v1324_v28  ;;  %v1135_v38 = vadd.f32 1.4214138, %v1071_v13  ;;  %v977_v3 = vadd.f32 -1.4531521, %v913_v51 }
 0x284   :  { %vm1900_vm12 = vcmp.lt.f32.partialorder %v6466_v63, 0.0  ;;  %v4896_v27 = vmul.f32 %v2063_v8, %v6467_v21  ;;  %v1389_v7 = vadd.f32 0.2548296, %v1325_v34  ;;  %v1198_v20 = vmul.f32 %v6459_v12, %v1134_v30  ;;  %v6471_v8 = vld [vmem:[#allocation129_spill] sm:$0xff]  ;;  %v6479_v63 = vld [vmem:[#allocation120_spill] sm:$0xff] }
 0x285   :  { %6465 = vst [vmem:[#allocation81_spill] sm:$0xff] %v4892_v18  ;;  %v1040_v2 = vmul.f32 %v6462_v40, %v976_v54  ;;  %vm1901_vm13 = vcmp.lt.f32.partialorder %v6469_v6, 0.0  ;;  %v1452_v36 = vmul.f32 %v6451_v41, %v1388_v49  ;;  %v1199_v31 = vmul.f32 %v6461_v1, %v1135_v38  ;;  %v6472_v32 = vld [vmem:[#allocation169_spill] sm:$0xff] }
 0x286   :  { %6468 = vst [vmem:[#allocation19_spill] sm:$0xff] %v4896_v27  ;;  %v1041_v39 = vmul.f32 %v6463_v16, %v977_v3  ;;  %v914_v51 = vmul.f32 1.0614054, %v6470_v29  ;;  %v2197_v15 = vadd.f32 %v4896_v27, %v4892_v18  ;;  %v1453_v14 = vmul.f32 %v4056_v35, %v1389_v7  ;;  %v6473_v41 = vld [vmem:[#allocation133_spill] sm:$0xff]  ;;  %v6477_v18 = vld [vmem:[#allocation115_spill] sm:$0xff] }
 0x287   :  { %v1262_v28 = vadd.f32 -0.28449672, %v1198_v20  ;;  %v1104_v13 = vadd.f32 1.4214138, %v1040_v2  ;;  %v1772_v34 = vmul.f32 %v6471_v8, %v1452_v36  ;;  %v1263_v30 = vadd.f32 -0.28449672, %v1199_v31 }
 0x288   :  { %v1105_v54 = vadd.f32 1.4214138, %v1041_v39  ;;  %v915_v21 = vmul.f32 1.0614054, %v6472_v32  ;;  %2198 = vadd.xlane.f32.xlu1 %v2197_v15  ;;  %v1773_v49 = vmul.f32 %v6473_v41, %v1453_v14  ;;  %v978_v62 = vadd.f32 -1.4531521, %v914_v51 }
 0x289   :  { %v1326_v38 = vmul.f32 %v6459_v12, %v1262_v28  ;;  %v1168_v3 = vmul.f32 %v6462_v40, %v1104_v13  ;;  %v1836_v17 = vsub.f32 1.0, %v1772_v34  ;;  %v1327_v27 = vmul.f32 %v6461_v1, %v1263_v30  ;;  %v6474_v39 = vld [vmem:[#allocation107_spill] sm:$0xff]  ;;  %v6475_v13 = vld [vmem:[#allocation112_spill] sm:$0xff] }
 0x28a   :  { %v1169_v35 = vmul.f32 %v6463_v16, %v1105_v54  ;;  %v979_v7 = vadd.f32 -1.4531521, %v915_v21  ;;  %v1837_v20 = vsub.f32 1.0, %v1773_v49  ;;  %v1042_v31 = vmul.f32 %v6470_v29, %v978_v62 }
 0x28b   :  { %v1390_v2 = vadd.f32 0.2548296, %v1326_v38  ;;  %v1232_v36 = vadd.f32 -0.28449672, %v1168_v3  ;;  %vm1902_vm14 = vcmp.lt.f32.partialorder %v6474_v39, 0.0  ;;  %v1964_v15 = vsub.f32 0.0, %v1836_v17 }
 0x28c   :  { %v1391_v14 = vadd.f32 0.2548296, %v1327_v27  ;;  %v1233_v8 = vadd.f32 -0.28449672, %v1169_v35  ;;  %v1043_v28 = vmul.f32 %v6472_v32, %v979_v7  ;;  %vm1903_vm15 = vcmp.lt.f32.partialorder %v6475_v13, 0.0  ;;  %v6476_v3 = vld [vmem:[#allocation140_spill] sm:$0xff] }
 0x28d   :  { %v1965_v51 = vsub.f32 0.0, %v1837_v20  ;;  %v1454_v34 = vmul.f32 %v6459_v12, %v1390_v2  ;;  %v1296_v30 = vmul.f32 %v6462_v40, %v1232_v36  ;;  %v1106_v54 = vadd.f32 1.4214138, %v1042_v31  ;;  %v6478_v2 = vld [vmem:[#allocation146_spill] sm:$0xff] }
 0x28e   :  { %v2028_v21 = vsel %vm1900_vm12, %v1964_v15, %v1836_v17  ;;  %v1455_v62 = vmul.f32 %v6461_v1, %v1391_v14  ;;  %v1297_v41 = vmul.f32 %v6463_v16, %v1233_v8  ;;  %v1107_v49 = vadd.f32 1.4214138, %v1043_v28  ;;  %v6480_v1 = vld [vmem:[#allocation105_spill] sm:$0xff]  ;;  %v6481_v8 = vld [vmem:[#allocation110_spill] sm:$0xff] }
 0x28f   :  { %v2029_v27 = vsel %vm1901_vm13, %v1965_v51, %v1837_v20  ;;  %v2092_v38 = vadd.f32 1.0, %v2028_v21  ;;  %v1774_v35 = vmul.f32 %v6476_v3, %v1454_v34  ;;  %v1360_v7 = vadd.f32 0.2548296, %v1296_v30  ;;  %v6487_v39 = vld [vmem:[#allocation134_spill] sm:$0xff] }
 0x290   :  { %vm1872_vm0 = vcmp.lt.f32.partialorder %v6477_v18, 0.0  ;;  %v2093_v12 = vadd.f32 1.0, %v2029_v27  ;;  %v1775_v36 = vmul.f32 %v6478_v2, %v1455_v62  ;;  %v1361_v31 = vadd.f32 0.2548296, %v1297_v41  ;;  %v6482_v62 = vld [vmem:[#allocation149_spill] sm:$0xff]  ;;  %v6483_v27 = vld [vmem:[#allocation151_spill] sm:$0xff] }
 0x291   :  { %v1170_v17 = vmul.f32 %v6470_v29, %v1106_v54  ;;  %vm1873_vm1 = vcmp.lt.f32.partialorder %v6479_v63, 0.0  ;;  %v4933_v15 = vmul.f32 %v2092_v38, %v6480_v1  ;;  %v1838_v14 = vsub.f32 1.0, %v1774_v35  ;;  %v6489_v13 = vld [vmem:[#allocation126_spill] sm:$0xff] }
 0x292   :  { %v1424_v6 = vmul.f32 %v6462_v40, %v1360_v7  ;;  %v1171_v20 = vmul.f32 %v6472_v32, %v1107_v49  ;;  %v4938_v28 = vmul.f32 %v2093_v12, %v6481_v8  ;;  %v1839_v51 = vsub.f32 1.0, %v1775_v36  ;;  %v6484_v40 = vld [vmem:[#allocation35_spill] sm:$0xff]  ;;  %v6485_v36 = vld [vmem:[#allocation157_spill] sm:$0xff] }
 0x293   :  { %v1425_v34 = vmul.f32 %v6463_v16, %v1361_v31  ;;  %v1234_v30 = vadd.f32 -0.28449672, %v1170_v17  ;;  %v1966_v21 = vsub.f32 0.0, %v1838_v14  ;;  %v944_v3 = vmul.f32 1.0614054, %v6483_v27  ;;  %v6486_v8 = vld [vmem:[#allocation127_spill] sm:$0xff] }
 0x294   :  { %v1744_v54 = vmul.f32 %v6482_v62, %v1424_v6  ;;  %v1235_v41 = vadd.f32 -0.28449672, %v1171_v20  ;;  %v2242_v38 = vadd.f32 %v4938_v28, %v4933_v15  ;;  %v1967_v35 = vsub.f32 0.0, %v1839_v51 }
 0x295   :  { %v1745_v7 = vmul.f32 %v6484_v40, %v1425_v34  ;;  %v1298_v49 = vmul.f32 %v6470_v29, %v1234_v30  ;;  %v2030_v12 = vsel %vm1902_vm14, %v1966_v21, %v1838_v14  ;;  %v945_v31 = vmul.f32 1.0614054, %v6485_v36  ;;  %v6488_v14 = vld [vmem:[#allocation118_spill] sm:$0xff] }
 0x296   :  { %v1808_v2 = vsub.f32 1.0, %v1744_v54  ;;  %v1299_v16 = vmul.f32 %v6472_v32, %v1235_v41  ;;  %2243 = vadd.xlane.f32.xlu0 %v2242_v38  ;;  %v2031_v17 = vsel %vm1903_vm15, %v1967_v35, %v1839_v51  ;;  %v2094_v1 = vadd.f32 1.0, %v2030_v12 }
 0x297   :  { %v1809_v6 = vsub.f32 1.0, %v1745_v7  ;;  %v1362_v20 = vadd.f32 0.2548296, %v1298_v49  ;;  %vm1874_vm2 = vcmp.lt.f32.partialorder %v6486_v8, 0.0  ;;  %v2095_v34 = vadd.f32 1.0, %v2031_v17 }
 0x298   :  { %v1936_v62 = vsub.f32 0.0, %v1808_v2  ;;  %v1363_v30 = vadd.f32 0.2548296, %v1299_v16  ;;  %v1008_v40 = vadd.f32 -1.4531521, %v944_v3  ;;  %vm1875_vm3 = vcmp.lt.f32.partialorder %v6487_v39, 0.0 }
 0x299   :  { %v4956_v21 = vmul.f32 %v2094_v1, %v6488_v14  ;;  %v1937_v54 = vsub.f32 0.0, %v1809_v6  ;;  %v1426_v41 = vmul.f32 %v6470_v29, %v1362_v20  ;;  %v1009_v38 = vadd.f32 -1.4531521, %v945_v31  ;;  %v6491_v16 = vld [vmem:[#allocation162_spill] sm:$0xff]  ;;  %v6503_v39 = vld [vmem:[#allocation148_spill] sm:$0xff] }
 0x29a   :  { %v4960_v51 = vmul.f32 %v2095_v34, %v6489_v13  ;;  %v2000_v35 = vsel %vm1872_vm0, %v1936_v62, %v1808_v2  ;;  %v1427_v7 = vmul.f32 %v6472_v32, %v1363_v30  ;;  %v1072_v49 = vmul.f32 %v6483_v27, %v1008_v40  ;;  %v6492_v20 = vld [vmem:[#allocation46_spill] sm:$0xff]  ;;  %v6495_v40 = vld [vmem:[#allocation164_spill] sm:$0xff] }
 0x29b   :  { %v2001_v3 = vsel %vm1873_vm1, %v1937_v54, %v1809_v6  ;;  %v2064_v12 = vadd.f32 1.0, %v2000_v35  ;;  %v1746_v17 = vmul.f32 %v6491_v16, %v1426_v41  ;;  %v1073_v1 = vmul.f32 %v6485_v36, %v1009_v38  ;;  %v6493_v2 = vld [vmem:[#allocation130_spill] sm:$0xff]  ;;  %v6496_v6 = vld [vmem:[#allocation135_spill] sm:$0xff] }
 0x29c   :  { %6490 = vst [vmem:[#allocation21_spill] sm:$0xff] %v4960_v51  ;;  %v2245_v29 = vadd.f32 %v4960_v51, %v4956_v21  ;;  %v2065_v31 = vadd.f32 1.0, %v2001_v3  ;;  %v1747_v34 = vmul.f32 %v6492_v20, %v1427_v7  ;;  %v1136_v18 = vadd.f32 1.4214138, %v1072_v49  ;;  %v6498_v38 = vld [vmem:[#allocation50_spill] sm:$0xff]  ;;  %v6499_v3 = vld [vmem:[#allocation175_spill] sm:$0xff] }
 0x29d   :  { %v4974_v62 = vmul.f32 %v2064_v12, %v6493_v2  ;;  %v1810_v32 = vsub.f32 1.0, %v1746_v17  ;;  %v1137_v30 = vadd.f32 1.4214138, %v1073_v1  ;;  %v946_v63 = vmul.f32 1.0614054, %v6495_v40 }
 0x29e   :  { %2246 = vadd.xlane.f32.xlu1 %v2245_v29  ;;  %v4978_v14 = vmul.f32 %v2065_v31, %v6496_v6  ;;  %v1811_v54 = vsub.f32 1.0, %v1747_v34  ;;  %v1200_v41 = vmul.f32 %v6483_v27, %v1136_v18  ;;  %v947_v13 = vmul.f32 1.0614054, %v6498_v38 }
 0x29f   :  { %6494 = vst [vmem:[#allocation24_spill] sm:$0xff] %v4974_v62  ;;  %v1938_v35 = vsub.f32 0.0, %v1810_v32  ;;  %v1201_v7 = vmul.f32 %v6485_v36, %v1137_v30  ;;  %v1010_v49 = vadd.f32 -1.4531521, %v946_v63  ;;  %v916_v12 = vmul.f32 1.0614054, %v6499_v3 }
 0x2a0   :  { %6497 = vst [vmem:[#allocation56_spill] sm:$0xff] %v4978_v14  ;;  %v2200_v16 = vadd.f32 %v4978_v14, %v4974_v62  ;;  %v1939_v17 = vsub.f32 0.0, %v1811_v54  ;;  %v1264_v1 = vadd.f32 -0.28449672, %v1200_v41  ;;  %v1011_v29 = vadd.f32 -1.4531521, %v947_v13 }
 0x2a1   :  { %v2002_v31 = vsel %vm1874_vm2, %v1938_v35, %v1810_v32  ;;  %v1265_v20 = vadd.f32 -0.28449672, %v1201_v7  ;;  %v1074_v34 = vmul.f32 %v6495_v40, %v1010_v49  ;;  %v917_v18 = vmul.f32 1.0614054, %v4306_v46  ;;  %v6500_v32 = vld [vmem:[#allocation141_spill] sm:$0xff] }
 0x2a2   :  { %2201 = vadd.xlane.f32.xlu0 %v2200_v16  ;;  %v2003_v2 = vsel %vm1875_vm3, %v1939_v17, %v1811_v54  ;;  %v2066_v30 = vadd.f32 1.0, %v2002_v31  ;;  %v1328_v63 = vmul.f32 %v6483_v27, %v1264_v1  ;;  %v1075_v6 = vmul.f32 %v6498_v38, %v1011_v29  ;;  %v6502_v16 = vld [vmem:[#allocation119_spill] sm:$0xff]  ;;  %v6505_v31 = vld [vmem:[#allocation125_spill] sm:$0xff] }
 0x2a3   :  { %v2067_v14 = vadd.f32 1.0, %v2003_v2  ;;  %v1329_v41 = vmul.f32 %v6485_v36, %v1265_v20  ;;  %v1138_v13 = vadd.f32 1.4214138, %v1074_v34  ;;  %v980_v8 = vadd.f32 -1.4531521, %v916_v12 }
 0x2a4   :  { %v4996_v35 = vmul.f32 %v2066_v30, %v6500_v32  ;;  %v1392_v7 = vadd.f32 0.2548296, %v1328_v63  ;;  %v1139_v49 = vadd.f32 1.4214138, %v1075_v6  ;;  %v981_v62 = vadd.f32 -1.4531521, %v917_v18 }
 0x2a5   :  { %vm1904_vm4 = vcmp.lt.f32.partialorder %v6502_v16, 0.0  ;;  %v5000_v54 = vmul.f32 %v2067_v14, %v6503_v39  ;;  %v1393_v17 = vadd.f32 0.2548296, %v1329_v41  ;;  %v1202_v1 = vmul.f32 %v6495_v40, %v1138_v13  ;;  %v6506_v6 = vld [vmem:[#allocation154_spill] sm:$0xff]  ;;  %v6513_v16 = vld [vmem:[#allocation145_spill] sm:$0xff] }
 0x2a6   :  { %6501 = vst [vmem:[#allocation71_spill] sm:$0xff] %v4996_v35  ;;  %v1044_v29 = vmul.f32 %v6499_v3, %v980_v8  ;;  %vm1905_vm5 = vcmp.lt.f32.partialorder %v6505_v31, 0.0  ;;  %v1456_v12 = vmul.f32 %v6483_v27, %v1392_v7  ;;  %v1203_v20 = vmul.f32 %v6498_v38, %v1139_v49  ;;  %v6507_v27 = vld [vmem:[#allocation160_spill] sm:$0xff] }
 0x2a7   :  { %6504 = vst [vmem:[#allocation64_spill] sm:$0xff] %v5000_v54  ;;  %v1045_v34 = vmul.f32 %v4306_v46, %v981_v62  ;;  %v918_v18 = vmul.f32 1.0614054, %v4335_v44  ;;  %v2203_v2 = vadd.f32 %v5000_v54, %v4996_v35  ;;  %v1457_v14 = vmul.f32 %v6485_v36, %v1393_v17  ;;  %v6511_v35 = vld [vmem:[#allocation139_spill] sm:$0xff] }
 0x2a8   :  { %v1266_v30 = vadd.f32 -0.28449672, %v1202_v1  ;;  %v1108_v63 = vadd.f32 1.4214138, %v1044_v29  ;;  %v1776_v41 = vmul.f32 %v6506_v6, %v1456_v12  ;;  %v1267_v13 = vadd.f32 -0.28449672, %v1203_v20 }
 0x2a9   :  { %v1109_v8 = vadd.f32 1.4214138, %v1045_v34  ;;  %v919_v32 = vmul.f32 1.0614054, %v4364_v60  ;;  %2204 = vadd.xlane.f32.xlu1 %v2203_v2  ;;  %v1777_v7 = vmul.f32 %v6507_v27, %v1457_v14  ;;  %v982_v39 = vadd.f32 -1.4531521, %v918_v18 }
 0x2aa   :  { %v1330_v62 = vmul.f32 %v6495_v40, %v1266_v30  ;;  %v1172_v49 = vmul.f32 %v6499_v3, %v1108_v63  ;;  %v1840_v51 = vsub.f32 1.0, %v1776_v41  ;;  %v1331_v54 = vmul.f32 %v6498_v38, %v1267_v13  ;;  %v6508_v34 = vld [vmem:[#allocation132_spill] sm:$0xff]  ;;  %v6509_v63 = vld [vmem:[#allocation137_spill] sm:$0xff] }
 0x2ab   :  { %v1173_v36 = vmul.f32 %v4306_v46, %v1109_v8  ;;  %v983_v17 = vadd.f32 -1.4531521, %v919_v32  ;;  %v1841_v1 = vsub.f32 1.0, %v1777_v7  ;;  %v1046_v20 = vmul.f32 %v4335_v44, %v982_v39  ;;  %v6510_v39 = vld [vmem:[#allocation166_spill] sm:$0xff] }
 0x2ac   :  { %v1394_v29 = vadd.f32 0.2548296, %v1330_v62  ;;  %v1236_v12 = vadd.f32 -0.28449672, %v1172_v49  ;;  %vm1906_vm6 = vcmp.lt.f32.partialorder %v6508_v34, 0.0  ;;  %v1968_v2 = vsub.f32 0.0, %v1840_v51 }
 0x2ad   :  { %v1395_v14 = vadd.f32 0.2548296, %v1331_v54  ;;  %v1237_v6 = vadd.f32 -0.28449672, %v1173_v36  ;;  %v1047_v30 = vmul.f32 %v4364_v60, %v983_v17  ;;  %vm1907_vm7 = vcmp.lt.f32.partialorder %v6509_v63, 0.0  ;;  %v6521_v34 = vld [vmem:[#allocation161_spill] sm:$0xff] }
 0x2ae   :  { %v1969_v18 = vsub.f32 0.0, %v1841_v1  ;;  %v1458_v41 = vmul.f32 %v6495_v40, %v1394_v29  ;;  %v1300_v13 = vmul.f32 %v6499_v3, %v1236_v12  ;;  %v1110_v8 = vadd.f32 1.4214138, %v1046_v20  ;;  %v6512_v29 = vld [vmem:[#allocation173_spill] sm:$0xff]  ;;  %v6523_v63 = vld [vmem:[#allocation152_spill] sm:$0xff] }
 0x2af   :  { %v2032_v32 = vsel %vm1904_vm4, %v1968_v2, %v1840_v51  ;;  %v1459_v27 = vmul.f32 %v6498_v38, %v1395_v14  ;;  %v1301_v7 = vmul.f32 %v4306_v46, %v1237_v6  ;;  %v1111_v62 = vadd.f32 1.4214138, %v1047_v30  ;;  %v6514_v38 = vld [vmem:[#allocation131_spill] sm:$0xff]  ;;  %v6515_v6 = vld [vmem:[#allocation136_spill] sm:$0xff] }
 0x2b0   :  { %v2033_v54 = vsel %vm1905_vm5, %v1969_v18, %v1841_v1  ;;  %v2096_v49 = vadd.f32 1.0, %v2032_v32  ;;  %v1778_v36 = vmul.f32 %v6510_v39, %v1458_v41  ;;  %v1364_v17 = vadd.f32 0.2548296, %v1300_v13 }
 0x2b1   :  { %vm1876_vm8 = vcmp.lt.f32.partialorder %v6511_v35, 0.0  ;;  %v2097_v40 = vadd.f32 1.0, %v2033_v54  ;;  %v1779_v12 = vmul.f32 %v6512_v29, %v1459_v27  ;;  %v1365_v20 = vadd.f32 0.2548296, %v1301_v7  ;;  %v6516_v27 = vld [vmem:[#allocation51_spill] sm:$0xff]  ;;  %v6517_v54 = vld [vmem:[#allocation52_spill] sm:$0xff] }
 0x2b2   :  { %v1174_v51 = vmul.f32 %v4335_v44, %v1110_v8  ;;  %vm1877_vm9 = vcmp.lt.f32.partialorder %v6513_v16, 0.0  ;;  %v5037_v2 = vmul.f32 %v2096_v49, %v6514_v38  ;;  %v1842_v14 = vsub.f32 1.0, %v1778_v36 }
 0x2b3   :  { %v1428_v31 = vmul.f32 %v6499_v3, %v1364_v17  ;;  %v1175_v1 = vmul.f32 %v4364_v60, %v1111_v62  ;;  %v5042_v30 = vmul.f32 %v2097_v40, %v6515_v6  ;;  %v1843_v18 = vsub.f32 1.0, %v1779_v12  ;;  %v6518_v3 = vld [vmem:[#allocation181_spill] sm:$0xff] }
 0x2b4   :  { %v1429_v41 = vmul.f32 %v4306_v46, %v1365_v20  ;;  %v1238_v13 = vadd.f32 -0.28449672, %v1174_v51  ;;  %v1970_v32 = vsub.f32 0.0, %v1842_v14  ;;  %v948_v39 = vmul.f32 1.0614054, %v6517_v54  ;;  %v6519_v12 = vld [vmem:[#allocation53_spill] sm:$0xff] }
 0x2b5   :  { %v1748_v8 = vmul.f32 %v6516_v27, %v1428_v31  ;;  %v1239_v7 = vadd.f32 -0.28449672, %v1175_v1  ;;  %v2248_v49 = vadd.f32 %v5042_v30, %v5037_v2  ;;  %v1971_v36 = vsub.f32 0.0, %v1843_v18  ;;  %v6520_v6 = vld [vmem:[#allocation153_spill] sm:$0xff] }
 0x2b6   :  { %v1749_v17 = vmul.f32 %v6518_v3, %v1429_v41  ;;  %v1302_v62 = vmul.f32 %v4335_v44, %v1238_v13  ;;  %v2034_v40 = vsel %vm1906_vm6, %v1970_v32, %v1842_v14  ;;  %v949_v20 = vmul.f32 1.0614054, %v6519_v12  ;;  %v6522_v14 = vld [vmem:[#allocation142_spill] sm:$0xff] }
 0x2b7   :  { %v1812_v29 = vsub.f32 1.0, %v1748_v8  ;;  %v1303_v46 = vmul.f32 %v4364_v60, %v1239_v7  ;;  %2249 = vadd.xlane.f32.xlu0 %v2248_v49  ;;  %v2035_v51 = vsel %vm1907_vm7, %v1971_v36, %v1843_v18  ;;  %v2098_v38 = vadd.f32 1.0, %v2034_v40 }
 0x2b8   :  { %v1813_v31 = vsub.f32 1.0, %v1749_v17  ;;  %v1366_v1 = vadd.f32 0.2548296, %v1302_v62  ;;  %vm1878_vm10 = vcmp.lt.f32.partialorder %v6520_v6, 0.0  ;;  %v2099_v41 = vadd.f32 1.0, %v2035_v51 }
 0x2b9   :  { %v1940_v27 = vsub.f32 0.0, %v1812_v29  ;;  %v1367_v13 = vadd.f32 0.2548296, %v1303_v46  ;;  %v1012_v3 = vadd.f32 -1.4531521, %v948_v39  ;;  %vm1879_vm11 = vcmp.lt.f32.partialorder %v6521_v34, 0.0 }
 0x2ba   :  { %v5060_v32 = vmul.f32 %v2098_v38, %v6522_v14  ;;  %v1941_v8 = vsub.f32 0.0, %v1813_v31  ;;  %v1430_v7 = vmul.f32 %v4335_v44, %v1366_v1  ;;  %v1013_v49 = vadd.f32 -1.4531521, %v949_v20  ;;  %v6524_v46 = vld [vmem:[#allocation186_spill] sm:$0xff]  ;;  %v6525_v1 = vld [vmem:[#allocation32_spill] sm:$0xff] }
 0x2bb   :  { %v5064_v18 = vmul.f32 %v2099_v41, %v6523_v63  ;;  %v2004_v36 = vsel %vm1876_vm8, %v1940_v27, %v1812_v29  ;;  %v1431_v17 = vmul.f32 %v4364_v60, %v1367_v13  ;;  %v1076_v62 = vmul.f32 %v6517_v54, %v1012_v3  ;;  %v6526_v29 = vld [vmem:[#allocation155_spill] sm:$0xff]  ;;  %v6528_v3 = vld [vmem:[#allocation188_spill] sm:$0xff] }
 0x2bc   :  { %v2005_v39 = vsel %vm1877_vm9, %v1941_v8, %v1813_v31  ;;  %v2068_v40 = vadd.f32 1.0, %v2004_v36  ;;  %v1750_v51 = vmul.f32 %v6524_v46, %v1430_v7  ;;  %v1077_v38 = vmul.f32 %v6519_v12, %v1013_v49  ;;  %v6529_v31 = vld [vmem:[#allocation158_spill] sm:$0xff]  ;;  %v6535_v34 = vld [vmem:[#allocation172_spill] sm:$0xff] }
 0x2bd   :  { %v2251_v44 = vadd.f32 %v5064_v18, %v5060_v32  ;;  %v2069_v20 = vadd.f32 1.0, %v2005_v39  ;;  %v1751_v41 = vmul.f32 %v6525_v1, %v1431_v17  ;;  %v1140_v35 = vadd.f32 1.4214138, %v1076_v62  ;;  %v6531_v49 = vld [vmem:[#allocation194_spill] sm:$0xff] }
 0x2be   :  { %v5078_v27 = vmul.f32 %v2068_v40, %v6526_v29  ;;  %v1814_v60 = vsub.f32 1.0, %v1750_v51  ;;  %v1141_v13 = vadd.f32 1.4214138, %v1077_v38  ;;  %v950_v16 = vmul.f32 1.0614054, %v6528_v3 }
 0x2bf   :  { %2252 = vadd.xlane.f32.xlu1 %v2251_v44  ;;  %v5082_v14 = vmul.f32 %v2069_v20, %v6529_v31  ;;  %v1815_v8 = vsub.f32 1.0, %v1751_v41  ;;  %v1204_v7 = vmul.f32 %v6517_v54, %v1140_v35  ;;  %v951_v63 = vmul.f32 1.0614054, %v6531_v49 }
 0x2c0   :  { %6527 = vst [vmem:[#allocation77_spill] sm:$0xff] %v5078_v27  ;;  %v1942_v36 = vsub.f32 0.0, %v1814_v60  ;;  %v1205_v17 = vmul.f32 %v6519_v12, %v1141_v13  ;;  %v1014_v62 = vadd.f32 -1.4531521, %v950_v16  ;;  %v920_v39 = vmul.f32 1.0614054, %v4382_v45 }
 0x2c1   :  { %6530 = vst [vmem:[#allocation40_spill] sm:$0xff] %v5082_v14  ;;  %v2206_v40 = vadd.f32 %v5082_v14, %v5078_v27  ;;  %v1943_v46 = vsub.f32 0.0, %v1815_v8  ;;  %v1268_v51 = vadd.f32 -0.28449672, %v1204_v7  ;;  %v1015_v38 = vadd.f32 -1.4531521, %v951_v63 }
 0x2c2   :  { %v2006_v44 = vsel %vm1878_vm10, %v1942_v36, %v1814_v60  ;;  %v1269_v20 = vadd.f32 -0.28449672, %v1205_v17  ;;  %v1078_v1 = vmul.f32 %v6528_v3, %v1014_v62  ;;  %v921_v41 = vmul.f32 1.0614054, %v4408_v42  ;;  %v6532_v60 = vld [vmem:[#allocation168_spill] sm:$0xff] }
 0x2c3   :  { %2207 = vadd.xlane.f32.xlu0 %v2206_v40  ;;  %v2007_v35 = vsel %vm1879_vm11, %v1943_v46, %v1815_v8  ;;  %v2070_v29 = vadd.f32 1.0, %v2006_v44  ;;  %v1332_v13 = vmul.f32 %v6517_v54, %v1268_v51  ;;  %v1079_v16 = vmul.f32 %v6531_v49, %v1015_v38  ;;  %v6534_v40 = vld [vmem:[#allocation144_spill] sm:$0xff]  ;;  %v6537_v44 = vld [vmem:[#allocation150_spill] sm:$0xff] }
 0x2c4   :  { %v2071_v31 = vadd.f32 1.0, %v2007_v35  ;;  %v1333_v7 = vmul.f32 %v6519_v12, %v1269_v20  ;;  %v1142_v63 = vadd.f32 1.4214138, %v1078_v1  ;;  %v984_v6 = vadd.f32 -1.4531521, %v920_v39 }
 0x2c5   :  { %v5100_v36 = vmul.f32 %v2070_v29, %v6532_v60  ;;  %v1396_v17 = vadd.f32 0.2548296, %v1332_v13  ;;  %v1143_v62 = vadd.f32 1.4214138, %v1079_v16  ;;  %v985_v14 = vadd.f32 -1.4531521, %v921_v41 }
 0x2c6   :  { %vm1908_vm12 = vcmp.lt.f32.partialorder %v6534_v40, 0.0  ;;  %v5104_v8 = vmul.f32 %v2071_v31, %v6535_v34  ;;  %v1397_v46 = vadd.f32 0.2548296, %v1333_v7  ;;  %v1206_v51 = vmul.f32 %v6528_v3, %v1142_v63  ;;  %v6538_v31 = vld [vmem:[#allocation178_spill] sm:$0xff] }
 0x2c7   :  { %6533 = vst [vmem:[#allocation49_spill] sm:$0xff] %v5100_v36  ;;  %v1048_v38 = vmul.f32 %v4382_v45, %v984_v6  ;;  %vm1909_vm13 = vcmp.lt.f32.partialorder %v6537_v44, 0.0  ;;  %v1460_v39 = vmul.f32 %v6517_v54, %v1396_v17  ;;  %v1207_v20 = vmul.f32 %v6531_v49, %v1143_v62  ;;  %v6539_v54 = vld [vmem:[#allocation183_spill] sm:$0xff]  ;;  %v6545_v40 = vld [vmem:[#allocation174_spill] sm:$0xff] }
 0x2c8   :  { %6536 = vst [vmem:[#allocation33_spill] sm:$0xff] %v5104_v8  ;;  %v1049_v1 = vmul.f32 %v4408_v42, %v985_v14  ;;  %v922_v41 = vmul.f32 1.0614054, %v4436_v33  ;;  %v2209_v35 = vadd.f32 %v5104_v8, %v5100_v36  ;;  %v1461_v29 = vmul.f32 %v6519_v12, %v1397_v46  ;;  %v6543_v36 = vld [vmem:[#allocation167_spill] sm:$0xff] }
 0x2c9   :  { %v1270_v13 = vadd.f32 -0.28449672, %v1206_v51  ;;  %v1112_v16 = vadd.f32 1.4214138, %v1048_v38  ;;  %v1780_v7 = vmul.f32 %v6538_v31, %v1460_v39  ;;  %v1271_v63 = vadd.f32 -0.28449672, %v1207_v20 }
 0x2ca   :  { %v1113_v6 = vadd.f32 1.4214138, %v1049_v1  ;;  %v923_v60 = vmul.f32 1.0614054, %v4458_v5  ;;  %2210 = vadd.xlane.f32.xlu1 %v2209_v35  ;;  %v1781_v17 = vmul.f32 %v6539_v54, %v1461_v29  ;;  %v986_v34 = vadd.f32 -1.4531521, %v922_v41 }
 0x2cb   :  { %v1334_v14 = vmul.f32 %v6528_v3, %v1270_v13  ;;  %v1176_v62 = vmul.f32 %v4382_v45, %v1112_v16  ;;  %v1844_v27 = vsub.f32 1.0, %v1780_v7  ;;  %v1335_v8 = vmul.f32 %v6531_v49, %v1271_v63  ;;  %v6540_v1 = vld [vmem:[#allocation159_spill] sm:$0xff] }
 0x2cc   :  { %v1177_v12 = vmul.f32 %v4408_v42, %v1113_v6  ;;  %v987_v46 = vadd.f32 -1.4531521, %v923_v60  ;;  %v1845_v51 = vsub.f32 1.0, %v1781_v17  ;;  %v1050_v20 = vmul.f32 %v4436_v33, %v986_v34  ;;  %v6541_v16 = vld [vmem:[#allocation163_spill] sm:$0xff]  ;;  %v6542_v34 = vld [vmem:[#allocation190_spill] sm:$0xff] }
 0x2cd   :  { %v1398_v38 = vadd.f32 0.2548296, %v1334_v14  ;;  %v1240_v39 = vadd.f32 -0.28449672, %v1176_v62  ;;  %vm1910_vm14 = vcmp.lt.f32.partialorder %v6540_v1, 0.0  ;;  %v1972_v35 = vsub.f32 0.0, %v1844_v27 }
 0x2ce   :  { %v1399_v29 = vadd.f32 0.2548296, %v1335_v8  ;;  %v1241_v31 = vadd.f32 -0.28449672, %v1177_v12  ;;  %v1051_v13 = vmul.f32 %v4458_v5, %v987_v46  ;;  %vm1911_vm15 = vcmp.lt.f32.partialorder %v6541_v16, 0.0  ;;  %v6549_v1 = vld [vmem:[#allocation184_spill] sm:$0xff] }
 0x2cf   :  { %v1973_v41 = vsub.f32 0.0, %v1845_v51  ;;  %v1462_v7 = vmul.f32 %v6528_v3, %v1398_v38  ;;  %v1304_v63 = vmul.f32 %v4382_v45, %v1240_v39  ;;  %v1114_v6 = vadd.f32 1.4214138, %v1050_v20  ;;  %v6544_v38 = vld [vmem:[#allocation196_spill] sm:$0xff]  ;;  %v6551_v16 = vld [vmem:[#allocation177_spill] sm:$0xff] }
 0x2d0   :  { %v2036_v60 = vsel %vm1908_vm12, %v1972_v35, %v1844_v27  ;;  %v1463_v54 = vmul.f32 %v6531_v49, %v1399_v29  ;;  %v1305_v17 = vmul.f32 %v4408_v42, %v1241_v31  ;;  %v1115_v14 = vadd.f32 1.4214138, %v1051_v13  ;;  %v6546_v49 = vld [vmem:[#allocation36_spill] sm:$0xff]  ;;  %v6547_v31 = vld [vmem:[#allocation165_spill] sm:$0xff] }
 0x2d1   :  { %v2037_v8 = vsel %vm1909_vm13, %v1973_v41, %v1845_v51  ;;  %v2100_v62 = vadd.f32 1.0, %v2036_v60  ;;  %v1782_v12 = vmul.f32 %v6542_v34, %v1462_v7  ;;  %v1368_v46 = vadd.f32 0.2548296, %v1304_v63 }
 0x2d2   :  { %vm1880_vm0 = vcmp.lt.f32.partialorder %v6543_v36, 0.0  ;;  %v2101_v3 = vadd.f32 1.0, %v2037_v8  ;;  %v1783_v39 = vmul.f32 %v6544_v38, %v1463_v54  ;;  %v1369_v20 = vadd.f32 0.2548296, %v1305_v17 }
 0x2d3   :  { %v1178_v27 = vmul.f32 %v4436_v33, %v1114_v6  ;;  %vm1881_vm1 = vcmp.lt.f32.partialorder %v6545_v40, 0.0  ;;  %v5141_v35 = vmul.f32 %v2100_v62, %v6546_v49  ;;  %v1846_v29 = vsub.f32 1.0, %v1782_v12 }
 0x2d4   :  { %v1432_v44 = vmul.f32 %v4382_v45, %v1368_v46  ;;  %v1179_v51 = vmul.f32 %v4458_v5, %v1115_v14  ;;  %v5146_v13 = vmul.f32 %v2101_v3, %v6547_v31  ;;  %v1847_v41 = vsub.f32 1.0, %v1783_v39 }
 0x2d5   :  { %v1433_v7 = vmul.f32 %v4408_v42, %v1369_v20  ;;  %v1242_v63 = vadd.f32 -0.28449672, %v1178_v27  ;;  %v1974_v60 = vsub.f32 0.0, %v1846_v29  ;;  %v952_v17 = vmul.f32 1.0614054, %v4396_v58  ;;  %v6548_v20 = vld [vmem:[#allocation179_spill] sm:$0xff] }
 0x2d6   :  { %v1752_v6 = vmul.f32 %v4387_v0, %v1432_v44  ;;  %v1243_v54 = vadd.f32 -0.28449672, %v1179_v51  ;;  %v2254_v8 = vadd.f32 %v5146_v13, %v5141_v35  ;;  %v1975_v62 = vsub.f32 0.0, %v1847_v41 }
 0x2d7   :  { %v1753_v45 = vmul.f32 %v4426_v22, %v1433_v7  ;;  %v1306_v14 = vmul.f32 %v4436_v33, %v1242_v63  ;;  %v2038_v34 = vsel %vm1910_vm14, %v1974_v60, %v1846_v29  ;;  %v953_v46 = vmul.f32 1.0614054, %v4413_v50  ;;  %v6550_v29 = vld [vmem:[#allocation171_spill] sm:$0xff] }
 0x2d8   :  { %v1816_v12 = vsub.f32 1.0, %v1752_v6  ;;  %v1307_v42 = vmul.f32 %v4458_v5, %v1243_v54  ;;  %2255 = vadd.xlane.f32.xlu0 %v2254_v8  ;;  %v2039_v0 = vsel %vm1911_vm15, %v1975_v62, %v1847_v41  ;;  %v2102_v3 = vadd.f32 1.0, %v2038_v34  ;;  %v6552_v34 = vld [vmem:[#allocation39_spill] sm:$0xff] }
 0x2d9   :  { %v1817_v38 = vsub.f32 1.0, %v1753_v45  ;;  %v1370_v39 = vadd.f32 0.2548296, %v1306_v14  ;;  %vm1882_vm2 = vcmp.lt.f32.partialorder %v6548_v20, 0.0  ;;  %v2103_v22 = vadd.f32 1.0, %v2039_v0 }
 0x2da   :  { %v1944_v27 = vsub.f32 0.0, %v1816_v12  ;;  %v1371_v49 = vadd.f32 0.2548296, %v1307_v42  ;;  %v1016_v44 = vadd.f32 -1.4531521, %v952_v17  ;;  %vm1883_vm3 = vcmp.lt.f32.partialorder %v6549_v1, 0.0 }
 0x2db   :  { %v5164_v51 = vmul.f32 %v2102_v3, %v6550_v29  ;;  %v1945_v31 = vsub.f32 0.0, %v1817_v38  ;;  %v1434_v7 = vmul.f32 %v4436_v33, %v1370_v39  ;;  %v1017_v63 = vadd.f32 -1.4531521, %v953_v46  ;;  %v6554_v3 = vld [vmem:[#allocation208_spill] sm:$0xff]  ;;  %v6560_v1 = vld [vmem:[#allocation199_spill] sm:$0xff] }
 0x2dc   :  { %v5168_v41 = vmul.f32 %v2103_v22, %v6551_v16  ;;  %v2008_v60 = vsel %vm1880_vm0, %v1944_v27, %v1816_v12  ;;  %v1435_v6 = vmul.f32 %v4458_v5, %v1371_v49  ;;  %v1080_v54 = vmul.f32 %v4396_v58, %v1016_v44  ;;  %v6553_v12 = vld [vmem:[#allocation182_spill] sm:$0xff]  ;;  %v6556_v27 = vld [vmem:[#allocation44_spill] sm:$0xff] }
 0x2dd   :  { %v2009_v17 = vsel %vm1881_vm1, %v1945_v31, %v1817_v38  ;;  %v2072_v8 = vadd.f32 1.0, %v2008_v60  ;;  %v1754_v62 = vmul.f32 %v4447_v53, %v1434_v7  ;;  %v1081_v45 = vmul.f32 %v4413_v50, %v1017_v63  ;;  %v6555_v38 = vld [vmem:[#allocation187_spill] sm:$0xff]  ;;  %v6557_v7 = vld [vmem:[#allocation20_spill] sm:$0xff] }
 0x2de   :  { %v2257_v33 = vadd.f32 %v5168_v41, %v5164_v51  ;;  %v2073_v14 = vadd.f32 1.0, %v2009_v17  ;;  %v1755_v42 = vmul.f32 %v6552_v34, %v1435_v6  ;;  %v1144_v36 = vadd.f32 1.4214138, %v1080_v54 }
 0x2df   :  { %v5182_v46 = vmul.f32 %v2072_v8, %v6553_v12  ;;  %v1818_v5 = vsub.f32 1.0, %v1754_v62  ;;  %v1145_v0 = vadd.f32 1.4214138, %v1081_v45  ;;  %v954_v40 = vmul.f32 1.0614054, %v6554_v3 }
 0x2e0   :  { %2258 = vadd.xlane.f32.xlu1 %v2257_v33  ;;  %v5186_v39 = vmul.f32 %v2073_v14, %v6555_v38  ;;  %v1819_v53 = vsub.f32 1.0, %v1755_v42  ;;  %v1208_v22 = vmul.f32 %v4396_v58, %v1144_v36  ;;  %v955_v49 = vmul.f32 1.0614054, %v6556_v27 }
 0x2e1   :  { %v1946_v44 = vsub.f32 0.0, %v1818_v5  ;;  %v1209_v29 = vmul.f32 %v4413_v50, %v1145_v0  ;;  %v1018_v31 = vadd.f32 -1.4531521, %v954_v40  ;;  %v924_v63 = vmul.f32 1.0614054, %v6557_v7 }
 0x2e2   :  { %v2212_v16 = vadd.f32 %v5186_v39, %v5182_v46  ;;  %v1947_v60 = vsub.f32 0.0, %v1819_v53  ;;  %v1272_v6 = vadd.f32 -0.28449672, %v1208_v22  ;;  %v1019_v54 = vadd.f32 -1.4531521, %v955_v49 }
 0x2e3   :  { %v2010_v17 = vsel %vm1882_vm2, %v1946_v44, %v1818_v5  ;;  %v1273_v8 = vadd.f32 -0.28449672, %v1209_v29  ;;  %v1082_v62 = vmul.f32 %v6554_v3, %v1018_v31  ;;  %v925_v45 = vmul.f32 1.0614054, %v4535_v48  ;;  %v6558_v5 = vld [vmem:[#allocation43_spill] sm:$0xff]  ;;  %v6559_v44 = vld [vmem:[#allocation170_spill] sm:$0xff] }
 0x2e4   :  { %2213 = vadd.xlane.f32.xlu0 %v2212_v16  ;;  %v2011_v33 = vsel %vm1883_vm3, %v1947_v60, %v1819_v53  ;;  %v2074_v14 = vadd.f32 1.0, %v2010_v17  ;;  %v1336_v34 = vmul.f32 %v4396_v58, %v1272_v6  ;;  %v1083_v42 = vmul.f32 %v6556_v27, %v1019_v54  ;;  %v6561_v60 = vld [vmem:[#allocation176_spill] sm:$0xff] }
 0x2e5   :  { %v2075_v36 = vadd.f32 1.0, %v2011_v33  ;;  %v1337_v12 = vmul.f32 %v4413_v50, %v1273_v8  ;;  %v1146_v0 = vadd.f32 1.4214138, %v1082_v62  ;;  %v988_v20 = vadd.f32 -1.4531521, %v924_v63 }
 0x2e6   :  { %v5204_v40 = vmul.f32 %v2074_v14, %v6558_v5  ;;  %v1400_v38 = vadd.f32 0.2548296, %v1336_v34  ;;  %v1147_v22 = vadd.f32 1.4214138, %v1083_v42  ;;  %v989_v49 = vadd.f32 -1.4531521, %v925_v45 }
 0x2e7   :  { %vm1912_vm4 = vcmp.lt.f32.partialorder %v6559_v44, 0.0  ;;  %v5208_v53 = vmul.f32 %v2075_v36, %v6560_v1  ;;  %v1401_v29 = vadd.f32 0.2548296, %v1337_v12  ;;  %v1210_v31 = vmul.f32 %v6554_v3, %v1146_v0  ;;  %v6562_v14 = vld [vmem:[#allocation198_spill] sm:$0xff] }
 0x2e8   :  { %v1052_v16 = vmul.f32 %v6557_v7, %v988_v20  ;;  %vm1913_vm5 = vcmp.lt.f32.partialorder %v6561_v60, 0.0  ;;  %v1464_v63 = vmul.f32 %v4396_v58, %v1400_v38  ;;  %v1211_v6 = vmul.f32 %v6556_v27, %v1147_v22  ;;  %v6563_v58 = vld [vmem:[#allocation204_spill] sm:$0xff] }
 0x2e9   :  { %v1053_v54 = vmul.f32 %v4535_v48, %v989_v49  ;;  %v926_v17 = vmul.f32 1.0614054, %v4576_v9  ;;  %v2215_v8 = vadd.f32 %v5208_v53, %v5204_v40  ;;  %v1465_v62 = vmul.f32 %v4413_v50, %v1401_v29 }
 0x2ea   :  { %v1274_v45 = vadd.f32 -0.28449672, %v1210_v31  ;;  %v1116_v33 = vadd.f32 1.4214138, %v1052_v16  ;;  %v1784_v34 = vmul.f32 %v6562_v14, %v1464_v63  ;;  %v1275_v42 = vadd.f32 -0.28449672, %v1211_v6 }
 0x2eb   :  { %v1117_v36 = vadd.f32 1.4214138, %v1053_v54  ;;  %v927_v12 = vmul.f32 1.0614054, %v4588_v57  ;;  %2216 = vadd.xlane.f32.xlu1 %v2215_v8  ;;  %v1785_v0 = vmul.f32 %v6563_v58, %v1465_v62  ;;  %v990_v38 = vadd.f32 -1.4531521, %v926_v17 }
 0x2ec   :  { %v1338_v20 = vmul.f32 %v6554_v3, %v1274_v45  ;;  %v1180_v5 = vmul.f32 %v6557_v7, %v1116_v33  ;;  %v1848_v22 = vsub.f32 1.0, %v1784_v34  ;;  %v1339_v49 = vmul.f32 %v6556_v27, %v1275_v42  ;;  %v6564_v6 = vld [vmem:[#allocation180_spill] sm:$0xff] }
 0x2ed   :  { %v1181_v50 = vmul.f32 %v4535_v48, %v1117_v36  ;;  %v991_v1 = vadd.f32 -1.4531521, %v927_v12  ;;  %v1849_v29 = vsub.f32 1.0, %v1785_v0  ;;  %v1054_v63 = vmul.f32 %v4576_v9, %v990_v38  ;;  %v6565_v33 = vld [vmem:[#allocation192_spill] sm:$0xff]  ;;  %v6566_v38 = vld [vmem:[#allocation209_spill] sm:$0xff] }
 0x2ee   :  { %v1402_v31 = vadd.f32 0.2548296, %v1338_v20  ;;  %v1244_v16 = vadd.f32 -0.28449672, %v1180_v5  ;;  %vm1914_vm6 = vcmp.lt.f32.partialorder %v6564_v6, 0.0  ;;  %v1976_v54 = vsub.f32 0.0, %v1848_v22 }
 0x2ef   :  { %v1403_v8 = vadd.f32 0.2548296, %v1339_v49  ;;  %v1245_v62 = vadd.f32 -0.28449672, %v1181_v50  ;;  %v1055_v45 = vmul.f32 %v4588_v57, %v991_v1  ;;  %vm1915_vm7 = vcmp.lt.f32.partialorder %v6565_v33, 0.0  ;;  %v6567_v1 = vld [vmem:[#allocation193_spill] sm:$0xff] }
 0x2f0   :  { %v1977_v17 = vsub.f32 0.0, %v1849_v29  ;;  %v1466_v14 = vmul.f32 %v6554_v3, %v1402_v31  ;;  %v1308_v34 = vmul.f32 %v6557_v7, %v1244_v16  ;;  %v1118_v42 = vadd.f32 1.4214138, %v1054_v63  ;;  %v6568_v31 = vld [vmem:[#allocation211_spill] sm:$0xff]  ;;  %v6576_v6 = vld [vmem:[#allocation197_spill] sm:$0xff] }
 0x2f1   :  { %v2040_v36 = vsel %vm1912_vm4, %v1976_v54, %v1848_v22  ;;  %v1467_v12 = vmul.f32 %v6556_v27, %v1403_v8  ;;  %v1309_v58 = vmul.f32 %v4535_v48, %v1245_v62  ;;  %v1119_v0 = vadd.f32 1.4214138, %v1055_v45  ;;  %v6569_v22 = vld [vmem:[#allocation205_spill] sm:$0xff]  ;;  %v6571_v62 = vld [vmem:[#allocation191_spill] sm:$0xff] }
 0x2f2   :  { %v2041_v20 = vsel %vm1913_vm5, %v1977_v17, %v1849_v29  ;;  %v2104_v5 = vadd.f32 1.0, %v2040_v36  ;;  %v1786_v49 = vmul.f32 %v6566_v38, %v1466_v14  ;;  %v1372_v50 = vadd.f32 0.2548296, %v1308_v34  ;;  %v6570_v27 = vld [vmem:[#allocation185_spill] sm:$0xff] }
 0x2f3   :  { %vm1884_vm8 = vcmp.lt.f32.partialorder %v6567_v1, 0.0  ;;  %v2105_v3 = vadd.f32 1.0, %v2041_v20  ;;  %v1787_v16 = vmul.f32 %v6568_v31, %v1467_v12  ;;  %v1373_v63 = vadd.f32 0.2548296, %v1309_v58  ;;  %v6572_v12 = vld [vmem:[#allocation214_spill] sm:$0xff]  ;;  %v6573_v20 = vld [vmem:[#allocation215_spill] sm:$0xff] }
 0x2f4   :  { %v1182_v44 = vmul.f32 %v4576_v9, %v1118_v42  ;;  %vm1885_vm9 = vcmp.lt.f32.partialorder %v6569_v22, 0.0  ;;  %v5245_v54 = vmul.f32 %v2104_v5, %v6570_v27  ;;  %v1850_v8 = vsub.f32 1.0, %v1786_v49  ;;  %v6574_v31 = vld [vmem:[#allocation60_spill] sm:$0xff]  ;;  %v6582_v22 = vld [vmem:[#allocation54_spill] sm:$0xff] }
 0x2f5   :  { %v1436_v60 = vmul.f32 %v6557_v7, %v1372_v50  ;;  %v1183_v29 = vmul.f32 %v4588_v57, %v1119_v0  ;;  %v5250_v45 = vmul.f32 %v2105_v3, %v6571_v62  ;;  %v1851_v17 = vsub.f32 1.0, %v1787_v16 }
 0x2f6   :  { %v1437_v14 = vmul.f32 %v4535_v48, %v1373_v63  ;;  %v1246_v34 = vadd.f32 -0.28449672, %v1182_v44  ;;  %v1978_v36 = vsub.f32 0.0, %v1850_v8  ;;  %v956_v38 = vmul.f32 1.0614054, %v6573_v20 }
 0x2f7   :  { %v1756_v42 = vmul.f32 %v6572_v12, %v1436_v60  ;;  %v1247_v58 = vadd.f32 -0.28449672, %v1183_v29  ;;  %v2260_v5 = vadd.f32 %v5250_v45, %v5245_v54  ;;  %v1979_v49 = vsub.f32 0.0, %v1851_v17  ;;  %v6575_v29 = vld [vmem:[#allocation210_spill] sm:$0xff] }
 0x2f8   :  { %v1757_v7 = vmul.f32 %v4549_v10, %v1437_v14  ;;  %v1310_v0 = vmul.f32 %v4576_v9, %v1246_v34  ;;  %v2042_v50 = vsel %vm1914_vm6, %v1978_v36, %v1850_v8  ;;  %v957_v16 = vmul.f32 1.0614054, %v6574_v31 }
 0x2f9   :  { %v1820_v3 = vsub.f32 1.0, %v1756_v42  ;;  %v1311_v48 = vmul.f32 %v4588_v57, %v1247_v58  ;;  %2261 = vadd.xlane.f32.xlu0 %v2260_v5  ;;  %v2043_v63 = vsel %vm1915_vm7, %v1979_v49, %v1851_v17  ;;  %v2106_v44 = vadd.f32 1.0, %v2042_v50  ;;  %v6577_v58 = vld [vmem:[#allocation200_spill] sm:$0xff] }
 0x2fa   :  { %v1821_v27 = vsub.f32 1.0, %v1757_v7  ;;  %v1374_v60 = vadd.f32 0.2548296, %v1310_v0  ;;  %vm1886_vm10 = vcmp.lt.f32.partialorder %v6575_v29, 0.0  ;;  %v2107_v10 = vadd.f32 1.0, %v2043_v63  ;;  %v6579_v0 = vld [vmem:[#allocation61_spill] sm:$0xff] }
 0x2fb   :  { %v1948_v62 = vsub.f32 0.0, %v1820_v3  ;;  %v1375_v14 = vadd.f32 0.2548296, %v1311_v48  ;;  %v1020_v34 = vadd.f32 -1.4531521, %v956_v38  ;;  %v5267_v8 = vmul.f32 %v2106_v44, %v6576_v6  ;;  %v6580_v44 = vld [vmem:[#allocation201_spill] sm:$0xff] }
 0x2fc   :  { %v1949_v36 = vsub.f32 0.0, %v1821_v27  ;;  %v1438_v12 = vmul.f32 %v4576_v9, %v1374_v60  ;;  %v1021_v42 = vadd.f32 -1.4531521, %v957_v16  ;;  %v5271_v5 = vmul.f32 %v2107_v10, %v6577_v58  ;;  %v2178_v9 = vpop.xlane.xlu0 %2177  ;;  %v6589_v29 = vld [vmem:[#allocation18_spill] sm:$0xff] }
 0x2fd   :  { %v2012_v33 = vsel %vm1884_vm8, %v1948_v62, %v1820_v3  ;;  %v1439_v17 = vmul.f32 %v4588_v57, %v1375_v14  ;;  %v1084_v49 = vmul.f32 %v6573_v20, %v1020_v34  ;;  %v6583_v62 = vld [vmem:[#allocation13_spill] sm:$0xff] }
 0x2fe   :  { %6578 = vst [vmem:[#allocation55_spill] sm:$0xff] %v5271_v5  ;;  %v2013_v38 = vsel %vm1885_vm9, %v1949_v36, %v1821_v27  ;;  %v2076_v7 = vadd.f32 1.0, %v2012_v33  ;;  %v1758_v50 = vmul.f32 %v6579_v0, %v1438_v12  ;;  %v1085_v48 = vmul.f32 %v6574_v31, %v1021_v42  ;;  %v6585_v12 = vld [vmem:[#allocation216_spill] sm:$0xff] }
 0x2ff   :  { %v2263_v16 = vadd.f32 %v5271_v5, %v5267_v8  ;;  %v2077_v63 = vadd.f32 1.0, %v2013_v38  ;;  %v1759_v1 = vmul.f32 %v4741_v25, %v1439_v17  ;;  %v1148_v3 = vadd.f32 1.4214138, %v1084_v49  ;;  %v6601_v5 = vld [vmem:[#allocation31_spill] sm:$0xff] }
 0x300   :  { %v5285_v57 = vmul.f32 %v2076_v7, %v6580_v44  ;;  %v1822_v60 = vsub.f32 1.0, %v1758_v50  ;;  %v1149_v10 = vadd.f32 1.4214138, %v1085_v48  ;;  %v958_v27 = vmul.f32 1.0614054, %v6582_v22  ;;  %v6586_v7 = vld [vmem:[#allocation28_spill] sm:$0xff] }
 0x301   :  { %2264 = vadd.xlane.f32.xlu1 %v2263_v16  ;;  %v5289_v14 = vmul.f32 %v2077_v63, %v6583_v62  ;;  %v1823_v34 = vsub.f32 1.0, %v1759_v1  ;;  %v1212_v6 = vmul.f32 %v6573_v20, %v1148_v3  ;;  %v959_v36 = vmul.f32 1.0614054, %v4615_v59  ;;  %v2226_v63 = vpop.xlane.xlu0 %2225 }
 0x302   :  { %6581 = vst [vmem:[#allocation85_spill] sm:$0xff] %v5285_v57  ;;  %vm1887_vm11 = vcmp.lt.f32.partialorder %v6585_v12, 0.0  ;;  %v1950_v25 = vsub.f32 0.0, %v1822_v60  ;;  %v1213_v42 = vmul.f32 %v6574_v31, %v1149_v10  ;;  %v1022_v58 = vadd.f32 -1.4531521, %v958_v27  ;;  %v6587_v27 = vld [vmem:[#allocation212_spill] sm:$0xff] }
 0x303   :  { %6584 = vst [vmem:[#allocation91_spill] sm:$0xff] %v5289_v14  ;;  %v2218_v33 = vadd.f32 %v5289_v14, %v5285_v57  ;;  %v1951_v17 = vsub.f32 0.0, %v1823_v34  ;;  %v1276_v49 = vadd.f32 -0.28449672, %v1212_v6  ;;  %v1023_v38 = vadd.f32 -1.4531521, %v959_v36 }
 0x304   :  { %v1726_v0 = vmul.f32 1.442695, %v6586_v7  ;;  %v2014_v50 = vsel %vm1886_vm10, %v1950_v25, %v1822_v60  ;;  %v1277_v48 = vadd.f32 -0.28449672, %v1213_v42  ;;  %v1086_v16 = vmul.f32 %v6582_v22, %v1022_v58  ;;  %v6588_v7 = vld [vmem:[#allocation45_spill] sm:$0xff]  ;;  %v5309_v58 = vpop.xlane.xlu1 %2228  ;;  %v6600_v14 = vld [vmem:[#allocation203_spill] sm:$0xff] }
 0x305   :  { %2219 = vadd.xlane.f32.xlu0 %v2218_v33  ;;  %v2015_v1 = vsel %vm1887_vm11, %v1951_v17, %v1823_v34  ;;  %v2078_v3 = vadd.f32 1.0, %v2014_v50  ;;  %v1340_v44 = vmul.f32 %v6573_v20, %v1276_v49  ;;  %v1087_v10 = vmul.f32 %v4615_v59, %v1023_v38 }
 0x306   :  { %v479_v62 = vmul.f32 0.5, %v6587_v27  ;;  %v2079_v6 = vadd.f32 1.0, %v2015_v1  ;;  %v1341_v36 = vmul.f32 %v6574_v31, %v1277_v48  ;;  %v1150_v12 = vadd.f32 1.4214138, %v1086_v16  ;;  %v2181_v1 = vpop.xlane.xlu0 %2180  ;;  %v6593_v27 = vld [vmem:[#allocation22_spill] sm:$0xff] }
 0x307   :  { %3210 = vpow2.f32 %v6588_v7  ;;  %v5307_v60 = vmul.f32 %v2078_v3, %v6589_v29  ;;  %v1404_v25 = vadd.f32 0.2548296, %v1340_v44  ;;  %v1151_v42 = vadd.f32 1.4214138, %v1087_v10  ;;  %v6592_v3 = vld [vmem:[#allocation37_spill] sm:$0xff] }
 0x308   :  { %3212 = vpow2.f32 %v1726_v0  ;;  %v5311_v34 = vmul.f32 %v2079_v6, %v479_v62  ;;  %v1405_v33 = vadd.f32 0.2548296, %v1341_v36  ;;  %v1214_v17 = vmul.f32 %v6582_v22, %v1150_v12  ;;  %v2184_v0 = vpop.xlane.xlu1 %2183  ;;  %v6594_v7 = vld [vmem:[#allocation189_spill] sm:$0xff] }
 0x309   :  { %6590 = vst [vmem:[#allocation27_spill] sm:$0xff] %v5307_v60  ;;  %v1468_v49 = vmul.f32 %v6573_v20, %v1404_v25  ;;  %v1215_v38 = vmul.f32 %v4615_v59, %v1151_v42  ;;  %v2273_v12 = vmul.f32 0.00390625, %v2178_v9  ;;  %v508_v29 = vmul.f32 0.5, %v6594_v7  ;;  %v6598_v7 = vld [vmem:[#allocation15_spill] sm:$0xff] }
 0x30a   :  { %6591 = vst [vmem:[#allocation87_spill] sm:$0xff] %v5311_v34  ;;  %v2221_v50 = vadd.f32 %v5311_v34, %v5307_v60  ;;  %v1469_v48 = vmul.f32 %v6574_v31, %v1405_v33  ;;  %v1278_v16 = vadd.f32 -0.28449672, %v1214_v17  ;;  %v6595_v31 = vld [vmem:[#allocation195_spill] sm:$0xff]  ;;  %v510_v57 = vmul.f32 0.5, %v6600_v14 }
 0x30b   :  { %v1788_v44 = vmul.f32 %v6592_v3, %v1468_v49  ;;  %v1279_v10 = vadd.f32 -0.28449672, %v1215_v38  ;;  %vm1916_vm12 = vcmp.lt.f32.partialorder %v6595_v31, 0.0  ;;  %v2289_v49 = vmul.f32 0.00390625, %v2226_v63  ;;  %v6596_v38 = vld [vmem:[#allocation202_spill] sm:$0xff] }
 0x30c   :  { %2222 = vadd.xlane.f32.xlu1 %v2221_v50  ;;  %v1789_v62 = vmul.f32 %v6593_v27, %v1469_v48  ;;  %v1342_v6 = vmul.f32 %v6582_v22, %v1278_v16  ;;  %v509_v3 = vmul.f32 0.5, %v6596_v38  ;;  %v6597_v50 = vld [vmem:[#allocation206_spill] sm:$0xff] }
 0x30d   :  { %v1852_v36 = vsub.f32 1.0, %v1788_v44  ;;  %v1343_v20 = vmul.f32 %v4615_v59, %v1279_v10  ;;  %vm1917_vm13 = vcmp.lt.f32.partialorder %v6597_v50, 0.0  ;;  %v2232_v44 = vpop.xlane.xlu0 %2231  ;;  %v2275_v50 = vmul.f32 0.00390625, %v2184_v0 }
 0x30e   :  { %v1853_v25 = vsub.f32 1.0, %v1789_v62  ;;  %v1406_v42 = vadd.f32 0.2548296, %v1342_v6  ;;  %v5330_v62 = vsub.f32 %v6598_v7, %v2273_v12  ;;  %v6599_v6 = vld [vmem:[#allocation23_spill] sm:$0xff] }
 0x30f   :  { %v1980_v33 = vsub.f32 0.0, %v1852_v36  ;;  %v1407_v17 = vadd.f32 0.2548296, %v1343_v20  ;;  %v5333_v31 = vsub.f32 %v6599_v6, %v2273_v12  ;;  %v2187_v20 = vpop.xlane.xlu1 %2186  ;;  %v2274_v12 = vmul.f32 0.00390625, %v2181_v1 }
 0x310   :  { %v1981_v48 = vsub.f32 0.0, %v1853_v25  ;;  %v1470_v16 = vmul.f32 %v6582_v22, %v1406_v42  ;;  %v2369_v0 = vmul.f32 %v5330_v62, %v5330_v62 }
 0x311   :  { %v3211_v27 = vpop.eup %3210  ;;  %v2044_v10 = vsel %vm1916_vm12, %v1980_v33, %v1852_v36  ;;  %v1471_v9 = vmul.f32 %v4615_v59, %v1407_v17  ;;  %v5337_v36 = vsub.f32 %v6601_v5, %v2289_v49  ;;  %v6602_v17 = vld [vmem:[#allocation14_spill] sm:$0xff]  ;;  %v2370_v14 = vmul.f32 %v5333_v31, %v5333_v31  ;;  %v6604_v5 = vld [vmem:[#allocation217_spill] sm:$0xff] }
 0x312   :  { %v3213_v63 = vpop.eup %3212  ;;  %v2045_v34 = vsel %vm1917_vm13, %v1981_v48, %v1853_v25  ;;  %v2108_v38 = vadd.f32 1.0, %v2044_v10  ;;  %v1790_v60 = vmul.f32 %v3211_v27, %v1470_v16  ;;  %v5342_v7 = vsub.f32 %v6602_v17, %v2289_v49  ;;  %v2190_v49 = vpop.xlane.xlu0 %2189 }
 0x313   :  { %v2109_v22 = vadd.f32 1.0, %v2045_v34  ;;  %v1791_v42 = vmul.f32 %v3213_v63, %v1471_v9  ;;  %v6603_v34 = vld [vmem:[#allocation207_spill] sm:$0xff]  ;;  %vm1919_vm15 = vcmp.lt.f32.partialorder %v6604_v5, 0.0  ;;  %v5358_v48 = vsub.f32 %v4646_v23, %v2275_v50  ;;  %v2235_v27 = vpop.xlane.xlu1 %2234  ;;  %v6605_v9 = vld [vmem:[#allocation16_spill] sm:$0xff] }
 0x314   :  { %v5339_v59 = vmul.f32 %v2108_v38, %v508_v29  ;;  %v1854_v33 = vsub.f32 1.0, %v1790_v60  ;;  %vm1918_vm14 = vcmp.lt.f32.partialorder %v6603_v34, 0.0  ;;  %v5353_v60 = vsub.f32 %v4642_v24, %v2275_v50  ;;  %v6606_v38 = vld [vmem:[#allocation41_spill] sm:$0xff] }
 0x315   :  { %v5344_v6 = vmul.f32 %v2109_v22, %v509_v3  ;;  %v1855_v25 = vsub.f32 1.0, %v1791_v42  ;;  %v2291_v16 = vmul.f32 0.00390625, %v2232_v44  ;;  %v5361_v63 = vsub.f32 %v6605_v9, %v2274_v12  ;;  %v6607_v50 = vld [vmem:[#allocation213_spill] sm:$0xff] }
 0x316   :  { %v1982_v29 = vsub.f32 0.0, %v1854_v33  ;;  %v5364_v22 = vsub.f32 %v6606_v38, %v2274_v12  ;;  %v2401_v24 = vmul.f32 %v5337_v36, %v5337_v36  ;;  %v2433_v34 = vadd.f32 %v2370_v14, %v2369_v0  ;;  %v2238_v14 = vpop.xlane.xlu0 %2237 }
 0x317   :  { %v2266_v1 = vadd.f32 %v5344_v6, %v5339_v59  ;;  %v1983_v3 = vsub.f32 0.0, %v1855_v25  ;;  %v2402_v23 = vmul.f32 %v5342_v7, %v5342_v7  ;;  %v511_v44 = vmul.f32 0.5, %v6607_v50 }
 0x318   :  { %v2046_v10 = vsel %vm1918_vm14, %v1982_v29, %v1854_v33  ;;  %v2290_v33 = vmul.f32 0.00390625, %v5309_v58  ;;  %v5375_v12 = vsub.f32 %v4723_v26, %v2291_v16  ;;  %v2277_v38 = vmul.f32 0.00390625, %v2190_v49 }
 0x319   :  { %2267 = vadd.xlane.f32.xlu0 %v2266_v1  ;;  %v2047_v42 = vsel %vm1919_vm15, %v1983_v3, %v1855_v25  ;;  %v2110_v17 = vadd.f32 1.0, %v2046_v10  ;;  %v2371_v25 = vmul.f32 %v5361_v63, %v5361_v63  ;;  %v2372_v0 = vmul.f32 %v5364_v22, %v5364_v22  ;;  %v2193_v3 = vpop.xlane.xlu1 %2192  ;;  %v6608_v10 = vld [vmem:[#allocation68_spill] sm:$0xff] }
 0x31a   :  { %v2111_v5 = vadd.f32 1.0, %v2047_v42  ;;  %v5384_v1 = vsub.f32 %v4728_v11, %v2291_v16  ;;  %v2481_v58 = vadd.f32 %v2402_v23, %v2401_v24  ;;  %v2374_v26 = vmul.f32 %v5358_v48, %v5358_v48 }
 0x31b   :  { %v5372_v29 = vmul.f32 %v2110_v17, %v510_v57  ;;  %v2373_v57 = vmul.f32 %v5353_v60, %v5353_v60  ;;  %v5393_v42 = vsub.f32 %v6608_v10, %v2290_v33  ;;  %v6609_v17 = vld [vmem:[#allocation69_spill] sm:$0xff]  ;;  %v2292_v11 = vmul.f32 0.00390625, %v2235_v27  ;;  %v6610_v27 = vld [vmem:[#allocation47_spill] sm:$0xff] }
 0x31c   :  { %v5377_v9 = vmul.f32 %v2111_v5, %v511_v44  ;;  %v5396_v50 = vsub.f32 %v6609_v17, %v2290_v33  ;;  %v5399_v16 = vsub.f32 %v4766_v55, %v2277_v38  ;;  %v2436_v24 = vadd.f32 %v2372_v0, %v2371_v25 }
 0x31d   :  { %2434 = vadd.xlane.f32.xlu0 %v2433_v34  ;;  %v2276_v34 = vmul.f32 0.00390625, %v2187_v20  ;;  %v2293_v23 = vmul.f32 0.00390625, %v2238_v14  ;;  %v5402_v44 = vsub.f32 %v4770_v47, %v2277_v38  ;;  %v2439_v5 = vadd.f32 %v2374_v26, %v2373_v57  ;;  %v2196_v38 = vpop.xlane.xlu0 %2195  ;;  %v2241_v25 = vpop.xlane.xlu1 %2240 }
 0x31e   :  { %v2269_v49 = vadd.f32 %v5377_v9, %v5372_v29  ;;  %v2405_v10 = vmul.f32 %v5375_v12, %v5375_v12  ;;  %v2406_v33 = vmul.f32 %v5384_v1, %v5384_v1  ;;  %v2403_v55 = vmul.f32 %v5393_v42, %v5393_v42 }
 0x31f   :  { %v5409_v20 = vsub.f32 %v4680_v19, %v2276_v34  ;;  %v2404_v47 = vmul.f32 %v5396_v50, %v5396_v50  ;;  %v5419_v0 = vsub.f32 %v4748_v43, %v2292_v11  ;;  %v2278_v14 = vmul.f32 0.00390625, %v2193_v3 }
 0x320   :  { %2270 = vadd.xlane.f32.xlu1 %v2269_v49  ;;  %v5412_v49 = vsub.f32 %v6610_v27, %v2276_v34  ;;  %v5425_v19 = vsub.f32 %v4834_v52, %v2293_v23  ;;  %v2487_v57 = vadd.f32 %v2406_v33, %v2405_v10  ;;  %v2279_v26 = vmul.f32 0.00390625, %v2196_v38  ;;  %v6613_v10 = vld [vmem:[#allocation25_spill] sm:$0xff] }
 0x321   :  { %2482 = vadd.xlane.f32.xlu0 %v2481_v58  ;;  %v5422_v58 = vsub.f32 %v4829_v37, %v2293_v23  ;;  %v2377_v17 = vmul.f32 %v5399_v16, %v5399_v16  ;;  %v2378_v34 = vmul.f32 %v5402_v44, %v5402_v44  ;;  %v5432_v43 = vsub.f32 %v4752_v4, %v2292_v11 }
 0x322   :  { %6612 = vst [vmem:[#allocation92_spill] sm:$0xff] %v5425_v19  ;;  %v2375_v37 = vmul.f32 %v5409_v20, %v5409_v20  ;;  %v2376_v52 = vmul.f32 %v5412_v49, %v5412_v49  ;;  %v2294_v3 = vmul.f32 0.00390625, %v2241_v25  ;;  %v5443_v33 = vsub.f32 %v6613_v10, %v2278_v14 }
 0x323   :  { %6611 = vst [vmem:[#allocation30_spill] sm:$0xff] %v5422_v58  ;;  %v2409_v23 = vmul.f32 %v5422_v58, %v5422_v58  ;;  %v5446_v4 = vsub.f32 %v4870_v56, %v2279_v26  ;;  %v5449_v11 = vsub.f32 %v4874_v61, %v2279_v26  ;;  %v2445_v27 = vadd.f32 %v2378_v34, %v2377_v17  ;;  %v6615_v58 = vld [vmem:[#allocation70_spill] sm:$0xff] }
 0x324   :  { %2437 = vadd.xlane.f32.xlu1 %v2436_v24  ;;  %v2484_v24 = vadd.f32 %v2404_v47, %v2403_v55  ;;  %v2199_v55 = vpop.xlane.xlu1 %2198  ;;  %v6614_v47 = vld [vmem:[#allocation29_spill] sm:$0xff]  ;;  %v2442_v25 = vadd.f32 %v2376_v52, %v2375_v37  ;;  %v2408_v10 = vmul.f32 %v5432_v43, %v5432_v43  ;;  %v5459_v56 = vsub.f32 %v6615_v58, %v2294_v3 }
 0x325   :  { %2440 = vadd.xlane.f32.xlu0 %v2439_v5  ;;  %v2410_v5 = vmul.f32 %v5425_v19, %v5425_v19  ;;  %v5452_v38 = vsub.f32 %v6614_v47, %v2278_v14  ;;  %v2407_v19 = vmul.f32 %v5419_v0, %v5419_v0  ;;  %v2280_v61 = vmul.f32 0.00390625, %v2199_v55  ;;  %v6618_v52 = vld [vmem:[#allocation17_spill] sm:$0xff] }
 0x326   :  { %v2381_v34 = vmul.f32 %v5446_v4, %v5446_v4  ;;  %v2382_v37 = vmul.f32 %v5449_v11, %v5449_v11  ;;  %v5472_v47 = vsub.f32 %v6618_v52, %v2294_v3  ;;  %v2411_v52 = vmul.f32 %v5459_v56, %v5459_v56 }
 0x327   :  { %v2493_v26 = vadd.f32 %v2410_v5, %v2409_v23  ;;  %v2490_v58 = vadd.f32 %v2408_v10, %v2407_v19  ;;  %v2379_v23 = vmul.f32 %v5443_v33, %v5443_v33  ;;  %v6619_v5 = vld [vmem:[#allocation81_spill] sm:$0xff] }
 0x328   :  { %2485 = vadd.xlane.f32.xlu1 %v2484_v24  ;;  %v2244_v24 = vpop.xlane.xlu0 %2243 }
 0x329   :  { %2488 = vadd.xlane.f32.xlu0 %v2487_v57  ;;  %v2295_v57 = vmul.f32 0.00390625, %v2244_v24  ;;  %v2451_v24 = vadd.f32 %v2382_v37, %v2381_v34 }
 0x32b   :  { %v5462_v17 = vsub.f32 %v4933_v15, %v2295_v57  ;;  %v5465_v14 = vsub.f32 %v4938_v28, %v2295_v57  ;;  %v2380_v15 = vmul.f32 %v5452_v38, %v5452_v38  ;;  %v6620_v28 = vld [vmem:[#allocation19_spill] sm:$0xff] }
 0x32c   :  { %2443 = vadd.xlane.f32.xlu1 %v2442_v25  ;;  %v5482_v55 = vsub.f32 %v6620_v28, %v2280_v61  ;;  %v2247_v25 = vpop.xlane.xlu1 %2246 }
 0x32d   :  { %2446 = vadd.xlane.f32.xlu0 %v2445_v27  ;;  %6616 = vst [vmem:[#allocation96_spill] sm:$0xff] %v5462_v17  ;;  %6617 = vst [vmem:[#allocation59_spill] sm:$0xff] %v5465_v14  ;;  %v5479_v27 = vsub.f32 %v6619_v5, %v2280_v61  ;;  %v2413_v3 = vmul.f32 %v5462_v17, %v5462_v17  ;;  %v2414_v19 = vmul.f32 %v5465_v14, %v5465_v14  ;;  %v6623_v14 = vld [vmem:[#allocation24_spill] sm:$0xff] }
 0x32e   :  { %v2296_v10 = vmul.f32 0.00390625, %v2247_v25  ;;  %v2448_v57 = vadd.f32 %v2380_v15, %v2379_v23  ;;  %v2384_v37 = vmul.f32 %v5482_v55, %v5482_v55  ;;  %v6621_v23 = vld [vmem:[#allocation21_spill] sm:$0xff] }
 0x32f   :  { %v2202_v61 = vpop.xlane.xlu0 %2201  ;;  %v2383_v34 = vmul.f32 %v5479_v27, %v5479_v27 }
 0x330   :  { %2491 = vadd.xlane.f32.xlu1 %v2490_v58  ;;  %v2412_v58 = vmul.f32 %v5472_v47, %v5472_v47  ;;  %v5497_v5 = vsub.f32 %v4956_v21, %v2296_v10  ;;  %v5500_v15 = vsub.f32 %v6621_v23, %v2296_v10  ;;  %v2281_v28 = vmul.f32 0.00390625, %v2202_v61 }
 0x331   :  { %2494 = vadd.xlane.f32.xlu0 %v2493_v26  ;;  %v2499_v26 = vadd.f32 %v2414_v19, %v2413_v3  ;;  %v2454_v3 = vadd.f32 %v2384_v37, %v2383_v34  ;;  %v6626_v37 = vld [vmem:[#allocation64_spill] sm:$0xff] }
 0x332   :  { %6622 = vst [vmem:[#allocation65_spill] sm:$0xff] %v5500_v15  ;;  %v2496_v25 = vadd.f32 %v2412_v58, %v2411_v52  ;;  %v5503_v17 = vsub.f32 %v6623_v14, %v2281_v28  ;;  %v2415_v10 = vmul.f32 %v5497_v5, %v5497_v5  ;;  %v2416_v52 = vmul.f32 %v5500_v15, %v5500_v15 }
 0x334   :  { %2449 = vadd.xlane.f32.xlu1 %v2448_v57  ;;  %v6624_v57 = vld [vmem:[#allocation56_spill] sm:$0xff]  ;;  %v2385_v19 = vmul.f32 %v5503_v17, %v5503_v17  ;;  %v2502_v23 = vadd.f32 %v2416_v52, %v2415_v10 }
 0x335   :  { %2452 = vadd.xlane.f32.xlu0 %v2451_v24  ;;  %v5506_v24 = vsub.f32 %v6624_v57, %v2281_v28 }
 0x336   :  { %v2205_v14 = vpop.xlane.xlu1 %2204 }
 0x337   :  { %v2386_v21 = vmul.f32 %v5506_v24, %v5506_v24  ;;  %v2282_v61 = vmul.f32 0.00390625, %v2205_v14 }
 0x338   :  { %2497 = vadd.xlane.f32.xlu1 %v2496_v25 }
 0x339   :  { %2500 = vadd.xlane.f32.xlu0 %v2499_v26  ;;  %v2457_v58 = vadd.f32 %v2386_v21, %v2385_v19  ;;  %v6625_v26 = vld [vmem:[#allocation71_spill] sm:$0xff]  ;;  %v5520_v28 = vsub.f32 %v6626_v37, %v2282_v61 }
 0x33a   :  { %v5517_v34 = vsub.f32 %v6625_v26, %v2282_v61 }
 0x33b   :  { %v2388_v57 = vmul.f32 %v5520_v28, %v5520_v28 }
 0x33c   :  { %2455 = vadd.xlane.f32.xlu1 %v2454_v3  ;;  %v2387_v25 = vmul.f32 %v5517_v34, %v5517_v34 }
 0x33d   :  { %2458 = vadd.xlane.f32.xlu0 %v2457_v58 }
 0x33e   :  { %v2460_v15 = vadd.f32 %v2388_v57, %v2387_v25  ;;  %v6629_v57 = vld [vmem:[#allocation77_spill] sm:$0xff] }
 0x340   :  { %2503 = vadd.xlane.f32.xlu1 %v2502_v23 }
 0x344   :  { %2461 = vadd.xlane.f32.xlu1 %v2460_v15  ;;  %v2250_v3 = vpop.xlane.xlu0 %2249 }
 0x345   :  { %v2297_v19 = vmul.f32 0.00390625, %v2250_v3 }
 0x347   :  { %v5527_v21 = vsub.f32 %v5037_v2, %v2297_v19  ;;  %v5530_v10 = vsub.f32 %v5042_v30, %v2297_v19  ;;  %v6630_v19 = vld [vmem:[#allocation40_spill] sm:$0xff] }
 0x349   :  { %v2417_v52 = vmul.f32 %v5527_v21, %v5527_v21  ;;  %v2418_v14 = vmul.f32 %v5530_v10, %v5530_v10 }
 0x34b   :  { %v2505_v61 = vadd.f32 %v2418_v14, %v2417_v52 }
 0x34c   :  { %v2253_v58 = vpop.xlane.xlu1 %2252 }
 0x34d   :  { %v2298_v23 = vmul.f32 0.00390625, %v2253_v58  ;;  %2506 = vadd.xlane.f32.xlu0 %v2505_v61 }
 0x34f   :  { %v5537_v15 = vsub.f32 %v5060_v32, %v2298_v23  ;;  %v5540_v26 = vsub.f32 %v5064_v18, %v2298_v23 }
 0x350   :  { %v2208_v2 = vpop.xlane.xlu0 %2207 }
 0x351   :  { %6627 = vst [vmem:[#allocation26_spill] sm:$0xff] %v5537_v15  ;;  %6628 = vst [vmem:[#allocation34_spill] sm:$0xff] %v5540_v26  ;;  %v2283_v37 = vmul.f32 0.00390625, %v2208_v2  ;;  %v2419_v30 = vmul.f32 %v5537_v15, %v5537_v15  ;;  %v2420_v25 = vmul.f32 %v5540_v26, %v5540_v26  ;;  %v6631_v2 = vld [vmem:[#allocation49_spill] sm:$0xff] }
 0x353   :  { %v5547_v3 = vsub.f32 %v6629_v57, %v2283_v37  ;;  %v5550_v52 = vsub.f32 %v6630_v19, %v2283_v37  ;;  %v2508_v14 = vadd.f32 %v2420_v25, %v2419_v30  ;;  %v6632_v57 = vld [vmem:[#allocation33_spill] sm:$0xff] }
 0x355   :  { %v2389_v32 = vmul.f32 %v5547_v3, %v5547_v3  ;;  %v2390_v18 = vmul.f32 %v5550_v52, %v5550_v52  ;;  %2509 = vadd.xlane.f32.xlu1 %v2508_v14 }
 0x357   :  { %v2211_v58 = vpop.xlane.xlu1 %2210  ;;  %v2463_v61 = vadd.f32 %v2390_v18, %v2389_v32 }
 0x358   :  { %v2284_v23 = vmul.f32 0.00390625, %v2211_v58 }
 0x359   :  { %2464 = vadd.xlane.f32.xlu0 %v2463_v61 }
 0x35a   :  { %v5557_v26 = vsub.f32 %v6631_v2, %v2284_v23  ;;  %v5560_v15 = vsub.f32 %v6632_v57, %v2284_v23 }
 0x35c   :  { %v2391_v37 = vmul.f32 %v5557_v26, %v5557_v26  ;;  %v2392_v30 = vmul.f32 %v5560_v15, %v5560_v15 }
 0x35e   :  { %v2466_v25 = vadd.f32 %v2392_v30, %v2391_v37 }
 0x360   :  { %2467 = vadd.xlane.f32.xlu1 %v2466_v25 }
 0x365   :  { %v2256_v19 = vpop.xlane.xlu0 %2255 }
 0x366   :  { %v2299_v14 = vmul.f32 0.00390625, %v2256_v19 }
 0x368   :  { %v5567_v32 = vsub.f32 %v5141_v35, %v2299_v14  ;;  %v5570_v18 = vsub.f32 %v5146_v13, %v2299_v14 }
 0x36a   :  { %v2421_v58 = vmul.f32 %v5567_v32, %v5567_v32  ;;  %v2422_v61 = vmul.f32 %v5570_v18, %v5570_v18 }
 0x36c   :  { %v2511_v2 = vadd.f32 %v2422_v61, %v2421_v58 }
 0x36d   :  { %v2259_v23 = vpop.xlane.xlu1 %2258 }
 0x36e   :  { %v2300_v57 = vmul.f32 0.00390625, %v2259_v23  ;;  %2512 = vadd.xlane.f32.xlu0 %v2511_v2 }
 0x370   :  { %v5577_v37 = vsub.f32 %v5164_v51, %v2300_v57  ;;  %v5580_v30 = vsub.f32 %v5168_v41, %v2300_v57 }
 0x371   :  { %v2214_v35 = vpop.xlane.xlu0 %2213 }
 0x372   :  { %v2285_v25 = vmul.f32 0.00390625, %v2214_v35  ;;  %v2423_v13 = vmul.f32 %v5577_v37, %v5577_v37  ;;  %v2424_v19 = vmul.f32 %v5580_v30, %v5580_v30 }
 0x374   :  { %v5587_v14 = vsub.f32 %v5182_v46, %v2285_v25  ;;  %v5590_v58 = vsub.f32 %v5186_v39, %v2285_v25  ;;  %v2514_v61 = vadd.f32 %v2424_v19, %v2423_v13 }
 0x376   :  { %v2393_v51 = vmul.f32 %v5587_v14, %v5587_v14  ;;  %v2394_v41 = vmul.f32 %v5590_v58, %v5590_v58  ;;  %2515 = vadd.xlane.f32.xlu1 %v2514_v61 }
 0x378   :  { %v2217_v23 = vpop.xlane.xlu1 %2216  ;;  %v2469_v2 = vadd.f32 %v2394_v41, %v2393_v51 }
 0x379   :  { %v2286_v57 = vmul.f32 0.00390625, %v2217_v23 }
 0x37a   :  { %2470 = vadd.xlane.f32.xlu0 %v2469_v2 }
 0x37b   :  { %v5597_v35 = vsub.f32 %v5204_v40, %v2286_v57  ;;  %v5600_v46 = vsub.f32 %v5208_v53, %v2286_v57 }
 0x37d   :  { %6633 = vst [vmem:[#allocation75_spill] sm:$0xff] %v5597_v35  ;;  %6634 = vst [vmem:[#allocation82_spill] sm:$0xff] %v5600_v46  ;;  %v2395_v39 = vmul.f32 %v5597_v35, %v5597_v35  ;;  %v2396_v25 = vmul.f32 %v5600_v46, %v5600_v46 }
 0x37f   :  { %v2472_v13 = vadd.f32 %v2396_v25, %v2395_v39  ;;  %v6638_v25 = vld [vmem:[#allocation55_spill] sm:$0xff] }
 0x381   :  { %2473 = vadd.xlane.f32.xlu1 %v2472_v13 }
 0x386   :  { %v2262_v19 = vpop.xlane.xlu0 %2261 }
 0x387   :  { %v2301_v61 = vmul.f32 0.00390625, %v2262_v19 }
 0x389   :  { %v5607_v51 = vsub.f32 %v5245_v54, %v2301_v61  ;;  %v5610_v41 = vsub.f32 %v5250_v45, %v2301_v61 }
 0x38b   :  { %6635 = vst [vmem:[#allocation48_spill] sm:$0xff] %v5607_v51  ;;  %6636 = vst [vmem:[#allocation58_spill] sm:$0xff] %v5610_v41  ;;  %v2425_v40 = vmul.f32 %v5607_v51, %v5607_v51  ;;  %v2426_v53 = vmul.f32 %v5610_v41, %v5610_v41  ;;  %v6640_v51 = vld [vmem:[#allocation85_spill] sm:$0xff] }
 0x38d   :  { %v2517_v2 = vadd.f32 %v2426_v53, %v2425_v40  ;;  %v6642_v40 = vld [vmem:[#allocation91_spill] sm:$0xff] }
 0x38e   :  { %v2265_v23 = vpop.xlane.xlu1 %2264 }
 0x38f   :  { %v2302_v57 = vmul.f32 0.00390625, %v2265_v23  ;;  %2518 = vadd.xlane.f32.xlu0 %v2517_v2 }
 0x391   :  { %v5617_v39 = vsub.f32 %v5267_v8, %v2302_v57  ;;  %v5620_v13 = vsub.f32 %v6638_v25, %v2302_v57 }
 0x392   :  { %v2220_v54 = vpop.xlane.xlu0 %2219 }
 0x393   :  { %6637 = vst [vmem:[#allocation90_spill] sm:$0xff] %v5617_v39  ;;  %6639 = vst [vmem:[#allocation63_spill] sm:$0xff] %v5620_v13  ;;  %v2287_v19 = vmul.f32 0.00390625, %v2220_v54  ;;  %v2427_v45 = vmul.f32 %v5617_v39, %v5617_v39  ;;  %v2428_v61 = vmul.f32 %v5620_v13, %v5620_v13  ;;  %v6644_v39 = vld [vmem:[#allocation27_spill] sm:$0xff] }
 0x395   :  { %v5627_v41 = vsub.f32 %v6640_v51, %v2287_v19  ;;  %v5630_v53 = vsub.f32 %v6642_v40, %v2287_v19  ;;  %v2520_v23 = vadd.f32 %v2428_v61, %v2427_v45  ;;  %v6646_v51 = vld [vmem:[#allocation87_spill] sm:$0xff] }
 0x397   :  { %6641 = vst [vmem:[#allocation94_spill] sm:$0xff] %v5627_v41  ;;  %6643 = vst [vmem:[#allocation67_spill] sm:$0xff] %v5630_v53  ;;  %v2397_v8 = vmul.f32 %v5627_v41, %v5627_v41  ;;  %v2398_v2 = vmul.f32 %v5630_v53, %v5630_v53  ;;  %2521 = vadd.xlane.f32.xlu1 %v2520_v23 }
 0x399   :  { %v2223_v57 = vpop.xlane.xlu1 %2222  ;;  %v2475_v25 = vadd.f32 %v2398_v2, %v2397_v8 }
 0x39a   :  { %v2288_v54 = vmul.f32 0.00390625, %v2223_v57 }
 0x39b   :  { %2476 = vadd.xlane.f32.xlu0 %v2475_v25 }
 0x39c   :  { %v5637_v13 = vsub.f32 %v6644_v39, %v2288_v54  ;;  %v5640_v46 = vsub.f32 %v6646_v51, %v2288_v54 }
 0x39e   :  { %6645 = vst [vmem:[#allocation42_spill] sm:$0xff] %v5637_v13  ;;  %6647 = vst [vmem:[#allocation57_spill] sm:$0xff] %v5640_v46  ;;  %v2399_v19 = vmul.f32 %v5637_v13, %v5637_v13  ;;  %v2400_v45 = vmul.f32 %v5640_v46, %v5640_v46 }
 0x3a0   :  { %v2478_v61 = vadd.f32 %v2400_v45, %v2399_v19 }
 0x3a2   :  { %2479 = vadd.xlane.f32.xlu1 %v2478_v61 }
 0x3a6   :  { %v2268_v40 = vpop.xlane.xlu0 %2267 }
 0x3a7   :  { %v2303_v23 = vmul.f32 0.00390625, %v2268_v40 }
 0x3a9   :  { %v5647_v8 = vsub.f32 %v5339_v59, %v2303_v23  ;;  %v5650_v2 = vsub.f32 %v5344_v6, %v2303_v23 }
 0x3aa   :  { %v2435_v39 = vpop.xlane.xlu0 %2434 }
 0x3ab   :  { %6648 = vst [vmem:[#allocation100_spill] sm:$0xff] %v5647_v8  ;;  %6649 = vst [vmem:[#allocation74_spill] sm:$0xff] %v5650_v2  ;;  %v2429_v57 = vmul.f32 %v5647_v8, %v5647_v8  ;;  %v2430_v25 = vmul.f32 %v5650_v2, %v5650_v2  ;;  %v2529_v54 = vmul.f32 0.00390625, %v2435_v39 }
 0x3ad   :  { %v2271_v51 = vpop.xlane.xlu1 %2270  ;;  %v2523_v46 = vadd.f32 %v2430_v25, %v2429_v57  ;;  %v2561_v19 = vadd.f32 1e-05, %v2529_v54 }
 0x3ae   :  { %v2304_v45 = vmul.f32 0.00390625, %v2271_v51  ;;  %v2483_v61 = vpop.xlane.xlu0 %2482 }
 0x3af   :  { %2524 = vadd.xlane.f32.xlu0 %v2523_v46  ;;  %3214 = vrsqrt.f32 %v2561_v19  ;;  %v2545_v59 = vmul.f32 0.00390625, %v2483_v61 }
 0x3b0   :  { %v5657_v40 = vsub.f32 %v5372_v29, %v2304_v45  ;;  %v5660_v6 = vsub.f32 %v5377_v9, %v2304_v45  ;;  %v242_v29 = vld [vmem:[%s5894_s3] sm:$0x3]  ;;  %s3354_s3 = smov [#allocation7]  }
 0x3b1   :  { %v2577_v23 = vadd.f32 1e-05, %v2545_v59  ;;  %v2438_v8 = vpop.xlane.xlu1 %2437  ;;  %v243_v45 = vld [vmem:[%s5895_s4] sm:$0x3]  ;;  %s2908_s4 = sshll.u32 %s3354_s3, 4  ;;  %s2909_s4 = int_to_ptr.vmem [resolvable:$true] %s2908_s4 }
 0x3b2   :  { %6650 = vst [vmem:[#allocation80_spill] sm:$0xff] %v5657_v40  ;;  %6651 = vst [vmem:[#allocation62_spill] sm:$0xff] %v5660_v6  ;;  %v2431_v2 = vmul.f32 %v5657_v40, %v5657_v40  ;;  %v2432_v39 = vmul.f32 %v5660_v6, %v5660_v6  ;;  %v2530_v57 = vmul.f32 0.00390625, %v2438_v8  ;;  %v2441_v25 = vpop.xlane.xlu0 %2440  ;;  %s3322_s22 = scalar_lea.vmem %s2909_s4, 8192  ;;  %p3327_p3 = scmp.lt.s32.totalorder %s2909_s4, %s2909_s4 }
 0x3b3   :  { %3216 = vrsqrt.f32 %v2577_v23  ;;  %v2531_v46 = vmul.f32 0.00390625, %v2441_v25  ;;  %v6652_v23 = vld [vmem:[#allocation11_spill] sm:$0xff]  ;;  %p3323_p2 = scmp.ne.s32.totalorder %s2909_s4, %s3322_s22  ;;  %p3328_p4 = scmp.lt.s32.totalorder %s3322_s22, %s3322_s22 }
 0x3b4   :  { %v2526_v54 = vadd.f32 %v2432_v39, %v2431_v2  ;;  %v2562_v51 = vadd.f32 1e-05, %v2530_v57  ;;  %v5673_v25 = vrot.slane %v242_v29, %v6652_v23  ;;  %v6653_v2 = vld [vmem:[#allocation12_spill] sm:$0xff] }
 0x3b5   :  { %v2563_v9 = vadd.f32 1e-05, %v2531_v46  ;;  %v2486_v19 = vpop.xlane.xlu1 %2485  ;;  %v5676_v39 = vrot.slane %v242_v29, %v6653_v2  ;;  %v5679_v46 = vrot.slane %v243_v45, %v6652_v23  ;;  %v5682_v40 = vrot.slane %v243_v45, %v6653_v2  ;;  %p3329_p5 = por %p3328_p4, %p3327_p3 }
 0x3b6   :  { %2527 = vadd.xlane.f32.xlu1 %v2526_v54  ;;  %3218 = vrsqrt.f32 %v2562_v51  ;;  %v2546_v61 = vmul.f32 0.00390625, %v2486_v19  ;;  %v2489_v59 = vpop.xlane.xlu0 %2488 }
 0x3b7   :  { %3220 = vrsqrt.f32 %v2563_v9  ;;  %v2547_v8 = vmul.f32 0.00390625, %v2489_v59  ;;  %p3330_p6 = pnand %p3329_p5, %p3323_p2 }
 0x3b8   :  { %v2578_v57 = vadd.f32 1e-05, %v2546_v61 }
 0x3b9   :  { %v3215_v6 = vpop.eup %3214  ;;  %v2579_v54 = vadd.f32 1e-05, %v2547_v8  ;;  %v2444_v51 = vpop.xlane.xlu1 %2443 }
 0x3ba   :  { %v2625_v19 = vmul.f32 %v3215_v6, %v5330_v62  ;;  %v2626_v9 = vmul.f32 %v3215_v6, %v5333_v31  ;;  %3222 = vrsqrt.f32 %v2578_v57  ;;  %v2532_v59 = vmul.f32 0.00390625, %v2444_v51  ;;  %v2447_v13 = vpop.xlane.xlu0 %2446 }
 0x3bb   :  { %3224 = vrsqrt.f32 %v2579_v54  ;;  %v2533_v29 = vmul.f32 0.00390625, %v2447_v13 }
 0x3bc   :  { %v2700_v61 = vmul.f32 %v5673_v25, %v2625_v19  ;;  %v2701_v53 = vmul.f32 %v5676_v39, %v2626_v9  ;;  %v2564_v23 = vadd.f32 1e-05, %v2532_v59 }
 0x3bd   :  { %v3217_v41 = vpop.eup %3216  ;;  %v2565_v35 = vadd.f32 1e-05, %v2533_v29  ;;  %v2492_v45 = vpop.xlane.xlu1 %2491 }
 0x3be   :  { %v2775_v8 = vadd.f32 %v5679_v46, %v2700_v61  ;;  %v2776_v2 = vadd.f32 %v5682_v40, %v2701_v53  ;;  %v2657_v62 = vmul.f32 %v3217_v41, %v5337_v36  ;;  %v2658_v31 = vmul.f32 %v3217_v41, %v5342_v7  ;;  %v2495_v6 = vpop.xlane.xlu0 %2494 }
 0x3bf   :  { %3226 = vrsqrt.f32 %v2564_v23  ;;  %v2548_v57 = vmul.f32 0.00390625, %v2492_v45  ;;  %v2549_v13 = vmul.f32 0.00390625, %v2495_v6 }
 0x3c0   :  { %v3219_v54 = vpop.eup %3218  ;;  %2839 = vst [vmem:[#allocation7] sm:$0xff] %v2775_v8  ;;  %2840 = vst [vmem:[#allocation7 + $0x8] sm:$0xff] %v2776_v2  ;;  %v2732_v51 = vmul.f32 %v5673_v25, %v2657_v62  ;;  %v2733_v19 = vmul.f32 %v5676_v39, %v2658_v31  ;;  %3228 = vrsqrt.f32 %v2565_v35 }
 0x3c1   :  { %v3221_v9 = vpop.eup %3220  ;;  %v2627_v59 = vmul.f32 %v3219_v54, %v5361_v63  ;;  %v2628_v53 = vmul.f32 %v3219_v54, %v5364_v22  ;;  %v2580_v36 = vadd.f32 1e-05, %v2548_v57  ;;  %v2581_v29 = vadd.f32 1e-05, %v2549_v13  ;;  %v2450_v7 = vpop.xlane.xlu1 %2449 }
 0x3c2   :  { %v2807_v41 = vadd.f32 %v5679_v46, %v2732_v51  ;;  %v2808_v61 = vadd.f32 %v5682_v40, %v2733_v19  ;;  %v2629_v23 = vmul.f32 %v3221_v9, %v5353_v60  ;;  %v2630_v45 = vmul.f32 %v3221_v9, %v5358_v48  ;;  %v2453_v8 = vpop.xlane.xlu0 %2452 }
 0x3c3   :  { %v2702_v2 = vmul.f32 %v5673_v25, %v2627_v59  ;;  %v2703_v35 = vmul.f32 %v5676_v39, %v2628_v53  ;;  %3230 = vrsqrt.f32 %v2580_v36  ;;  %v2534_v63 = vmul.f32 0.00390625, %v2450_v7 }
 0x3c4   :  { %v3223_v62 = vpop.eup %3222  ;;  %2871 = vst [vmem:[#allocation7 + $0x100] sm:$0xff] %v2807_v41  ;;  %2872 = vst [vmem:[#allocation7 + $0x108] sm:$0xff] %v2808_v61  ;;  %v2704_v22 = vmul.f32 %v5673_v25, %v2629_v23  ;;  %v2705_v31 = vmul.f32 %v5676_v39, %v2630_v45  ;;  %3232 = vrsqrt.f32 %v2581_v29  ;;  %v2535_v6 = vmul.f32 0.00390625, %v2453_v8 }
 0x3c5   :  { %v3225_v57 = vpop.eup %3224  ;;  %v2777_v60 = vadd.f32 %v5679_v46, %v2702_v2  ;;  %v2778_v48 = vadd.f32 %v5682_v40, %v2703_v35  ;;  %v2659_v13 = vmul.f32 %v3223_v62, %v5393_v42  ;;  %v2660_v54 = vmul.f32 %v3223_v62, %v5396_v50  ;;  %v2498_v51 = vpop.xlane.xlu1 %2497 }
 0x3c6   :  { %v2779_v19 = vadd.f32 %v5679_v46, %v2704_v22  ;;  %v2780_v9 = vadd.f32 %v5682_v40, %v2705_v31  ;;  %v2661_v59 = vmul.f32 %v3225_v57, %v5375_v12  ;;  %v2662_v53 = vmul.f32 %v3225_v57, %v5384_v1  ;;  %v2501_v36 = vpop.xlane.xlu0 %2500 }
 0x3c7   :  { %2841 = vst [vmem:[#allocation7 + $0x10] sm:$0xff] %v2777_v60  ;;  %2842 = vst [vmem:[#allocation7 + $0x18] sm:$0xff] %v2778_v48  ;;  %v2734_v29 = vmul.f32 %v5673_v25, %v2659_v13  ;;  %v2735_v7 = vmul.f32 %v5676_v39, %v2660_v54  ;;  %v2566_v41 = vadd.f32 1e-05, %v2534_v63  ;;  %v2567_v42 = vadd.f32 1e-05, %v2535_v6 }
 0x3c8   :  { %2843 = vst [vmem:[#allocation7 + $0x20] sm:$0xff] %v2779_v19  ;;  %2844 = vst [vmem:[#allocation7 + $0x28] sm:$0xff] %v2780_v9  ;;  %v2736_v50 = vmul.f32 %v5673_v25, %v2661_v59  ;;  %v2737_v61 = vmul.f32 %v5676_v39, %v2662_v53  ;;  %v2550_v23 = vmul.f32 0.00390625, %v2498_v51  ;;  %v2551_v45 = vmul.f32 0.00390625, %v2501_v36 }
 0x3c9   :  { %v3227_v12 = vpop.eup %3226  ;;  %v2809_v1 = vadd.f32 %v5679_v46, %v2734_v29  ;;  %v2810_v8 = vadd.f32 %v5682_v40, %v2735_v7  ;;  %3234 = vrsqrt.f32 %v2566_v41  ;;  %v2456_v2 = vpop.xlane.xlu1 %2455 }
 0x3ca   :  { %v3229_v35 = vpop.eup %3228  ;;  %v2811_v62 = vadd.f32 %v5679_v46, %v2736_v50  ;;  %v2812_v63 = vadd.f32 %v5682_v40, %v2737_v61  ;;  %v2631_v22 = vmul.f32 %v3227_v12, %v5409_v20  ;;  %v2632_v31 = vmul.f32 %v3227_v12, %v5412_v49  ;;  %v2459_v48 = vpop.xlane.xlu0 %2458  ;;  %v6654_v50 = vld [vmem:[#allocation30_spill] sm:$0xff] }
 0x3cb   :  { %2873 = vst [vmem:[#allocation7 + $0x110] sm:$0xff] %v2809_v1  ;;  %2874 = vst [vmem:[#allocation7 + $0x118] sm:$0xff] %v2810_v8  ;;  %v2633_v6 = vmul.f32 %v3229_v35, %v5399_v16  ;;  %v2634_v57 = vmul.f32 %v3229_v35, %v5402_v44  ;;  %3236 = vrsqrt.f32 %v2567_v42  ;;  %v2582_v60 = vadd.f32 1e-05, %v2550_v23  ;;  %v6655_v23 = vld [vmem:[#allocation92_spill] sm:$0xff] }
 0x3cc   :  { %2875 = vst [vmem:[#allocation7 + $0x120] sm:$0xff] %v2811_v62  ;;  %2876 = vst [vmem:[#allocation7 + $0x128] sm:$0xff] %v2812_v63  ;;  %v2706_v13 = vmul.f32 %v5673_v25, %v2631_v22  ;;  %v2707_v54 = vmul.f32 %v5676_v39, %v2632_v31  ;;  %v2583_v51 = vadd.f32 1e-05, %v2551_v45  ;;  %v2536_v19 = vmul.f32 0.00390625, %v2456_v2 }
 0x3cd   :  { %v3231_v20 = vpop.eup %3230  ;;  %v2708_v49 = vmul.f32 %v5673_v25, %v2633_v6  ;;  %v2709_v9 = vmul.f32 %v5676_v39, %v2634_v57  ;;  %3238 = vrsqrt.f32 %v2582_v60  ;;  %v2537_v16 = vmul.f32 0.00390625, %v2459_v48  ;;  %v2504_v59 = vpop.xlane.xlu1 %2503 }
 0x3ce   :  { %v3233_v44 = vpop.eup %3232  ;;  %v2781_v53 = vadd.f32 %v5679_v46, %v2706_v13  ;;  %v2782_v36 = vadd.f32 %v5682_v40, %v2707_v54  ;;  %v2663_v29 = vmul.f32 %v3231_v20, %v5419_v0  ;;  %v2664_v7 = vmul.f32 %v3231_v20, %v5432_v43 }
 0x3cf   :  { %v2783_v41 = vadd.f32 %v5679_v46, %v2708_v49  ;;  %v2784_v42 = vadd.f32 %v5682_v40, %v2709_v9  ;;  %v2665_v61 = vmul.f32 %v3233_v44, %v6654_v50  ;;  %v2666_v45 = vmul.f32 %v3233_v44, %v6655_v23  ;;  %v6656_v50 = vld [vmem:[#allocation96_spill] sm:$0xff]  ;;  %v6657_v23 = vld [vmem:[#allocation59_spill] sm:$0xff] }
 0x3d0   :  { %2845 = vst [vmem:[#allocation7 + $0x30] sm:$0xff] %v2781_v53  ;;  %2846 = vst [vmem:[#allocation7 + $0x38] sm:$0xff] %v2782_v36  ;;  %v2738_v12 = vmul.f32 %v5673_v25, %v2663_v29  ;;  %v2739_v1 = vmul.f32 %v5676_v39, %v2664_v7  ;;  %3240 = vrsqrt.f32 %v2583_v51  ;;  %v2568_v8 = vadd.f32 1e-05, %v2536_v19 }
 0x3d1   :  { %2847 = vst [vmem:[#allocation7 + $0x40] sm:$0xff] %v2783_v41  ;;  %2848 = vst [vmem:[#allocation7 + $0x48] sm:$0xff] %v2784_v42  ;;  %v2740_v0 = vmul.f32 %v5673_v25, %v2665_v61  ;;  %v2741_v43 = vmul.f32 %v5676_v39, %v2666_v45  ;;  %v2569_v2 = vadd.f32 1e-05, %v2537_v16  ;;  %v2552_v35 = vmul.f32 0.00390625, %v2504_v59  ;;  %v2462_v22 = vpop.xlane.xlu1 %2461 }
 0x3d2   :  { %v2813_v62 = vadd.f32 %v5679_v46, %v2738_v12  ;;  %v2814_v63 = vadd.f32 %v5682_v40, %v2739_v1  ;;  %3242 = vrsqrt.f32 %v2568_v8  ;;  %v2538_v54 = vmul.f32 0.00390625, %v2462_v22 }
 0x3d3   :  { %v3235_v31 = vpop.eup %3234  ;;  %v2815_v6 = vadd.f32 %v5679_v46, %v2740_v0  ;;  %v2816_v57 = vadd.f32 %v5682_v40, %v2741_v43  ;;  %3244 = vrsqrt.f32 %v2569_v2  ;;  %v2584_v60 = vadd.f32 1e-05, %v2552_v35 }
 0x3d4   :  { %2877 = vst [vmem:[#allocation7 + $0x130] sm:$0xff] %v2813_v62  ;;  %2878 = vst [vmem:[#allocation7 + $0x138] sm:$0xff] %v2814_v63  ;;  %v2635_v48 = vmul.f32 %v3235_v31, %v5443_v33  ;;  %v2636_v13 = vmul.f32 %v3235_v31, %v5452_v38  ;;  %v2570_v59 = vadd.f32 1e-05, %v2538_v54 }
 0x3d5   :  { %v3237_v51 = vpop.eup %3236  ;;  %2879 = vst [vmem:[#allocation7 + $0x140] sm:$0xff] %v2815_v6  ;;  %2880 = vst [vmem:[#allocation7 + $0x148] sm:$0xff] %v2816_v57  ;;  %3246 = vrsqrt.f32 %v2584_v60 }
 0x3d6   :  { %v2710_v19 = vmul.f32 %v5673_v25, %v2635_v48  ;;  %v2711_v20 = vmul.f32 %v5676_v39, %v2636_v13  ;;  %v2637_v49 = vmul.f32 %v3237_v51, %v5446_v4  ;;  %v2638_v9 = vmul.f32 %v3237_v51, %v5449_v11 }
 0x3d7   :  { %v3239_v16 = vpop.eup %3238  ;;  %3248 = vrsqrt.f32 %v2570_v59 }
 0x3d8   :  { %v2785_v44 = vadd.f32 %v5679_v46, %v2710_v19  ;;  %v2786_v33 = vadd.f32 %v5682_v40, %v2711_v20  ;;  %v2712_v38 = vmul.f32 %v5673_v25, %v2637_v49  ;;  %v2713_v53 = vmul.f32 %v5676_v39, %v2638_v9 }
 0x3d9   :  { %v2667_v36 = vmul.f32 %v3239_v16, %v5459_v56  ;;  %v2668_v29 = vmul.f32 %v3239_v16, %v5472_v47 }
 0x3da   :  { %v3241_v7 = vpop.eup %3240  ;;  %2849 = vst [vmem:[#allocation7 + $0x50] sm:$0xff] %v2785_v44  ;;  %2850 = vst [vmem:[#allocation7 + $0x58] sm:$0xff] %v2786_v33  ;;  %v2787_v4 = vadd.f32 %v5679_v46, %v2712_v38  ;;  %v2788_v11 = vadd.f32 %v5682_v40, %v2713_v53  ;;  %v2507_v6 = vpop.xlane.xlu0 %2506 }
 0x3db   :  { %v2742_v41 = vmul.f32 %v5673_v25, %v2667_v36  ;;  %v2743_v42 = vmul.f32 %v5676_v39, %v2668_v29  ;;  %v2669_v61 = vmul.f32 %v3241_v7, %v6656_v50  ;;  %v2670_v45 = vmul.f32 %v3241_v7, %v6657_v23 }
 0x3dc   :  { %v3243_v12 = vpop.eup %3242  ;;  %2851 = vst [vmem:[#allocation7 + $0x60] sm:$0xff] %v2787_v4  ;;  %2852 = vst [vmem:[#allocation7 + $0x68] sm:$0xff] %v2788_v11  ;;  %v2553_v13 = vmul.f32 0.00390625, %v2507_v6 }
 0x3dd   :  { %v3245_v56 = vpop.eup %3244  ;;  %v2817_v47 = vadd.f32 %v5679_v46, %v2742_v41  ;;  %v2818_v1 = vadd.f32 %v5682_v40, %v2743_v42  ;;  %v2744_v8 = vmul.f32 %v5673_v25, %v2669_v61  ;;  %v2745_v0 = vmul.f32 %v5676_v39, %v2670_v45 }
 0x3de   :  { %v2639_v43 = vmul.f32 %v3243_v12, %v5479_v27  ;;  %v2640_v2 = vmul.f32 %v3243_v12, %v5482_v55  ;;  %v2641_v35 = vmul.f32 %v3245_v56, %v5503_v17  ;;  %v2642_v62 = vmul.f32 %v3245_v56, %v5506_v24  ;;  %v6658_v24 = vld [vmem:[#allocation65_spill] sm:$0xff] }
 0x3df   :  { %v3247_v63 = vpop.eup %3246  ;;  %2881 = vst [vmem:[#allocation7 + $0x150] sm:$0xff] %v2817_v47  ;;  %2882 = vst [vmem:[#allocation7 + $0x158] sm:$0xff] %v2818_v1  ;;  %v2819_v22 = vadd.f32 %v5679_v46, %v2744_v8  ;;  %v2820_v31 = vadd.f32 %v5682_v40, %v2745_v0  ;;  %v2585_v59 = vadd.f32 1e-05, %v2553_v13 }
 0x3e0   :  { %v2714_v57 = vmul.f32 %v5673_v25, %v2639_v43  ;;  %v2715_v60 = vmul.f32 %v5676_v39, %v2640_v2  ;;  %v2716_v27 = vmul.f32 %v5673_v25, %v2641_v35  ;;  %v2717_v55 = vmul.f32 %v5676_v39, %v2642_v62  ;;  %v6659_v2 = vld [vmem:[#allocation26_spill] sm:$0xff] }
 0x3e1   :  { %2883 = vst [vmem:[#allocation7 + $0x160] sm:$0xff] %v2819_v22  ;;  %2884 = vst [vmem:[#allocation7 + $0x168] sm:$0xff] %v2820_v31  ;;  %v2671_v17 = vmul.f32 %v3247_v63, %v5497_v5  ;;  %v2672_v48 = vmul.f32 %v3247_v63, %v6658_v24  ;;  %v3249_v49 = vpop.eup %3248  ;;  %3250 = vrsqrt.f32 %v2585_v59  ;;  %v6660_v62 = vld [vmem:[#allocation34_spill] sm:$0xff] }
 0x3e2   :  { %v2789_v54 = vadd.f32 %v5679_v46, %v2714_v57  ;;  %v2790_v51 = vadd.f32 %v5682_v40, %v2715_v60  ;;  %v2791_v19 = vadd.f32 %v5679_v46, %v2716_v27  ;;  %v2792_v20 = vadd.f32 %v5682_v40, %v2717_v55  ;;  %v2510_v29 = vpop.xlane.xlu1 %2509 }
 0x3e3   :  { %v2746_v9 = vmul.f32 %v5673_v25, %v2671_v17  ;;  %v2747_v16 = vmul.f32 %v5676_v39, %v2672_v48  ;;  %v2643_v5 = vmul.f32 %v3249_v49, %v5517_v34  ;;  %v2644_v44 = vmul.f32 %v3249_v49, %v5520_v28 }
 0x3e4   :  { %2853 = vst [vmem:[#allocation7 + $0x70] sm:$0xff] %v2789_v54  ;;  %2854 = vst [vmem:[#allocation7 + $0x78] sm:$0xff] %v2790_v51  ;;  %v2554_v7 = vmul.f32 0.00390625, %v2510_v29 }
 0x3e5   :  { %2855 = vst [vmem:[#allocation7 + $0x80] sm:$0xff] %v2791_v19  ;;  %2856 = vst [vmem:[#allocation7 + $0x88] sm:$0xff] %v2792_v20  ;;  %v2821_v33 = vadd.f32 %v5679_v46, %v2746_v9  ;;  %v2822_v38 = vadd.f32 %v5682_v40, %v2747_v16  ;;  %v2718_v53 = vmul.f32 %v5673_v25, %v2643_v5 }
 0x3e6   :  { %v2719_v36 = vmul.f32 %v5676_v39, %v2644_v44  ;;  %v2586_v34 = vadd.f32 1e-05, %v2554_v7  ;;  %v2465_v28 = vpop.xlane.xlu0 %2464 }
 0x3e7   :  { %2885 = vst [vmem:[#allocation7 + $0x170] sm:$0xff] %v2821_v33  ;;  %2886 = vst [vmem:[#allocation7 + $0x178] sm:$0xff] %v2822_v38  ;;  %v2793_v4 = vadd.f32 %v5679_v46, %v2718_v53  ;;  %v2539_v41 = vmul.f32 0.00390625, %v2465_v28 }
 0x3e8   :  { %v2794_v11 = vadd.f32 %v5682_v40, %v2719_v36  ;;  %3252 = vrsqrt.f32 %v2586_v34 }
 0x3e9   :  { %2857 = vst [vmem:[#allocation7 + $0x90] sm:$0xff] %v2793_v4  ;;  %v2571_v42 = vadd.f32 1e-05, %v2539_v41 }
 0x3ea   :  { %2858 = vst [vmem:[#allocation7 + $0x98] sm:$0xff] %v2794_v11 }
 0x3eb   :  { %v3251_v50 = vpop.eup %3250  ;;  %3254 = vrsqrt.f32 %v2571_v42 }
 0x3ec   :  { %v2673_v61 = vmul.f32 %v3251_v50, %v5527_v21  ;;  %v2674_v23 = vmul.f32 %v3251_v50, %v5530_v10 }
 0x3ed   :  { %v2468_v45 = vpop.xlane.xlu1 %2467 }
 0x3ee   :  { %v2748_v12 = vmul.f32 %v5673_v25, %v2673_v61  ;;  %v2749_v56 = vmul.f32 %v5676_v39, %v2674_v23  ;;  %v2540_v47 = vmul.f32 0.00390625, %v2468_v45 }
 0x3f0   :  { %v2823_v1 = vadd.f32 %v5679_v46, %v2748_v12  ;;  %v2824_v8 = vadd.f32 %v5682_v40, %v2749_v56  ;;  %v2572_v0 = vadd.f32 1e-05, %v2540_v47 }
 0x3f2   :  { %v3253_v43 = vpop.eup %3252  ;;  %2887 = vst [vmem:[#allocation7 + $0x180] sm:$0xff] %v2823_v1  ;;  %2888 = vst [vmem:[#allocation7 + $0x188] sm:$0xff] %v2824_v8  ;;  %3256 = vrsqrt.f32 %v2572_v0 }
 0x3f3   :  { %v2675_v35 = vmul.f32 %v3253_v43, %v6659_v2  ;;  %v2676_v21 = vmul.f32 %v3253_v43, %v6660_v62 }
 0x3f5   :  { %v2750_v10 = vmul.f32 %v5673_v25, %v2675_v35  ;;  %v2751_v63 = vmul.f32 %v5676_v39, %v2676_v21  ;;  %v3255_v22 = vpop.eup %3254  ;;  %v6662_v35 = vld [vmem:[#allocation82_spill] sm:$0xff] }
 0x3f6   :  { %v2645_v31 = vmul.f32 %v3255_v22, %v5547_v3  ;;  %v2646_v6 = vmul.f32 %v3255_v22, %v5550_v52 }
 0x3f7   :  { %v2825_v57 = vadd.f32 %v5679_v46, %v2750_v10  ;;  %v2826_v60 = vadd.f32 %v5682_v40, %v2751_v63 }
 0x3f8   :  { %v2720_v27 = vmul.f32 %v5673_v25, %v2645_v31  ;;  %v2721_v55 = vmul.f32 %v5676_v39, %v2646_v6 }
 0x3f9   :  { %2889 = vst [vmem:[#allocation7 + $0x190] sm:$0xff] %v2825_v57  ;;  %2890 = vst [vmem:[#allocation7 + $0x198] sm:$0xff] %v2826_v60 }
 0x3fa   :  { %v2795_v17 = vadd.f32 %v5679_v46, %v2720_v27  ;;  %v2796_v24 = vadd.f32 %v5682_v40, %v2721_v55 }
 0x3fb   :  { %v2513_v48 = vpop.xlane.xlu0 %2512 }
 0x3fc   :  { %v2555_v13 = vmul.f32 0.00390625, %v2513_v48  ;;  %v3257_v54 = vpop.eup %3256  ;;  %2859 = vst [vmem:[#allocation7 + $0xa0] sm:$0xff] %v2795_v17  ;;  %2860 = vst [vmem:[#allocation7 + $0xa8] sm:$0xff] %v2796_v24  ;;  %v6663_v24 = vld [vmem:[#allocation48_spill] sm:$0xff] }
 0x3fd   :  { %v2647_v52 = vmul.f32 %v3257_v54, %v5557_v26  ;;  %v2648_v51 = vmul.f32 %v3257_v54, %v5560_v15 }
 0x3fe   :  { %v2587_v3 = vadd.f32 1e-05, %v2555_v13  ;;  %v6664_v13 = vld [vmem:[#allocation58_spill] sm:$0xff] }
 0x3ff   :  { %v2722_v19 = vmul.f32 %v5673_v25, %v2647_v52  ;;  %v2723_v20 = vmul.f32 %v5676_v39, %v2648_v51 }
 0x400   :  { %3258 = vrsqrt.f32 %v2587_v3 }
 0x401   :  { %v2797_v49 = vadd.f32 %v5679_v46, %v2722_v19  ;;  %v2798_v9 = vadd.f32 %v5682_v40, %v2723_v20 }
 0x403   :  { %v2516_v16 = vpop.xlane.xlu1 %2515  ;;  %2861 = vst [vmem:[#allocation7 + $0xb0] sm:$0xff] %v2797_v49  ;;  %2862 = vst [vmem:[#allocation7 + $0xb8] sm:$0xff] %v2798_v9 }
 0x404   :  { %v2556_v59 = vmul.f32 0.00390625, %v2516_v16 }
 0x406   :  { %v2588_v5 = vadd.f32 1e-05, %v2556_v59  ;;  %v6665_v59 = vld [vmem:[#allocation90_spill] sm:$0xff] }
 0x407   :  { %v2471_v44 = vpop.xlane.xlu0 %2470 }
 0x408   :  { %v2541_v33 = vmul.f32 0.00390625, %v2471_v44  ;;  %3260 = vrsqrt.f32 %v2588_v5  ;;  %v6666_v44 = vld [vmem:[#allocation63_spill] sm:$0xff] }
 0x40a   :  { %v2573_v26 = vadd.f32 1e-05, %v2541_v33  ;;  %v3259_v38 = vpop.eup %3258 }
 0x40b   :  { %v2677_v15 = vmul.f32 %v3259_v38, %v5567_v32  ;;  %v2678_v53 = vmul.f32 %v3259_v38, %v5570_v18 }
 0x40c   :  { %3262 = vrsqrt.f32 %v2573_v26 }
 0x40d   :  { %v2752_v36 = vmul.f32 %v5673_v25, %v2677_v15  ;;  %v2753_v29 = vmul.f32 %v5676_v39, %v2678_v53  ;;  %v6667_v53 = vld [vmem:[#allocation94_spill] sm:$0xff] }
 0x40e   :  { %v2474_v7 = vpop.xlane.xlu1 %2473 }
 0x40f   :  { %v2542_v4 = vmul.f32 0.00390625, %v2474_v7  ;;  %v2827_v11 = vadd.f32 %v5679_v46, %v2752_v36  ;;  %v2828_v34 = vadd.f32 %v5682_v40, %v2753_v29  ;;  %v6668_v29 = vld [vmem:[#allocation67_spill] sm:$0xff] }
 0x411   :  { %v2574_v28 = vadd.f32 1e-05, %v2542_v4  ;;  %2891 = vst [vmem:[#allocation7 + $0x1a0] sm:$0xff] %v2827_v11  ;;  %2892 = vst [vmem:[#allocation7 + $0x1a8] sm:$0xff] %v2828_v34 }
 0x412   :  { %v3261_v41 = vpop.eup %3260 }
 0x413   :  { %v2679_v42 = vmul.f32 %v3261_v41, %v5577_v37  ;;  %v2680_v32 = vmul.f32 %v3261_v41, %v5580_v30  ;;  %3264 = vrsqrt.f32 %v2574_v28 }
 0x415   :  { %v2754_v18 = vmul.f32 %v5673_v25, %v2679_v42  ;;  %v2755_v50 = vmul.f32 %v5676_v39, %v2680_v32 }
 0x416   :  { %v3263_v61 = vpop.eup %3262 }
 0x417   :  { %v2649_v23 = vmul.f32 %v3263_v61, %v5587_v14  ;;  %v2650_v45 = vmul.f32 %v3263_v61, %v5590_v58  ;;  %v2829_v12 = vadd.f32 %v5679_v46, %v2754_v18  ;;  %v2830_v56 = vadd.f32 %v5682_v40, %v2755_v50  ;;  %v6661_v58 = vld [vmem:[#allocation75_spill] sm:$0xff] }
 0x419   :  { %v2724_v47 = vmul.f32 %v5673_v25, %v2649_v23  ;;  %v2725_v37 = vmul.f32 %v5676_v39, %v2650_v45  ;;  %2893 = vst [vmem:[#allocation7 + $0x1b0] sm:$0xff] %v2829_v12  ;;  %2894 = vst [vmem:[#allocation7 + $0x1b8] sm:$0xff] %v2830_v56  ;;  %v6669_v23 = vld [vmem:[#allocation42_spill] sm:$0xff]  ;;  %v6670_v12 = vld [vmem:[#allocation57_spill] sm:$0xff] }
 0x41b   :  { %v2799_v30 = vadd.f32 %v5679_v46, %v2724_v47  ;;  %v2800_v1 = vadd.f32 %v5682_v40, %v2725_v37 }
 0x41c   :  { %v2519_v8 = vpop.xlane.xlu0 %2518 }
 0x41d   :  { %v2557_v0 = vmul.f32 0.00390625, %v2519_v8  ;;  %v3265_v43 = vpop.eup %3264  ;;  %2863 = vst [vmem:[#allocation7 + $0xc0] sm:$0xff] %v2799_v30  ;;  %2864 = vst [vmem:[#allocation7 + $0xc8] sm:$0xff] %v2800_v1 }
 0x41e   :  { %v2651_v2 = vmul.f32 %v3265_v43, %v6661_v58  ;;  %v2652_v62 = vmul.f32 %v3265_v43, %v6662_v35  ;;  %v6671_v58 = vld [vmem:[#allocation100_spill] sm:$0xff]  ;;  %v6672_v35 = vld [vmem:[#allocation74_spill] sm:$0xff] }
 0x41f   :  { %v2589_v14 = vadd.f32 1e-05, %v2557_v0 }
 0x420   :  { %v2726_v21 = vmul.f32 %v5673_v25, %v2651_v2  ;;  %v2727_v10 = vmul.f32 %v5676_v39, %v2652_v62 }
 0x421   :  { %3266 = vrsqrt.f32 %v2589_v14 }
 0x422   :  { %v2801_v63 = vadd.f32 %v5679_v46, %v2726_v21  ;;  %v2802_v22 = vadd.f32 %v5682_v40, %v2727_v10 }
 0x424   :  { %v2522_v31 = vpop.xlane.xlu1 %2521  ;;  %2865 = vst [vmem:[#allocation7 + $0xd0] sm:$0xff] %v2801_v63  ;;  %2866 = vst [vmem:[#allocation7 + $0xd8] sm:$0xff] %v2802_v22 }
 0x425   :  { %v2558_v6 = vmul.f32 0.00390625, %v2522_v31 }
 0x427   :  { %v2590_v57 = vadd.f32 1e-05, %v2558_v6  ;;  %v6673_v6 = vld [vmem:[#allocation80_spill] sm:$0xff] }
 0x428   :  { %v2477_v60 = vpop.xlane.xlu0 %2476 }
 0x429   :  { %v2543_v27 = vmul.f32 0.00390625, %v2477_v60  ;;  %3268 = vrsqrt.f32 %v2590_v57  ;;  %v6674_v60 = vld [vmem:[#allocation62_spill] sm:$0xff] }
 0x42b   :  { %v2575_v55 = vadd.f32 1e-05, %v2543_v27  ;;  %v3267_v17 = vpop.eup %3266 }
 0x42c   :  { %v2681_v48 = vmul.f32 %v3267_v17, %v6663_v24  ;;  %v2682_v54 = vmul.f32 %v3267_v17, %v6664_v13 }
 0x42d   :  { %3270 = vrsqrt.f32 %v2575_v55 }
 0x42e   :  { %v2756_v3 = vmul.f32 %v5673_v25, %v2681_v48  ;;  %v2757_v52 = vmul.f32 %v5676_v39, %v2682_v54 }
 0x42f   :  { %v2480_v51 = vpop.xlane.xlu1 %2479 }
 0x430   :  { %v2544_v19 = vmul.f32 0.00390625, %v2480_v51  ;;  %v2831_v20 = vadd.f32 %v5679_v46, %v2756_v3  ;;  %v2832_v49 = vadd.f32 %v5682_v40, %v2757_v52 }
 0x432   :  { %v2576_v9 = vadd.f32 1e-05, %v2544_v19  ;;  %2895 = vst [vmem:[#allocation7 + $0x1c0] sm:$0xff] %v2831_v20  ;;  %2896 = vst [vmem:[#allocation7 + $0x1c8] sm:$0xff] %v2832_v49 }
 0x433   :  { %v3269_v16 = vpop.eup %3268 }
 0x434   :  { %v2683_v5 = vmul.f32 %v3269_v16, %v6665_v59  ;;  %v2684_v33 = vmul.f32 %v3269_v16, %v6666_v44  ;;  %3272 = vrsqrt.f32 %v2576_v9 }
 0x436   :  { %v2758_v26 = vmul.f32 %v5673_v25, %v2683_v5  ;;  %v2759_v38 = vmul.f32 %v5676_v39, %v2684_v33 }
 0x437   :  { %v3271_v15 = vpop.eup %3270 }
 0x438   :  { %v2653_v36 = vmul.f32 %v3271_v15, %v6667_v53  ;;  %v2654_v7 = vmul.f32 %v3271_v15, %v6668_v29  ;;  %v2833_v4 = vadd.f32 %v5679_v46, %v2758_v26  ;;  %v2834_v11 = vadd.f32 %v5682_v40, %v2759_v38 }
 0x43a   :  { %v2728_v34 = vmul.f32 %v5673_v25, %v2653_v36  ;;  %v2729_v28 = vmul.f32 %v5676_v39, %v2654_v7  ;;  %2897 = vst [vmem:[#allocation7 + $0x1d0] sm:$0xff] %v2833_v4  ;;  %2898 = vst [vmem:[#allocation7 + $0x1d8] sm:$0xff] %v2834_v11 }
 0x43c   :  { %v2803_v41 = vadd.f32 %v5679_v46, %v2728_v34  ;;  %v2804_v42 = vadd.f32 %v5682_v40, %v2729_v28  ;;  %v2525_v32 = vpop.xlane.xlu0 %2524 }
 0x43d   :  { %v2559_v18 = vmul.f32 0.00390625, %v2525_v32 }
 0x43e   :  { %v3273_v50 = vpop.eup %3272  ;;  %2867 = vst [vmem:[#allocation7 + $0xe0] sm:$0xff] %v2803_v41  ;;  %2868 = vst [vmem:[#allocation7 + $0xe8] sm:$0xff] %v2804_v42 }
 0x43f   :  { %v2591_v61 = vadd.f32 1e-05, %v2559_v18  ;;  %v2655_v45 = vmul.f32 %v3273_v50, %v6669_v23  ;;  %v2656_v56 = vmul.f32 %v3273_v50, %v6670_v12 }
 0x441   :  { %3274 = vrsqrt.f32 %v2591_v61  ;;  %v2730_v47 = vmul.f32 %v5673_v25, %v2655_v45  ;;  %v2731_v37 = vmul.f32 %v5676_v39, %v2656_v56 }
 0x443   :  { %v2805_v30 = vadd.f32 %v5679_v46, %v2730_v47  ;;  %v2806_v1 = vadd.f32 %v5682_v40, %v2731_v37  ;;  %v2528_v8 = vpop.xlane.xlu1 %2527 }
 0x444   :  { %v2560_v0 = vmul.f32 0.00390625, %v2528_v8 }
 0x445   :  { %2869 = vst [vmem:[#allocation7 + $0xf0] sm:$0xff] %v2805_v30  ;;  %2870 = vst [vmem:[#allocation7 + $0xf8] sm:$0xff] %v2806_v1 }
 0x446   :  { %v2592_v43 = vadd.f32 1e-05, %v2560_v0 }
 0x448   :  { %3276 = vrsqrt.f32 %v2592_v43 }
 0x44b   :  { %v3275_v14 = vpop.eup %3274 }
 0x44c   :  { %v2685_v2 = vmul.f32 %v3275_v14, %v6671_v58  ;;  %v2686_v62 = vmul.f32 %v3275_v14, %v6672_v35 }
 0x44e   :  { %v2760_v21 = vmul.f32 %v5673_v25, %v2685_v2  ;;  %v2761_v10 = vmul.f32 %v5676_v39, %v2686_v62 }
 0x450   :  { %v2835_v63 = vadd.f32 %v5679_v46, %v2760_v21  ;;  %v2836_v22 = vadd.f32 %v5682_v40, %v2761_v10 }
 0x452   :  { %v3277_v31 = vpop.eup %3276  ;;  %2899 = vst [vmem:[#allocation7 + $0x1e0] sm:$0xff] %v2835_v63  ;;  %2900 = vst [vmem:[#allocation7 + $0x1e8] sm:$0xff] %v2836_v22 }
 0x453   :  { %v2687_v57 = vmul.f32 %v3277_v31, %v6673_v6  ;;  %v2688_v27 = vmul.f32 %v3277_v31, %v6674_v60 }
 0x455   :  { %v2762_v55 = vmul.f32 %v5673_v25, %v2687_v57  ;;  %v2763_v17 = vmul.f32 %v5676_v39, %v2688_v27 }
 0x457   :  { %v2837_v24 = vadd.f32 %v5679_v46, %v2762_v55  ;;  %v2838_v48 = vadd.f32 %v5682_v40, %v2763_v17 }
 0x459   :  { %2901 = vst [vmem:[#allocation7 + $0x1f0] sm:$0xff] %v2837_v24  ;;  %2902 = vst [vmem:[#allocation7 + $0x1f8] sm:$0xff] %v2838_v48 }
 0x45a   :  { %3333 = shalt.err (!%p3330_p6)
}
 0x45b   :  { %s3334_s25 = scalar_lea.hbm %s5896_s5, 8192 }
 0x45c   :  { %p3335_p7 = scmp.ne.s32.totalorder %s5896_s5, %s3334_s25  ;;  %p3338_p8 = scmp.lt.u32.totalorder %s3334_s25, %s5896_s5 }
 0x45e   :  { %p3340_p9 = pnand %p3338_p8, %p3335_p7 }
 0x460   :  { %3343 = shalt.err (!%p3340_p9)
}
 0x461   :  { %2914 = dma.vmem_to_hbm [thread:$0]  %s2909_s4, 8192, %s5896_s5, [#allocation4], %s3351_s28, %s3351_s28, %s3352_s29  }
 0x462   :  { %3348 = dma.done.wait [#allocation4], 8192  }
 0x463   :  { %3349 = vsyncadd [#allocation4], 4294959104 }
 0x464   :  { %2918 = vsyncpa [#allocation3], 1 }
 0x465   :  { %2919 = vsyncpa [#allocation6], 1 }
 0x466   :  { %2920 = vsyncpa [#allocation4], 1 }

</bundles_post_ra>
